<compile_context>
chip_gen: v7x
topology: tpu7x:2x2x1
jax: 0.10.0
libtpu: 0.0.40
codegen_flags: <defaults>
</compile_context>

<pallas_src>
import math
from functools import partial

import numpy as np
import jax
import jax.numpy as jnp
from jax.experimental import pallas as pl
from jax.experimental.pallas import tpu as pltpu

EMBED = 96                       # embed_dim in the reference module
HEADS = 4
HEAD_DIM = EMBED // HEADS        # 24
PAD_HD = 32                      # per-head q/k/v slot padded to 32 lanes
OUT_PAD = 128                    # lane-dense channel padding for x2 (96 -> 128)
PATCH = 2
IN_CHANS = 1
LN_EPS = 1e-5                    # torch.nn.LayerNorm default
MXU_DTYPE = jnp.bfloat16         # matmul inputs; accumulation is f32


def _layernorm(x, gamma, beta):
    mu = jnp.mean(x, axis=-1, keepdims=True)
    var = jnp.mean((x - mu) ** 2, axis=-1, keepdims=True)
    return (x - mu) * jax.lax.rsqrt(var + LN_EPS) * gamma + beta


# ---------------------------------------------------------------------------
# Fused kernel: PatchEmbed + LN -> MHA (-> PatchMerging) for one batch block
# ---------------------------------------------------------------------------
def _make_kernel(bblk, n_tok, compute_merging):
    def kernel(p_ref, pe_w_ref, pe_b_ref, ln1_g_ref, ln1_b_ref,
               qkv_w_ref, qkv_b_ref, o_w_ref, o_b_ref, *rest):
        if compute_merging:
            sel_ref, ln2_g_ref, ln2_b_ref, red_w_ref, x2_ref, x3_ref = rest
        else:
            (x2_ref,) = rest

        f32 = jnp.float32
        m_rows = bblk * n_tok                        # MXU M dim for stacked matmuls

        # ---- PatchEmbed: 2x2/stride-2 conv == (M, K) @ (K, E) on the MXU + LN ----
        x = jnp.dot(p_ref[...], pe_w_ref[...],
                    preferred_element_type=f32) + pe_b_ref[...]        # (M, 96) f32
        x1 = _layernorm(x, ln1_g_ref[...], ln1_b_ref[...])             # (M, 96) f32

        # ---- MultiheadAttention ----
        # One fused QKV matmul over the whole batch block; the 1/sqrt(d) scale
        # is already folded into the q columns of qkv_w/qkv_b.  Cast to bf16
        # once so the 4-head unrolled loop slices bf16 (half the live vregs).
        qkv = (jnp.dot(x1.astype(MXU_DTYPE), qkv_w_ref[...],
                       preferred_element_type=f32)
               + qkv_b_ref[...]).astype(MXU_DTYPE)                     # (M, 384) bf16

        out = jnp.broadcast_to(o_b_ref[...], (m_rows, OUT_PAD))        # (M, 128) f32
        for h in range(HEADS):                                         # unrolled
            base = h * 3 * PAD_HD
            q = qkv[:, base:base + PAD_HD]                 # (M, 32), lanes 24..31 == 0
            k = qkv[:, base + PAD_HD:base + 2 * PAD_HD]
            v = qkv[:, base + 2 * PAD_HD:base + 3 * PAD_HD]
            vals_parts = []
            for b in range(bblk):                          # attention is per batch item
                rows = slice(b * n_tok, (b + 1) * n_tok)
                logits = jax.lax.dot_general(
                    q[rows], k[rows], (((1,), (1,)), ((), ())),
                    preferred_element_type=f32)                        # (N, N) f32
                logits = logits - jnp.max(logits, axis=-1, keepdims=True)
                e = jnp.exp(logits)
                denom = jnp.sum(e, axis=-1, keepdims=True)
                pv = jnp.dot(e.astype(MXU_DTYPE), v[rows],
                             preferred_element_type=f32)               # (N, 32)
                # deferred softmax normalization on the narrow (N,32) result;
                # the reciprocal runs on the EUP slot (effectively free).
                vals_parts.append(pv * pl.reciprocal(denom, approx=True))
            vals = vals_parts[0] if bblk == 1 else jnp.concatenate(vals_parts, axis=0)
            # o_proj contribution of head h; padded rows/lanes of o_w are zero.
            out = out + jnp.dot(vals.astype(MXU_DTYPE), o_w_ref[h],
                                preferred_element_type=f32)            # (M, 128)
        x2_ref[...] = out            # lanes 96..127 are exactly zero (lane-dense store)

        # ---- PatchMerging (dead in the reference forward; gated off by default) ----
        if compute_merging:
            feat = 4 * EMBED
            pad_lanes = 4 * (OUT_PAD - EMBED)        # zero pad lanes per merged token
            out_bf = out.astype(MXU_DTYPE)
            n_mrg = sel_ref.shape[1]                 # bblk * N2
            blocks = []
            s1 = jnp.zeros((n_mrg, 1), f32)
            for s in range(4):                       # 0/1 selection matmuls, bf16
                blk = jnp.dot(sel_ref[s], out_bf, preferred_element_type=f32)
                blocks.append(blk)
                s1 = s1 + jnp.sum(blk, axis=-1, keepdims=True)
            mu = s1 * (1.0 / feat)                   # pad lanes are 0 -> mean is exact
            s2 = jnp.zeros((n_mrg, 1), f32)
            for s in range(4):                       # two-pass (centered) variance
                d = blocks[s] - mu
                s2 = s2 + jnp.sum(d * d, axis=-1, keepdims=True)
            var = (s2 - pad_lanes * mu * mu) * (1.0 / feat)   # remove pad-lane (0-mu)^2
            inv = jax.lax.rsqrt(var + LN_EPS)
            x3 = jnp.zeros((n_mrg, 2 * OUT_PAD), f32)
            for s in range(4):
                nb = (blocks[s] - mu) * inv * ln2_g_ref[s] + ln2_b_ref[s]   # pads -> 0
                x3 = x3 + jnp.dot(nb.astype(MXU_DTYPE), red_w_ref[s],
                                  preferred_element_type=f32)               # (n_mrg, 256)
            x3_ref[...] = x3

    return kernel


# ---------------------------------------------------------------------------
# Helpers: batch-block size, merge-selection matrices, parameter packing
# ---------------------------------------------------------------------------
def _pick_bblk(B):
    # Fill the MXU M dimension (target 128 on v5e / 256 on v6e-v7x) while
    # keeping >= 2 grid steps whenever possible so v7x's two TensorCores both
    # get work.  For B == 2 we accept grid=(1,) in exchange for M = 128.
    if B % 4 == 0 and B >= 8:
        return 4
    if B % 2 == 0:
        return 2
    return 1


def _merge_select(Hp, Wp, bblk):
    """Block-diagonal 0/1 matrices picking the x0..x3 2x2 sub-grids per item."""
    N, N2 = Hp * Wp, (Hp // 2) * (Wp // 2)
    sel = np.zeros((4, N2, N), np.float32)
    offs = [(0, 0), (1, 0), (0, 1), (1, 1)]          # x0, x1, x2, x3 (row_off, col_off)
    for s, (ro, co) in enumerate(offs):
        for pi in range(Hp // 2):
            for qj in range(Wp // 2):
                sel[s, pi * (Wp // 2) + qj, (2 * pi + ro) * Wp + (2 * qj + co)] = 1.0
    big = np.zeros((4, bblk * N2, bblk * N), np.float32)
    for b in range(bblk):
        big[:, b * N2:(b + 1) * N2, b * N:(b + 1) * N] = sel
    return jnp.asarray(big, jnp.bfloat16)             # 0/1 is exact in bf16


def _pack_params(params):
    """Pad / split / scale-fold raw (torch-layout, transposed) params for the kernel."""
    scale = 1.0 / math.sqrt(HEAD_DIM)

    pe_w = params["pe_w"]
    K = pe_w.shape[0]
    pe_w_p = jnp.pad(pe_w, ((0, -K % 8), (0, 0)))                     # K -> mult of 8
    pe_b_p = params["pe_b"].reshape(1, EMBED)
    ln1_g = params["ln1_g"].reshape(1, EMBED)
    ln1_b = params["ln1_b"].reshape(1, EMBED)

    # qkv: fold softmax scale into q columns, pad head_dim 24 -> 32, bf16 weight
    w = params["qkv_w"].reshape(EMBED, HEADS, 3, HEAD_DIM)
    w = w.at[:, :, 0, :].multiply(scale)
    w = jnp.pad(w, ((0, 0), (0, 0), (0, 0), (0, PAD_HD - HEAD_DIM)))
    qkv_w_p = w.reshape(EMBED, HEADS * 3 * PAD_HD).astype(MXU_DTYPE)
    b = params["qkv_b"].reshape(HEADS, 3, HEAD_DIM)
    b = b.at[:, 0, :].multiply(scale)
    b = jnp.pad(b, ((0, 0), (0, 0), (0, PAD_HD - HEAD_DIM)))
    qkv_b_p = b.reshape(1, HEADS * 3 * PAD_HD)

    # o_proj: split rows by head, pad rows 24 -> 32 and out lanes 96 -> 128, bf16
    ow = params["o_w"].reshape(HEADS, HEAD_DIM, EMBED)
    ow = jnp.pad(ow, ((0, 0), (0, PAD_HD - HEAD_DIM), (0, OUT_PAD - EMBED)))
    o_w_p = ow.astype(MXU_DTYPE)
    o_b_p = jnp.pad(params["o_b"].reshape(1, EMBED), ((0, 0), (0, OUT_PAD - EMBED)))

    # PatchMerging: split LN/reduction into the 4 concat blocks, lane-pad, bf16 weight
    ln2_g = jnp.pad(params["ln2_g"].reshape(4, 1, EMBED),
                    ((0, 0), (0, 0), (0, OUT_PAD - EMBED)))
    ln2_b = jnp.pad(params["ln2_b"].reshape(4, 1, EMBED),
                    ((0, 0), (0, 0), (0, OUT_PAD - EMBED)))
    rw = params["red_w"].reshape(4, EMBED, 2 * EMBED)
    rw = jnp.pad(rw, ((0, 0), (0, OUT_PAD - EMBED), (0, 2 * OUT_PAD - 2 * EMBED)))
    red_w_p = rw.astype(MXU_DTYPE)

    return (pe_w_p, pe_b_p, ln1_g, ln1_b, qkv_w_p, qkv_b_p, o_w_p, o_b_p,
            ln2_g, ln2_b, red_w_p)


# ---------------------------------------------------------------------------
# Wrapper: NCHW -> stacked tokens, one pallas_call, tokens -> NCHW
# ---------------------------------------------------------------------------
def att_unet_forward(x, params, compute_merging=False):
    B, C, H, W = x.shape
    Hp, Wp = H // PATCH, W // PATCH
    N, N2 = Hp * Wp, (Hp // 2) * (Wp // 2)
    K = C * PATCH * PATCH
    K_PAD = K + (-K % 8)

    bblk = _pick_bblk(B)
    grid = (B // bblk,)

    # non-overlapping 2x2 patches, (c, kh, kw) flatten order, contraction padded to 8n
    patches = x.reshape(B, C, Hp, PATCH, Wp, PATCH)
    patches = patches.transpose(0, 2, 4, 1, 3, 5).reshape(B * N, K)
    patches = jnp.pad(patches, ((0, 0), (0, K_PAD - K)))

    (pe_w_p, pe_b_p, ln1_g, ln1_b, qkv_w_p, qkv_b_p, o_w_p, o_b_p,
     ln2_g, ln2_b, red_w_p) = _pack_params(params)

    def _full2(a):
        return pl.BlockSpec(a.shape, lambda g: (0, 0))

    def _full3(a):
        return pl.BlockSpec(a.shape, lambda g: (0, 0, 0))

    in_specs = [
        pl.BlockSpec((bblk * N, K_PAD), lambda g: (g, 0)),     # patches (batch-blocked)
        _full2(pe_w_p), _full2(pe_b_p), _full2(ln1_g), _full2(ln1_b),
        _full2(qkv_w_p), _full2(qkv_b_p), _full3(o_w_p), _full2(o_b_p),
    ]
    args = [patches, pe_w_p, pe_b_p, ln1_g, ln1_b, qkv_w_p, qkv_b_p, o_w_p, o_b_p]

    x2_shape = jax.ShapeDtypeStruct((B * N, OUT_PAD), jnp.float32)
    x2_spec = pl.BlockSpec((bblk * N, OUT_PAD), lambda g: (g, 0))

    if compute_merging:
        sel = _merge_select(Hp, Wp, bblk)
        in_specs += [_full3(sel), _full3(ln2_g), _full3(ln2_b), _full3(red_w_p)]
        args += [sel, ln2_g, ln2_b, red_w_p]
        out_shape = (x2_shape,
                     jax.ShapeDtypeStruct((B * N2, 2 * OUT_PAD), jnp.float32))
        out_specs = (x2_spec,
                     pl.BlockSpec((bblk * N2, 2 * OUT_PAD), lambda g: (g, 0)))
    else:
        out_shape = x2_shape
        out_specs = x2_spec

    res = pl.pallas_call(
        _make_kernel(bblk, N, compute_merging),
        out_shape=out_shape,
        grid=grid,
        in_specs=in_specs,
        out_specs=out_specs,
        compiler_params=pltpu.CompilerParams(dimension_semantics=("parallel",)),
    )(*args)

    if compute_merging:
        x2_pad, x3_pad = res
    else:
        x2_pad = res

    # slice off the zero pad lanes (fuses with the transpose); value returned by
    # Att_UNet.forward is x2 in NCHW.
    x2 = (x2_pad.reshape(B, N, OUT_PAD)[:, :, :EMBED]
          .transpose(0, 2, 1).reshape(B, EMBED, Hp, Wp))
    if not compute_merging:
        return x2
    x3 = (x3_pad.reshape(B, N2, 2 * OUT_PAD)[:, :, :2 * EMBED]
          .transpose(0, 2, 1).reshape(B, 2 * EMBED, Hp // 2, Wp // 2))
    return x2, x3


# ---------------------------------------------------------------------------
# Raw parameters (shapes consistent with the PyTorch module, stored transposed)
# ---------------------------------------------------------------------------
def init_params(key):
    ks = jax.random.split(key, 5)
    fan = IN_CHANS * PATCH * PATCH
    bnd = 1.0 / math.sqrt(fan)
    pe_w = jax.random.uniform(ks[0], (fan, EMBED), jnp.float32, -bnd, bnd)
    pe_b = jax.random.uniform(ks[1], (EMBED,), jnp.float32, -bnd, bnd)
    ln1_g = jnp.ones((EMBED,), jnp.float32)
    ln1_b = jnp.zeros((EMBED,), jnp.float32)

    bq = math.sqrt(6.0 / (EMBED + 3 * EMBED))          # xavier_uniform
    qkv_w = jax.random.uniform(ks[2], (EMBED, 3 * EMBED), jnp.float32, -bq, bq)
    qkv_b = jnp.zeros((3 * EMBED,), jnp.float32)

    bo = math.sqrt(6.0 / (EMBED + EMBED))              # xavier_uniform
    o_w = jax.random.uniform(ks[3], (EMBED, EMBED), jnp.float32, -bo, bo)
    o_b = jnp.zeros((EMBED,), jnp.float32)

    ln2_g = jnp.ones((4 * EMBED,), jnp.float32)
    ln2_b = jnp.zeros((4 * EMBED,), jnp.float32)
    br = 1.0 / math.sqrt(4 * EMBED)
    red_w = jax.random.uniform(ks[4], (4 * EMBED, 2 * EMBED), jnp.float32, -br, br)

    return dict(pe_w=pe_w, pe_b=pe_b, ln1_g=ln1_g, ln1_b=ln1_b,
                qkv_w=qkv_w, qkv_b=qkv_b, o_w=o_w, o_b=o_b,
                ln2_g=ln2_g, ln2_b=ln2_b, red_w=red_w)


# Pure-JAX f32 reference for the returned tensor (x2), used as a loose check.
def reference_x2(x, params):
    B, C, H, W = x.shape
    Hp, Wp = H // PATCH, W // PATCH
    N = Hp * Wp
    K = C * PATCH * PATCH
    patches = (x.reshape(B, C, Hp, PATCH, Wp, PATCH)
               .transpose(0, 2, 4, 1, 3, 5).reshape(B, N, K))
    xx = patches @ params["pe_w"] + params["pe_b"]
    mu = xx.mean(-1, keepdims=True)
    var = ((xx - mu) ** 2).mean(-1, keepdims=True)
    x1 = (xx - mu) / jnp.sqrt(var + LN_EPS) * params["ln1_g"] + params["ln1_b"]
    qkv = x1 @ params["qkv_w"] + params["qkv_b"]
    qkv = qkv.reshape(B, N, HEADS, 3 * HEAD_DIM).transpose(0, 2, 1, 3)
    q, k, v = jnp.split(qkv, 3, axis=-1)
    logits = jnp.einsum("bhqd,bhkd->bhqk", q, k) / math.sqrt(HEAD_DIM)
    attn = jax.nn.softmax(logits, axis=-1)
    vals = jnp.einsum("bhqk,bhkd->bhqd", attn, v)
    vals = vals.transpose(0, 2, 1, 3).reshape(B, N, EMBED)
    out = vals @ params["o_w"] + params["o_b"]
    return out.transpose(0, 2, 1).reshape(B, EMBED, Hp, Wp)


if __name__ == "__main__":
    key = jax.random.PRNGKey(0)
    kx, kp = jax.random.split(key)
    # small config: img_size=16 (instead of 160), patch_size=2, in_chans=1
    x = jax.random.normal(kx, (2, IN_CHANS, 16, 16), jnp.float32)
    params = init_params(kp)

    # default path: PatchMerging gated off (x3 is discarded by the reference forward)
    fwd = jax.jit(partial(att_unet_forward, compute_merging=False))
    x2 = fwd(x, params)
    jax.block_until_ready(x2)
    assert x2.shape == (2, EMBED, 8, 8)

    # loose check vs pure-JAX f32 reference (kernel feeds bf16 to the MXU)
    ref = reference_x2(x, params)
    err = float(jnp.max(jnp.abs(x2 - ref)))
    assert err < 1e-1, f"kernel deviates from f32 reference: max abs err = {err}"

    # also exercise the gated PatchMerging branch once (computed-then-discarded
    # in the reference module)
    fwd_full = jax.jit(partial(att_unet_forward, compute_merging=True))
    x2b, x3 = fwd_full(x, params)
    jax.block_until_ready(x3)
    assert x2b.shape == (2, EMBED, 8, 8)
    assert x3.shape == (2, 2 * EMBED, 4, 4)

    print("KERNEL_OK")
</pallas_src>

<mosaic_0001>
module attributes {stable_mosaic.version = 11 : i64} {
  func.func @kernel(%arg0: i32, %arg1: memref<128x8xf32, #tpu.memory_space<vmem>>, %arg2: memref<8x96xf32, #tpu.memory_space<vmem>>, %arg3: memref<1x96xf32, #tpu.memory_space<vmem>>, %arg4: memref<1x96xf32, #tpu.memory_space<vmem>>, %arg5: memref<1x96xf32, #tpu.memory_space<vmem>>, %arg6: memref<96x384xbf16, #tpu.memory_space<vmem>>, %arg7: memref<1x384xf32, #tpu.memory_space<vmem>>, %arg8: memref<4x32x128xbf16, #tpu.memory_space<vmem>>, %arg9: memref<1x128xf32, #tpu.memory_space<vmem>>, %arg10: memref<128x128xf32, #tpu.memory_space<vmem>>) attributes {dimension_semantics = [#tpu.dimension_semantics<parallel>], iteration_bounds = array<i64: 1>, scalar_prefetch = 0 : i64, scratch_operands = 0 : i64, tpu.core_type = #tpu.core_type<tc>, window_params = [{transform_indices = @transform_0, window_bounds = array<i64: 128, 8>}, {pipeline_mode = #tpu.pipeline_mode<synchronous>, transform_indices = @transform_1, window_bounds = array<i64: 8, 96>}, {pipeline_mode = #tpu.pipeline_mode<synchronous>, transform_indices = @transform_2, window_bounds = array<i64: 1, 96>}, {pipeline_mode = #tpu.pipeline_mode<synchronous>, transform_indices = @transform_3, window_bounds = array<i64: 1, 96>}, {pipeline_mode = #tpu.pipeline_mode<synchronous>, transform_indices = @transform_4, window_bounds = array<i64: 1, 96>}, {pipeline_mode = #tpu.pipeline_mode<synchronous>, transform_indices = @transform_5, window_bounds = array<i64: 96, 384>}, {pipeline_mode = #tpu.pipeline_mode<synchronous>, transform_indices = @transform_6, window_bounds = array<i64: 1, 384>}, {pipeline_mode = #tpu.pipeline_mode<synchronous>, transform_indices = @transform_7, window_bounds = array<i64: 4, 32, 128>}, {pipeline_mode = #tpu.pipeline_mode<synchronous>, transform_indices = @transform_8, window_bounds = array<i64: 1, 128>}, {transform_indices = @transform_9, window_bounds = array<i64: 128, 128>}]} {
    %c0 = arith.constant 0 : index
    %c0_0 = arith.constant 0 : index
    %0 = vector.load %arg1[%c0, %c0_0] : memref<128x8xf32, #tpu.memory_space<vmem>>, vector<128x8xf32>
    %c0_1 = arith.constant 0 : index
    %c0_2 = arith.constant 0 : index
    %1 = vector.load %arg2[%c0_1, %c0_2] : memref<8x96xf32, #tpu.memory_space<vmem>>, vector<8x96xf32>
    %cst = arith.constant dense<0.000000e+00> : vector<128x96xf32>
    %2 = tpu.matmul %0, %1, %cst {dimension_numbers = #tpu.dot_dimension_numbers<[1], [0], [0], [1], [0, 0, 1, 1], [], []>} : vector<128x8xf32>, vector<8x96xf32>, vector<128x96xf32> -> vector<128x96xf32>
    %c0_3 = arith.constant 0 : index
    %c0_4 = arith.constant 0 : index
    %3 = vector.load %arg3[%c0_3, %c0_4] : memref<1x96xf32, #tpu.memory_space<vmem>>, vector<1x96xf32>
    %4 = vector.broadcast %3 : vector<1x96xf32> to vector<128x96xf32>
    %5 = arith.addf %2, %4 : vector<128x96xf32>
    %c0_5 = arith.constant 0 : index
    %c0_6 = arith.constant 0 : index
    %6 = vector.load %arg4[%c0_5, %c0_6] : memref<1x96xf32, #tpu.memory_space<vmem>>, vector<1x96xf32>
    %c0_7 = arith.constant 0 : index
    %c0_8 = arith.constant 0 : index
    %7 = vector.load %arg5[%c0_7, %c0_8] : memref<1x96xf32, #tpu.memory_space<vmem>>, vector<1x96xf32>
    %cst_9 = arith.constant dense<0.000000e+00> : vector<128xf32>
    %8 = vector.multi_reduction <add>, %5, %cst_9 [1] : vector<128x96xf32> to vector<128xf32>
    %9 = vector.shape_cast %8 : vector<128xf32> to vector<128x1xf32>
    %cst_10 = arith.constant 9.600000e+01 : f32
    %10 = vector.broadcast %cst_10 : f32 to vector<128x1xf32>
    %11 = arith.divf %9, %10 : vector<128x1xf32>
    %12 = vector.broadcast %11 : vector<128x1xf32> to vector<128x96xf32>
    %13 = arith.subf %5, %12 : vector<128x96xf32>
    %14 = arith.mulf %13, %13 : vector<128x96xf32>
    %cst_11 = arith.constant dense<0.000000e+00> : vector<128xf32>
    %15 = vector.multi_reduction <add>, %14, %cst_11 [1] : vector<128x96xf32> to vector<128xf32>
    %16 = vector.shape_cast %15 : vector<128xf32> to vector<128x1xf32>
    %cst_12 = arith.constant 9.600000e+01 : f32
    %17 = vector.broadcast %cst_12 : f32 to vector<128x1xf32>
    %18 = arith.divf %16, %17 : vector<128x1xf32>
    %19 = vector.broadcast %11 : vector<128x1xf32> to vector<128x96xf32>
    %20 = arith.subf %5, %19 : vector<128x96xf32>
    %cst_13 = arith.constant 9.99999974E-6 : f32
    %21 = vector.broadcast %cst_13 : f32 to vector<128x1xf32>
    %22 = arith.addf %18, %21 : vector<128x1xf32>
    %23 = math.rsqrt %22 : vector<128x1xf32>
    %24 = vector.broadcast %23 : vector<128x1xf32> to vector<128x96xf32>
    %25 = arith.mulf %20, %24 : vector<128x96xf32>
    %26 = vector.broadcast %6 : vector<1x96xf32> to vector<128x96xf32>
    %27 = arith.mulf %25, %26 : vector<128x96xf32>
    %28 = vector.broadcast %7 : vector<1x96xf32> to vector<128x96xf32>
    %29 = arith.addf %27, %28 : vector<128x96xf32>
    %30 = arith.truncf %29 : vector<128x96xf32> to vector<128x96xbf16>
    %c0_14 = arith.constant 0 : index
    %c0_15 = arith.constant 0 : index
    %31 = vector.load %arg6[%c0_14, %c0_15] : memref<96x384xbf16, #tpu.memory_space<vmem>>, vector<96x384xbf16>
    %cst_16 = arith.constant dense<0.000000e+00> : vector<128x384xf32>
    %32 = tpu.matmul %30, %31, %cst_16 {dimension_numbers = #tpu.dot_dimension_numbers<[1], [0], [0], [1], [0, 0, 1, 1], [], []>} : vector<128x96xbf16>, vector<96x384xbf16>, vector<128x384xf32> -> vector<128x384xf32>
    %c0_17 = arith.constant 0 : index
    %c0_18 = arith.constant 0 : index
    %33 = vector.load %arg7[%c0_17, %c0_18] : memref<1x384xf32, #tpu.memory_space<vmem>>, vector<1x384xf32>
    %34 = vector.broadcast %33 : vector<1x384xf32> to vector<128x384xf32>
    %35 = arith.addf %32, %34 : vector<128x384xf32>
    %36 = arith.truncf %35 : vector<128x384xf32> to vector<128x384xbf16>
    %c0_19 = arith.constant 0 : index
    %c0_20 = arith.constant 0 : index
    %37 = vector.load %arg9[%c0_19, %c0_20] : memref<1x128xf32, #tpu.memory_space<vmem>>, vector<1x128xf32>
    %38 = vector.shape_cast %37 : vector<1x128xf32> to vector<1x128xf32>
    %39 = vector.broadcast %38 : vector<1x128xf32> to vector<128x128xf32>
    %40 = vector.extract_strided_slice %36 {offsets = [0, 0], sizes = [128, 32], strides = [1, 1]} : vector<128x384xbf16> to vector<128x32xbf16>
    %41 = vector.extract_strided_slice %36 {offsets = [0, 32], sizes = [128, 32], strides = [1, 1]} : vector<128x384xbf16> to vector<128x32xbf16>
    %42 = vector.extract_strided_slice %36 {offsets = [0, 64], sizes = [128, 32], strides = [1, 1]} : vector<128x384xbf16> to vector<128x32xbf16>
    %43 = vector.extract_strided_slice %40 {offsets = [0, 0], sizes = [64, 32], strides = [1, 1]} : vector<128x32xbf16> to vector<64x32xbf16>
    %44 = vector.extract_strided_slice %41 {offsets = [0, 0], sizes = [64, 32], strides = [1, 1]} : vector<128x32xbf16> to vector<64x32xbf16>
    %cst_21 = arith.constant dense<0.000000e+00> : vector<64x64xf32>
    %45 = tpu.matmul %43, %44, %cst_21 {dimension_numbers = #tpu.dot_dimension_numbers<[1], [1], [0], [0], [0, 0, 1, 0], [], []>} : vector<64x32xbf16>, vector<64x32xbf16>, vector<64x64xf32> -> vector<64x64xf32>
    %cst_22 = arith.constant dense<0xFF800000> : vector<64xf32>
    %46 = vector.multi_reduction <maximumf>, %45, %cst_22 [1] : vector<64x64xf32> to vector<64xf32>
    %47 = vector.shape_cast %46 : vector<64xf32> to vector<64x1xf32>
    %48 = vector.broadcast %47 : vector<64x1xf32> to vector<64x64xf32>
    %49 = arith.subf %45, %48 : vector<64x64xf32>
    %50 = math.exp %49 : vector<64x64xf32>
    %cst_23 = arith.constant dense<0.000000e+00> : vector<64xf32>
    %51 = vector.multi_reduction <add>, %50, %cst_23 [1] : vector<64x64xf32> to vector<64xf32>
    %52 = vector.shape_cast %51 : vector<64xf32> to vector<64x1xf32>
    %53 = arith.truncf %50 : vector<64x64xf32> to vector<64x64xbf16>
    %54 = vector.extract_strided_slice %42 {offsets = [0, 0], sizes = [64, 32], strides = [1, 1]} : vector<128x32xbf16> to vector<64x32xbf16>
    %cst_24 = arith.constant dense<0.000000e+00> : vector<64x32xf32>
    %55 = tpu.matmul %53, %54, %cst_24 {dimension_numbers = #tpu.dot_dimension_numbers<[1], [0], [0], [1], [0, 0, 1, 1], [], []>} : vector<64x64xbf16>, vector<64x32xbf16>, vector<64x32xf32> -> vector<64x32xf32>
    %56 = tpu.reciprocal %52 {approx = true} : vector<64x1xf32> -> vector<64x1xf32>
    %57 = vector.broadcast %56 : vector<64x1xf32> to vector<64x32xf32>
    %58 = arith.mulf %55, %57 : vector<64x32xf32>
    %59 = vector.extract_strided_slice %40 {offsets = [64, 0], sizes = [64, 32], strides = [1, 1]} : vector<128x32xbf16> to vector<64x32xbf16>
    %60 = vector.extract_strided_slice %41 {offsets = [64, 0], sizes = [64, 32], strides = [1, 1]} : vector<128x32xbf16> to vector<64x32xbf16>
    %cst_25 = arith.constant dense<0.000000e+00> : vector<64x64xf32>
    %61 = tpu.matmul %59, %60, %cst_25 {dimension_numbers = #tpu.dot_dimension_numbers<[1], [1], [0], [0], [0, 0, 1, 0], [], []>} : vector<64x32xbf16>, vector<64x32xbf16>, vector<64x64xf32> -> vector<64x64xf32>
    %cst_26 = arith.constant dense<0xFF800000> : vector<64xf32>
    %62 = vector.multi_reduction <maximumf>, %61, %cst_26 [1] : vector<64x64xf32> to vector<64xf32>
    %63 = vector.shape_cast %62 : vector<64xf32> to vector<64x1xf32>
    %64 = vector.broadcast %63 : vector<64x1xf32> to vector<64x64xf32>
    %65 = arith.subf %61, %64 : vector<64x64xf32>
    %66 = math.exp %65 : vector<64x64xf32>
    %cst_27 = arith.constant dense<0.000000e+00> : vector<64xf32>
    %67 = vector.multi_reduction <add>, %66, %cst_27 [1] : vector<64x64xf32> to vector<64xf32>
    %68 = vector.shape_cast %67 : vector<64xf32> to vector<64x1xf32>
    %69 = arith.truncf %66 : vector<64x64xf32> to vector<64x64xbf16>
    %70 = vector.extract_strided_slice %42 {offsets = [64, 0], sizes = [64, 32], strides = [1, 1]} : vector<128x32xbf16> to vector<64x32xbf16>
    %cst_28 = arith.constant dense<0.000000e+00> : vector<64x32xf32>
    %71 = tpu.matmul %69, %70, %cst_28 {dimension_numbers = #tpu.dot_dimension_numbers<[1], [0], [0], [1], [0, 0, 1, 1], [], []>} : vector<64x64xbf16>, vector<64x32xbf16>, vector<64x32xf32> -> vector<64x32xf32>
    %72 = tpu.reciprocal %68 {approx = true} : vector<64x1xf32> -> vector<64x1xf32>
    %73 = vector.broadcast %72 : vector<64x1xf32> to vector<64x32xf32>
    %74 = arith.mulf %71, %73 : vector<64x32xf32>
    %75 = tpu.concatenate %58, %74 in 0 : vector<64x32xf32>, vector<64x32xf32> -> vector<128x32xf32>
    %76 = arith.truncf %75 : vector<128x32xf32> to vector<128x32xbf16>
    %c0_29 = arith.constant 0 : index
    %c0_30 = arith.constant 0 : index
    %c0_31 = arith.constant 0 : index
    %77 = vector.load %arg8[%c0_29, %c0_30, %c0_31] : memref<4x32x128xbf16, #tpu.memory_space<vmem>>, vector<1x32x128xbf16>
    %78 = vector.shape_cast %77 : vector<1x32x128xbf16> to vector<32x128xbf16>
    %cst_32 = arith.constant dense<0.000000e+00> : vector<128x128xf32>
    %79 = tpu.matmul %76, %78, %cst_32 {dimension_numbers = #tpu.dot_dimension_numbers<[1], [0], [0], [1], [0, 0, 1, 1], [], []>} : vector<128x32xbf16>, vector<32x128xbf16>, vector<128x128xf32> -> vector<128x128xf32>
    %80 = arith.addf %39, %79 : vector<128x128xf32>
    %81 = vector.extract_strided_slice %36 {offsets = [0, 96], sizes = [128, 32], strides = [1, 1]} : vector<128x384xbf16> to vector<128x32xbf16>
    %82 = vector.extract_strided_slice %36 {offsets = [0, 128], sizes = [128, 32], strides = [1, 1]} : vector<128x384xbf16> to vector<128x32xbf16>
    %83 = vector.extract_strided_slice %36 {offsets = [0, 160], sizes = [128, 32], strides = [1, 1]} : vector<128x384xbf16> to vector<128x32xbf16>
    %84 = vector.extract_strided_slice %81 {offsets = [0, 0], sizes = [64, 32], strides = [1, 1]} : vector<128x32xbf16> to vector<64x32xbf16>
    %85 = vector.extract_strided_slice %82 {offsets = [0, 0], sizes = [64, 32], strides = [1, 1]} : vector<128x32xbf16> to vector<64x32xbf16>
    %cst_33 = arith.constant dense<0.000000e+00> : vector<64x64xf32>
    %86 = tpu.matmul %84, %85, %cst_33 {dimension_numbers = #tpu.dot_dimension_numbers<[1], [1], [0], [0], [0, 0, 1, 0], [], []>} : vector<64x32xbf16>, vector<64x32xbf16>, vector<64x64xf32> -> vector<64x64xf32>
    %cst_34 = arith.constant dense<0xFF800000> : vector<64xf32>
    %87 = vector.multi_reduction <maximumf>, %86, %cst_34 [1] : vector<64x64xf32> to vector<64xf32>
    %88 = vector.shape_cast %87 : vector<64xf32> to vector<64x1xf32>
    %89 = vector.broadcast %88 : vector<64x1xf32> to vector<64x64xf32>
    %90 = arith.subf %86, %89 : vector<64x64xf32>
    %91 = math.exp %90 : vector<64x64xf32>
    %cst_35 = arith.constant dense<0.000000e+00> : vector<64xf32>
    %92 = vector.multi_reduction <add>, %91, %cst_35 [1] : vector<64x64xf32> to vector<64xf32>
    %93 = vector.shape_cast %92 : vector<64xf32> to vector<64x1xf32>
    %94 = arith.truncf %91 : vector<64x64xf32> to vector<64x64xbf16>
    %95 = vector.extract_strided_slice %83 {offsets = [0, 0], sizes = [64, 32], strides = [1, 1]} : vector<128x32xbf16> to vector<64x32xbf16>
    %cst_36 = arith.constant dense<0.000000e+00> : vector<64x32xf32>
    %96 = tpu.matmul %94, %95, %cst_36 {dimension_numbers = #tpu.dot_dimension_numbers<[1], [0], [0], [1], [0, 0, 1, 1], [], []>} : vector<64x64xbf16>, vector<64x32xbf16>, vector<64x32xf32> -> vector<64x32xf32>
    %97 = tpu.reciprocal %93 {approx = true} : vector<64x1xf32> -> vector<64x1xf32>
    %98 = vector.broadcast %97 : vector<64x1xf32> to vector<64x32xf32>
    %99 = arith.mulf %96, %98 : vector<64x32xf32>
    %100 = vector.extract_strided_slice %81 {offsets = [64, 0], sizes = [64, 32], strides = [1, 1]} : vector<128x32xbf16> to vector<64x32xbf16>
    %101 = vector.extract_strided_slice %82 {offsets = [64, 0], sizes = [64, 32], strides = [1, 1]} : vector<128x32xbf16> to vector<64x32xbf16>
    %cst_37 = arith.constant dense<0.000000e+00> : vector<64x64xf32>
    %102 = tpu.matmul %100, %101, %cst_37 {dimension_numbers = #tpu.dot_dimension_numbers<[1], [1], [0], [0], [0, 0, 1, 0], [], []>} : vector<64x32xbf16>, vector<64x32xbf16>, vector<64x64xf32> -> vector<64x64xf32>
    %cst_38 = arith.constant dense<0xFF800000> : vector<64xf32>
    %103 = vector.multi_reduction <maximumf>, %102, %cst_38 [1] : vector<64x64xf32> to vector<64xf32>
    %104 = vector.shape_cast %103 : vector<64xf32> to vector<64x1xf32>
    %105 = vector.broadcast %104 : vector<64x1xf32> to vector<64x64xf32>
    %106 = arith.subf %102, %105 : vector<64x64xf32>
    %107 = math.exp %106 : vector<64x64xf32>
    %cst_39 = arith.constant dense<0.000000e+00> : vector<64xf32>
    %108 = vector.multi_reduction <add>, %107, %cst_39 [1] : vector<64x64xf32> to vector<64xf32>
    %109 = vector.shape_cast %108 : vector<64xf32> to vector<64x1xf32>
    %110 = arith.truncf %107 : vector<64x64xf32> to vector<64x64xbf16>
    %111 = vector.extract_strided_slice %83 {offsets = [64, 0], sizes = [64, 32], strides = [1, 1]} : vector<128x32xbf16> to vector<64x32xbf16>
    %cst_40 = arith.constant dense<0.000000e+00> : vector<64x32xf32>
    %112 = tpu.matmul %110, %111, %cst_40 {dimension_numbers = #tpu.dot_dimension_numbers<[1], [0], [0], [1], [0, 0, 1, 1], [], []>} : vector<64x64xbf16>, vector<64x32xbf16>, vector<64x32xf32> -> vector<64x32xf32>
    %113 = tpu.reciprocal %109 {approx = true} : vector<64x1xf32> -> vector<64x1xf32>
    %114 = vector.broadcast %113 : vector<64x1xf32> to vector<64x32xf32>
    %115 = arith.mulf %112, %114 : vector<64x32xf32>
    %116 = tpu.concatenate %99, %115 in 0 : vector<64x32xf32>, vector<64x32xf32> -> vector<128x32xf32>
    %117 = arith.truncf %116 : vector<128x32xf32> to vector<128x32xbf16>
    %c1 = arith.constant 1 : index
    %c0_41 = arith.constant 0 : index
    %c0_42 = arith.constant 0 : index
    %118 = vector.load %arg8[%c1, %c0_41, %c0_42] : memref<4x32x128xbf16, #tpu.memory_space<vmem>>, vector<1x32x128xbf16>
    %119 = vector.shape_cast %118 : vector<1x32x128xbf16> to vector<32x128xbf16>
    %cst_43 = arith.constant dense<0.000000e+00> : vector<128x128xf32>
    %120 = tpu.matmul %117, %119, %cst_43 {dimension_numbers = #tpu.dot_dimension_numbers<[1], [0], [0], [1], [0, 0, 1, 1], [], []>} : vector<128x32xbf16>, vector<32x128xbf16>, vector<128x128xf32> -> vector<128x128xf32>
    %121 = arith.addf %80, %120 : vector<128x128xf32>
    %122 = vector.extract_strided_slice %36 {offsets = [0, 192], sizes = [128, 32], strides = [1, 1]} : vector<128x384xbf16> to vector<128x32xbf16>
    %123 = vector.extract_strided_slice %36 {offsets = [0, 224], sizes = [128, 32], strides = [1, 1]} : vector<128x384xbf16> to vector<128x32xbf16>
    %124 = vector.extract_strided_slice %36 {offsets = [0, 256], sizes = [128, 32], strides = [1, 1]} : vector<128x384xbf16> to vector<128x32xbf16>
    %125 = vector.extract_strided_slice %122 {offsets = [0, 0], sizes = [64, 32], strides = [1, 1]} : vector<128x32xbf16> to vector<64x32xbf16>
    %126 = vector.extract_strided_slice %123 {offsets = [0, 0], sizes = [64, 32], strides = [1, 1]} : vector<128x32xbf16> to vector<64x32xbf16>
    %cst_44 = arith.constant dense<0.000000e+00> : vector<64x64xf32>
    %127 = tpu.matmul %125, %126, %cst_44 {dimension_numbers = #tpu.dot_dimension_numbers<[1], [1], [0], [0], [0, 0, 1, 0], [], []>} : vector<64x32xbf16>, vector<64x32xbf16>, vector<64x64xf32> -> vector<64x64xf32>
    %cst_45 = arith.constant dense<0xFF800000> : vector<64xf32>
    %128 = vector.multi_reduction <maximumf>, %127, %cst_45 [1] : vector<64x64xf32> to vector<64xf32>
    %129 = vector.shape_cast %128 : vector<64xf32> to vector<64x1xf32>
    %130 = vector.broadcast %129 : vector<64x1xf32> to vector<64x64xf32>
    %131 = arith.subf %127, %130 : vector<64x64xf32>
    %132 = math.exp %131 : vector<64x64xf32>
    %cst_46 = arith.constant dense<0.000000e+00> : vector<64xf32>
    %133 = vector.multi_reduction <add>, %132, %cst_46 [1] : vector<64x64xf32> to vector<64xf32>
    %134 = vector.shape_cast %133 : vector<64xf32> to vector<64x1xf32>
    %135 = arith.truncf %132 : vector<64x64xf32> to vector<64x64xbf16>
    %136 = vector.extract_strided_slice %124 {offsets = [0, 0], sizes = [64, 32], strides = [1, 1]} : vector<128x32xbf16> to vector<64x32xbf16>
    %cst_47 = arith.constant dense<0.000000e+00> : vector<64x32xf32>
    %137 = tpu.matmul %135, %136, %cst_47 {dimension_numbers = #tpu.dot_dimension_numbers<[1], [0], [0], [1], [0, 0, 1, 1], [], []>} : vector<64x64xbf16>, vector<64x32xbf16>, vector<64x32xf32> -> vector<64x32xf32>
    %138 = tpu.reciprocal %134 {approx = true} : vector<64x1xf32> -> vector<64x1xf32>
    %139 = vector.broadcast %138 : vector<64x1xf32> to vector<64x32xf32>
    %140 = arith.mulf %137, %139 : vector<64x32xf32>
    %141 = vector.extract_strided_slice %122 {offsets = [64, 0], sizes = [64, 32], strides = [1, 1]} : vector<128x32xbf16> to vector<64x32xbf16>
    %142 = vector.extract_strided_slice %123 {offsets = [64, 0], sizes = [64, 32], strides = [1, 1]} : vector<128x32xbf16> to vector<64x32xbf16>
    %cst_48 = arith.constant dense<0.000000e+00> : vector<64x64xf32>
    %143 = tpu.matmul %141, %142, %cst_48 {dimension_numbers = #tpu.dot_dimension_numbers<[1], [1], [0], [0], [0, 0, 1, 0], [], []>} : vector<64x32xbf16>, vector<64x32xbf16>, vector<64x64xf32> -> vector<64x64xf32>
    %cst_49 = arith.constant dense<0xFF800000> : vector<64xf32>
    %144 = vector.multi_reduction <maximumf>, %143, %cst_49 [1] : vector<64x64xf32> to vector<64xf32>
    %145 = vector.shape_cast %144 : vector<64xf32> to vector<64x1xf32>
    %146 = vector.broadcast %145 : vector<64x1xf32> to vector<64x64xf32>
    %147 = arith.subf %143, %146 : vector<64x64xf32>
    %148 = math.exp %147 : vector<64x64xf32>
    %cst_50 = arith.constant dense<0.000000e+00> : vector<64xf32>
    %149 = vector.multi_reduction <add>, %148, %cst_50 [1] : vector<64x64xf32> to vector<64xf32>
    %150 = vector.shape_cast %149 : vector<64xf32> to vector<64x1xf32>
    %151 = arith.truncf %148 : vector<64x64xf32> to vector<64x64xbf16>
    %152 = vector.extract_strided_slice %124 {offsets = [64, 0], sizes = [64, 32], strides = [1, 1]} : vector<128x32xbf16> to vector<64x32xbf16>
    %cst_51 = arith.constant dense<0.000000e+00> : vector<64x32xf32>
    %153 = tpu.matmul %151, %152, %cst_51 {dimension_numbers = #tpu.dot_dimension_numbers<[1], [0], [0], [1], [0, 0, 1, 1], [], []>} : vector<64x64xbf16>, vector<64x32xbf16>, vector<64x32xf32> -> vector<64x32xf32>
    %154 = tpu.reciprocal %150 {approx = true} : vector<64x1xf32> -> vector<64x1xf32>
    %155 = vector.broadcast %154 : vector<64x1xf32> to vector<64x32xf32>
    %156 = arith.mulf %153, %155 : vector<64x32xf32>
    %157 = tpu.concatenate %140, %156 in 0 : vector<64x32xf32>, vector<64x32xf32> -> vector<128x32xf32>
    %158 = arith.truncf %157 : vector<128x32xf32> to vector<128x32xbf16>
    %c2 = arith.constant 2 : index
    %c0_52 = arith.constant 0 : index
    %c0_53 = arith.constant 0 : index
    %159 = vector.load %arg8[%c2, %c0_52, %c0_53] : memref<4x32x128xbf16, #tpu.memory_space<vmem>>, vector<1x32x128xbf16>
    %160 = vector.shape_cast %159 : vector<1x32x128xbf16> to vector<32x128xbf16>
    %cst_54 = arith.constant dense<0.000000e+00> : vector<128x128xf32>
    %161 = tpu.matmul %158, %160, %cst_54 {dimension_numbers = #tpu.dot_dimension_numbers<[1], [0], [0], [1], [0, 0, 1, 1], [], []>} : vector<128x32xbf16>, vector<32x128xbf16>, vector<128x128xf32> -> vector<128x128xf32>
    %162 = arith.addf %121, %161 : vector<128x128xf32>
    %163 = vector.extract_strided_slice %36 {offsets = [0, 288], sizes = [128, 32], strides = [1, 1]} : vector<128x384xbf16> to vector<128x32xbf16>
    %164 = vector.extract_strided_slice %36 {offsets = [0, 320], sizes = [128, 32], strides = [1, 1]} : vector<128x384xbf16> to vector<128x32xbf16>
    %165 = vector.extract_strided_slice %36 {offsets = [0, 352], sizes = [128, 32], strides = [1, 1]} : vector<128x384xbf16> to vector<128x32xbf16>
    %166 = vector.extract_strided_slice %163 {offsets = [0, 0], sizes = [64, 32], strides = [1, 1]} : vector<128x32xbf16> to vector<64x32xbf16>
    %167 = vector.extract_strided_slice %164 {offsets = [0, 0], sizes = [64, 32], strides = [1, 1]} : vector<128x32xbf16> to vector<64x32xbf16>
    %cst_55 = arith.constant dense<0.000000e+00> : vector<64x64xf32>
    %168 = tpu.matmul %166, %167, %cst_55 {dimension_numbers = #tpu.dot_dimension_numbers<[1], [1], [0], [0], [0, 0, 1, 0], [], []>} : vector<64x32xbf16>, vector<64x32xbf16>, vector<64x64xf32> -> vector<64x64xf32>
    %cst_56 = arith.constant dense<0xFF800000> : vector<64xf32>
    %169 = vector.multi_reduction <maximumf>, %168, %cst_56 [1] : vector<64x64xf32> to vector<64xf32>
    %170 = vector.shape_cast %169 : vector<64xf32> to vector<64x1xf32>
    %171 = vector.broadcast %170 : vector<64x1xf32> to vector<64x64xf32>
    %172 = arith.subf %168, %171 : vector<64x64xf32>
    %173 = math.exp %172 : vector<64x64xf32>
    %cst_57 = arith.constant dense<0.000000e+00> : vector<64xf32>
    %174 = vector.multi_reduction <add>, %173, %cst_57 [1] : vector<64x64xf32> to vector<64xf32>
    %175 = vector.shape_cast %174 : vector<64xf32> to vector<64x1xf32>
    %176 = arith.truncf %173 : vector<64x64xf32> to vector<64x64xbf16>
    %177 = vector.extract_strided_slice %165 {offsets = [0, 0], sizes = [64, 32], strides = [1, 1]} : vector<128x32xbf16> to vector<64x32xbf16>
    %cst_58 = arith.constant dense<0.000000e+00> : vector<64x32xf32>
    %178 = tpu.matmul %176, %177, %cst_58 {dimension_numbers = #tpu.dot_dimension_numbers<[1], [0], [0], [1], [0, 0, 1, 1], [], []>} : vector<64x64xbf16>, vector<64x32xbf16>, vector<64x32xf32> -> vector<64x32xf32>
    %179 = tpu.reciprocal %175 {approx = true} : vector<64x1xf32> -> vector<64x1xf32>
    %180 = vector.broadcast %179 : vector<64x1xf32> to vector<64x32xf32>
    %181 = arith.mulf %178, %180 : vector<64x32xf32>
    %182 = vector.extract_strided_slice %163 {offsets = [64, 0], sizes = [64, 32], strides = [1, 1]} : vector<128x32xbf16> to vector<64x32xbf16>
    %183 = vector.extract_strided_slice %164 {offsets = [64, 0], sizes = [64, 32], strides = [1, 1]} : vector<128x32xbf16> to vector<64x32xbf16>
    %cst_59 = arith.constant dense<0.000000e+00> : vector<64x64xf32>
    %184 = tpu.matmul %182, %183, %cst_59 {dimension_numbers = #tpu.dot_dimension_numbers<[1], [1], [0], [0], [0, 0, 1, 0], [], []>} : vector<64x32xbf16>, vector<64x32xbf16>, vector<64x64xf32> -> vector<64x64xf32>
    %cst_60 = arith.constant dense<0xFF800000> : vector<64xf32>
    %185 = vector.multi_reduction <maximumf>, %184, %cst_60 [1] : vector<64x64xf32> to vector<64xf32>
    %186 = vector.shape_cast %185 : vector<64xf32> to vector<64x1xf32>
    %187 = vector.broadcast %186 : vector<64x1xf32> to vector<64x64xf32>
    %188 = arith.subf %184, %187 : vector<64x64xf32>
    %189 = math.exp %188 : vector<64x64xf32>
    %cst_61 = arith.constant dense<0.000000e+00> : vector<64xf32>
    %190 = vector.multi_reduction <add>, %189, %cst_61 [1] : vector<64x64xf32> to vector<64xf32>
    %191 = vector.shape_cast %190 : vector<64xf32> to vector<64x1xf32>
    %192 = arith.truncf %189 : vector<64x64xf32> to vector<64x64xbf16>
    %193 = vector.extract_strided_slice %165 {offsets = [64, 0], sizes = [64, 32], strides = [1, 1]} : vector<128x32xbf16> to vector<64x32xbf16>
    %cst_62 = arith.constant dense<0.000000e+00> : vector<64x32xf32>
    %194 = tpu.matmul %192, %193, %cst_62 {dimension_numbers = #tpu.dot_dimension_numbers<[1], [0], [0], [1], [0, 0, 1, 1], [], []>} : vector<64x64xbf16>, vector<64x32xbf16>, vector<64x32xf32> -> vector<64x32xf32>
    %195 = tpu.reciprocal %191 {approx = true} : vector<64x1xf32> -> vector<64x1xf32>
    %196 = vector.broadcast %195 : vector<64x1xf32> to vector<64x32xf32>
    %197 = arith.mulf %194, %196 : vector<64x32xf32>
    %198 = tpu.concatenate %181, %197 in 0 : vector<64x32xf32>, vector<64x32xf32> -> vector<128x32xf32>
    %199 = arith.truncf %198 : vector<128x32xf32> to vector<128x32xbf16>
    %c3 = arith.constant 3 : index
    %c0_63 = arith.constant 0 : index
    %c0_64 = arith.constant 0 : index
    %200 = vector.load %arg8[%c3, %c0_63, %c0_64] : memref<4x32x128xbf16, #tpu.memory_space<vmem>>, vector<1x32x128xbf16>
    %201 = vector.shape_cast %200 : vector<1x32x128xbf16> to vector<32x128xbf16>
    %cst_65 = arith.constant dense<0.000000e+00> : vector<128x128xf32>
    %202 = tpu.matmul %199, %201, %cst_65 {dimension_numbers = #tpu.dot_dimension_numbers<[1], [0], [0], [1], [0, 0, 1, 1], [], []>} : vector<128x32xbf16>, vector<32x128xbf16>, vector<128x128xf32> -> vector<128x128xf32>
    %203 = arith.addf %162, %202 : vector<128x128xf32>
    %c0_66 = arith.constant 0 : index
    %c0_67 = arith.constant 0 : index
    %204 = vector.load %arg10[%c0_66, %c0_67] : memref<128x128xf32, #tpu.memory_space<vmem>>, vector<128x128xf32>
    tpu.vector_store %arg10[%c0_66, %c0_67], %203 {strides = array<i32>} : memref<128x128xf32, #tpu.memory_space<vmem>>, vector<128x128xf32>,
    return
  }
  func.func @transform_0(%arg0: i32) -> (i32, i32) {
    %c0_i32 = arith.constant 0 : i32
    %c0_i32_0 = arith.constant 0 : i32
    return %arg0, %c0_i32 : i32, i32
  }
  func.func @transform_1(%arg0: i32) -> (i32, i32) {
    %c0_i32 = arith.constant 0 : i32
    %c0_i32_0 = arith.constant 0 : i32
    %c0_i32_1 = arith.constant 0 : i32
    return %c0_i32, %c0_i32_0 : i32, i32
  }
  func.func @transform_2(%arg0: i32) -> (i32, i32) {
    %c0_i32 = arith.constant 0 : i32
    %c0_i32_0 = arith.constant 0 : i32
    %c0_i32_1 = arith.constant 0 : i32
    return %c0_i32, %c0_i32_0 : i32, i32
  }
  func.func @transform_3(%arg0: i32) -> (i32, i32) {
    %c0_i32 = arith.constant 0 : i32
    %c0_i32_0 = arith.constant 0 : i32
    %c0_i32_1 = arith.constant 0 : i32
    return %c0_i32, %c0_i32_0 : i32, i32
  }
  func.func @transform_4(%arg0: i32) -> (i32, i32) {
    %c0_i32 = arith.constant 0 : i32
    %c0_i32_0 = arith.constant 0 : i32
    %c0_i32_1 = arith.constant 0 : i32
    return %c0_i32, %c0_i32_0 : i32, i32
  }
  func.func @transform_5(%arg0: i32) -> (i32, i32) {
    %c0_i32 = arith.constant 0 : i32
    %c0_i32_0 = arith.constant 0 : i32
    %c0_i32_1 = arith.constant 0 : i32
    return %c0_i32, %c0_i32_0 : i32, i32
  }
  func.func @transform_6(%arg0: i32) -> (i32, i32) {
    %c0_i32 = arith.constant 0 : i32
    %c0_i32_0 = arith.constant 0 : i32
    %c0_i32_1 = arith.constant 0 : i32
    return %c0_i32, %c0_i32_0 : i32, i32
  }
  func.func @transform_7(%arg0: i32) -> (i32, i32, i32) {
    %c0_i32 = arith.constant 0 : i32
    %c0_i32_0 = arith.constant 0 : i32
    %c0_i32_1 = arith.constant 0 : i32
    %c0_i32_2 = arith.constant 0 : i32
    return %c0_i32, %c0_i32_0, %c0_i32_1 : i32, i32, i32
  }
  func.func @transform_8(%arg0: i32) -> (i32, i32) {
    %c0_i32 = arith.constant 0 : i32
    %c0_i32_0 = arith.constant 0 : i32
    %c0_i32_1 = arith.constant 0 : i32
    return %c0_i32, %c0_i32_0 : i32, i32
  }
  func.func @transform_9(%arg0: i32) -> (i32, i32) {
    %c0_i32 = arith.constant 0 : i32
    %c0_i32_0 = arith.constant 0 : i32
    return %arg0, %c0_i32 : i32, i32
  }
}

</mosaic_0001>

<bundles_post_ra>
// kernel: att_unet_forward.1
= control target key start
LH: loop header
LB: loop body
LE: loop exit
PB: predicated region body
PF: predicated region fallthrough
CT: control target
= control target key end

     0   :  { %vm57_vm0 = vcmask 64512   ;;  %vm253_vm1 = vcmask 785408   ;;  %vm929_vm2 = vcmask 261120   ;;  %s5031_s14 = smov 64   ;;  %vm1019_vm3 = vcmask 523264   ;;  %s5032_s15 = smov 32   ;;  %s6630_s1 = inlined_call_operand.vmem [shape: f32[8,96], index: 1, kind: input, shape index: {}]   ;;  %s6631_s0 = inlined_call_operand.vmem [shape: f32[128,8], index: 0, kind: input, shape index: {}]   ;;  %s6632_s2 = inlined_call_operand.vmem [shape: f32[1,96], index: 2, kind: input, shape index: {}]   ;;  %s6633_s5 = inlined_call_operand.vmem [shape: bf16[96,384], index: 5, kind: input, shape index: {}]   ;;  %s6634_s3 = inlined_call_operand.vmem [shape: f32[1,96], index: 3, kind: input, shape index: {}]   ;;  %s6635_s4 = inlined_call_operand.vmem [shape: f32[1,96], index: 4, kind: input, shape index: {}]   ;;  %s6636_s6 = inlined_call_operand.vmem [shape: f32[1,384], index: 6, kind: input, shape index: {}]   ;;  %s6637_s7 = inlined_call_operand.vmem [shape: bf16[4,32,128], index: 7, kind: input, shape index: {}]   ;;  %s6638_s8 = inlined_call_operand.vmem [shape: f32[1,128], index: 8, kind: input, shape index: {}]   ;;  %s6639_s9 = inlined_call_operand.vmem [shape: f32[128,128], index: 9, kind: output, shape index: {}]  }
   0x1   :  { %v49_v0 = vld [vmem:[%s6630_s1] sm:$0xff]  ;;  %v34_v2 = vld [vmem:[%s6631_s0 + $0x8] sm:$0xff]  ;;  %v35_v3 = vld [vmem:[%s6631_s0 + $0x10] sm:$0xff] }
   0x2   :  { %v33_v1 = vld [vmem:[%s6631_s0] sm:$0xff]  ;;  %4211 = vmatprep.subr.mxu0 %v49_v0  ;;  %v36_v4 = vld [vmem:[%s6631_s0 + $0x18] sm:$0xff]  ;;  %v38_v6 = vld [vmem:[%s6631_s0 + $0x28] sm:$0xff] }
   0x3   :  { %4213 = vmatprep.mubr.msk.f32.mxu0 %vm57_vm0, %v33_v1  ;;  %4212 = vmatpush3.msra.mxu0 %v49_v0  ;;  %v37_v5 = vld [vmem:[%s6631_s0 + $0x20] sm:$0xff]  ;;  %v39_v7 = vld [vmem:[%s6631_s0 + $0x30] sm:$0xff]  ;;  %v40_v8 = vld [vmem:[%s6631_s0 + $0x38] sm:$0xff] }
   0x4   :  { %4214 = vmatmul.mubr.msk.f32.vlgmr.msra.gmra.mrb[0].mxu0 %vm57_vm0, %v34_v2  ;;  %v41_v9 = vld [vmem:[%s6631_s0 + $0x40] sm:$0xff]  ;;  %v42_v10 = vld [vmem:[%s6631_s0 + $0x48] sm:$0xff]  ;;  %v43_v11 = vld [vmem:[%s6631_s0 + $0x50] sm:$0xff] }
   0x5   :  { %4216 = vmatprep.mubr.msk.f32.mxu0 %vm57_vm0, %v35_v3  ;;  %v44_v12 = vld [vmem:[%s6631_s0 + $0x58] sm:$0xff]  ;;  %v45_v13 = vld [vmem:[%s6631_s0 + $0x60] sm:$0xff]  ;;  %v46_v14 = vld [vmem:[%s6631_s0 + $0x68] sm:$0xff] }
   0x6   :  { %v47_v15 = vld [vmem:[%s6631_s0 + $0x70] sm:$0xff]  ;;  %v48_v16 = vld [vmem:[%s6631_s0 + $0x78] sm:$0xff]  ;;  %v3842_v17 = vld [vmem:[%s6632_s2] ss:$0 sm:$0xff] }
   0x8   :  { %4217 = vmatmul.mubr.msk.f32.gmra.mrb[2].mxu0 %vm57_vm0, %v36_v4 }
   0x9   :  { %4219 = vmatprep.mubr.msk.f32.mxu0 %vm57_vm0, %v37_v5 }
   0xc   :  { %4220 = vmatmul.mubr.msk.f32.gmra.mrb[4].mxu0 %vm57_vm0, %v38_v6 }
   0xd   :  { %4222 = vmatprep.mubr.msk.f32.mxu0 %vm57_vm0, %v39_v7 }
  0x10   :  { %4223 = vmatmul.mubr.msk.f32.gmra.mrb[6].mxu0 %vm57_vm0, %v40_v8 }
  0x11   :  { %4225 = vmatprep.mubr.msk.f32.mxu0 %vm57_vm0, %v41_v9 }
  0x14   :  { %4226 = vmatmul.mubr.msk.f32.gmra.mrb[8].mxu0 %vm57_vm0, %v42_v10 }
  0x15   :  { %4228 = vmatprep.mubr.msk.f32.mxu0 %vm57_vm0, %v43_v11 }
  0x18   :  { %4229 = vmatmul.mubr.msk.f32.gmra.mrb[10].mxu0 %vm57_vm0, %v44_v12 }
  0x19   :  { %4231 = vmatprep.mubr.msk.f32.mxu0 %vm57_vm0, %v45_v13 }
  0x1c   :  { %4232 = vmatmul.mubr.msk.f32.gmra.mrb[12].mxu0 %vm57_vm0, %v46_v14 }
  0x1d   :  { %4234 = vmatprep.mubr.msk.f32.mxu0 %vm57_vm0, %v47_v15 }
  0x20   :  { %4235 = vmatmul.mubr.msk.f32.gmra.mrb[14].mxu0 %vm57_vm0, %v48_v16 }
  0xd7   :  { %v4215_v18 = vpop.f32.mrb[0].mxu0 }
  0xd8   :  { %v172_v19 = vpop.f32.mrb[1].mxu0  ;;  %v5155_v21 = vadd.f32 %v4215_v18, %v3842_v17 }
  0xd9   :  { %v5153_v20 = vadd.f32 %v3842_v17, %v172_v19 }
  0xda   :  { %v257_v29 = vsel %vm253_vm1, %v5155_v21, 0.0 }
  0xdb   :  { %v4218_v22 = vpop.f32.mrb[2].mxu0  ;;  %v254_v23 = vsel %vm253_vm1, %v5153_v20, 0.0 }
  0xdc   :  { %v182_v24 = vpop.f32.mrb[3].mxu0  ;;  %255 = vadd.xlane.f32.xlu0 %v254_v23  ;;  %v5159_v25 = vadd.f32 %v4218_v22, %v3842_v17 }
  0xdd   :  { %v5161_v26 = vadd.f32 %v3842_v17, %v182_v24 }
  0xde   :  { %v263_v33 = vsel %vm253_vm1, %v5159_v25, 0.0 }
  0xdf   :  { %v4221_v27 = vpop.f32.mrb[4].mxu0  ;;  %v260_v28 = vsel %vm253_vm1, %v5161_v26, 0.0 }
  0xe0   :  { %v192_v30 = vpop.f32.mrb[5].mxu0  ;;  %261 = vadd.xlane.f32.xlu1 %v260_v28  ;;  %258 = vadd.xlane.f32.xlu0 %v257_v29  ;;  %v5167_v31 = vadd.f32 %v4221_v27, %v3842_v17 }
  0xe1   :  { %v5169_v32 = vadd.f32 %v3842_v17, %v192_v30 }
  0xe2   :  { %v269_v39 = vsel %vm253_vm1, %v5167_v31, 0.0 }
  0xe3   :  { %v4224_v34 = vpop.f32.mrb[6].mxu0  ;;  %v266_v35 = vsel %vm253_vm1, %v5169_v32, 0.0 }
  0xe4   :  { %v202_v36 = vpop.f32.mrb[7].mxu0  ;;  %264 = vadd.xlane.f32.xlu1 %v263_v33  ;;  %267 = vadd.xlane.f32.xlu0 %v266_v35  ;;  %v5175_v37 = vadd.f32 %v4224_v34, %v3842_v17 }
  0xe5   :  { %v5177_v38 = vadd.f32 %v3842_v17, %v202_v36 }
  0xe6   :  { %v275_v45 = vsel %vm253_vm1, %v5175_v37, 0.0 }
  0xe7   :  { %v4227_v40 = vpop.f32.mrb[8].mxu0  ;;  %v272_v41 = vsel %vm253_vm1, %v5177_v38, 0.0 }
  0xe8   :  { %v212_v42 = vpop.f32.mrb[9].mxu0  ;;  %270 = vadd.xlane.f32.xlu1 %v269_v39  ;;  %273 = vadd.xlane.f32.xlu0 %v272_v41  ;;  %v5183_v43 = vadd.f32 %v4227_v40, %v3842_v17 }
  0xe9   :  { %v5185_v44 = vadd.f32 %v3842_v17, %v212_v42 }
  0xea   :  { %v281_v51 = vsel %vm253_vm1, %v5183_v43, 0.0 }
  0xeb   :  { %v4230_v46 = vpop.f32.mrb[10].mxu0  ;;  %v278_v47 = vsel %vm253_vm1, %v5185_v44, 0.0 }
  0xec   :  { %v222_v48 = vpop.f32.mrb[11].mxu0  ;;  %276 = vadd.xlane.f32.xlu1 %v275_v45  ;;  %279 = vadd.xlane.f32.xlu0 %v278_v47  ;;  %v5191_v49 = vadd.f32 %v4230_v46, %v3842_v17 }
  0xed   :  { %v5193_v50 = vadd.f32 %v3842_v17, %v222_v48 }
  0xee   :  { %v287_v57 = vsel %vm253_vm1, %v5191_v49, 0.0 }
  0xef   :  { %v4233_v52 = vpop.f32.mrb[12].mxu0  ;;  %v284_v53 = vsel %vm253_vm1, %v5193_v50, 0.0 }
  0xf0   :  { %v232_v54 = vpop.f32.mrb[13].mxu0  ;;  %282 = vadd.xlane.f32.xlu1 %v281_v51  ;;  %285 = vadd.xlane.f32.xlu0 %v284_v53  ;;  %v5199_v55 = vadd.f32 %v4233_v52, %v3842_v17 }
  0xf1   :  { %v5201_v56 = vadd.f32 %v3842_v17, %v232_v54 }
  0xf2   :  { %v293_v63 = vsel %vm253_vm1, %v5199_v55, 0.0 }
  0xf3   :  { %v4236_v58 = vpop.f32.mrb[14].mxu0  ;;  %v290_v59 = vsel %vm253_vm1, %v5201_v56, 0.0 }
  0xf4   :  { %v242_v60 = vpop.f32.mrb[15].mxu0  ;;  %288 = vadd.xlane.f32.xlu1 %v287_v57  ;;  %291 = vadd.xlane.f32.xlu0 %v290_v59  ;;  %v5207_v61 = vadd.f32 %v4236_v58, %v3842_v17  ;;  %v4709_v58 = vld [vmem:[%s6633_s5 + $0x4] ss:$12 sps:$4 sm:$0xff]  }
  0xf5   :  { %v5209_v62 = vadd.f32 %v3842_v17, %v242_v60  ;;  %676 = vmatprep.subr.bf16.mxu1 %v4709_v58 }
  0xf6   :  { %v299_v1 = vsel %vm253_vm1, %v5207_v61, 0.0 }
  0xf7   :  { %v296_v0 = vsel %vm253_vm1, %v5209_v62, 0.0 }
  0xf8   :  { %294 = vadd.xlane.f32.xlu1 %v293_v63  ;;  %297 = vadd.xlane.f32.xlu0 %v296_v0 }
  0xfc   :  { %300 = vadd.xlane.f32.xlu1 %v299_v1  ;;  %v4711_v1 = vld [vmem:[%s6633_s5] ss:$12 sps:$4 sm:$0xff]  }
  0xfd   :  { %677 = vmatpush1.bf16.msra.mxu1 %v4711_v1 }
 0x169   :  { %v256_v2 = vpop.xlane.xlu0 %255 }
 0x16a   :  { %v303_v3 = vmul.f32 0.010416667, %v256_v2 }
 0x16c   :  { %v5218_v4 = vsub.f32 %v5153_v20, %v303_v3 }
 0x16d   :  { %v262_v5 = vpop.xlane.xlu1 %261  ;;  %v259_v6 = vpop.xlane.xlu0 %258 }
 0x16e   :  { %v305_v7 = vmul.f32 0.010416667, %v262_v5  ;;  %v304_v8 = vmul.f32 0.010416667, %v259_v6  ;;  %v335_v9 = vmul.f32 %v5218_v4, %v5218_v4 }
 0x170   :  { %v5223_v10 = vsub.f32 %v5161_v26, %v305_v7  ;;  %v5226_v11 = vsub.f32 %v5155_v21, %v304_v8  ;;  %v351_v12 = vsel %vm253_vm1, %v335_v9, 0.0  ;;  %v4712_v9 = vld [vmem:[%s6633_s5 + $0x1c] ss:$12 sps:$4 sm:$0xff]  }
 0x171   :  { %v265_v13 = vpop.xlane.xlu1 %264  ;;  %352 = vadd.xlane.f32.xlu0 %v351_v12  ;;  %v268_v14 = vpop.xlane.xlu0 %267  ;;  %678 = vmatprep.subr.bf16.mxu1 %v4712_v9 }
 0x172   :  { %v306_v15 = vmul.f32 0.010416667, %v265_v13  ;;  %v307_v16 = vmul.f32 0.010416667, %v268_v14  ;;  %v337_v17 = vmul.f32 %v5223_v10, %v5223_v10  ;;  %v336_v18 = vmul.f32 %v5226_v11, %v5226_v11 }
 0x174   :  { %v5234_v19 = vsub.f32 %v5159_v25, %v306_v15  ;;  %v5237_v20 = vsub.f32 %v5169_v32, %v307_v16  ;;  %v357_v21 = vsel %vm253_vm1, %v337_v17, 0.0  ;;  %v354_v22 = vsel %vm253_vm1, %v336_v18, 0.0  ;;  %v4715_v15 = vld [vmem:[%s6633_s5 + $0x18] ss:$12 sps:$4 sm:$0xff]  }
 0x175   :  { %v271_v23 = vpop.xlane.xlu1 %270  ;;  %358 = vadd.xlane.f32.xlu0 %v357_v21  ;;  %355 = vadd.xlane.f32.xlu1 %v354_v22  ;;  %v274_v24 = vpop.xlane.xlu0 %273 }
 0x176   :  { %v308_v26 = vmul.f32 0.010416667, %v271_v23  ;;  %v309_v27 = vmul.f32 0.010416667, %v274_v24  ;;  %v338_v28 = vmul.f32 %v5234_v19, %v5234_v19  ;;  %v339_v25 = vmul.f32 %v5237_v20, %v5237_v20  ;;  %679 = vmatpush1.bf16.msra.mxu1 %v4715_v15  ;;  %v4716_v23 = vld [vmem:[%s6633_s5 + $0x34] ss:$12 sps:$4 sm:$0xff]  }
 0x177   :  { %680 = vmatprep.subr.bf16.mxu1 %v4716_v23 }
 0x178   :  { %v5246_v29 = vsub.f32 %v5167_v31, %v308_v26  ;;  %v5249_v30 = vsub.f32 %v5177_v38, %v309_v27  ;;  %v360_v32 = vsel %vm253_vm1, %v338_v28, 0.0  ;;  %v363_v33 = vsel %vm253_vm1, %v339_v25, 0.0  ;;  %v4719_v27 = vld [vmem:[%s6633_s5 + $0x30] ss:$12 sps:$4 sm:$0xff]  }
 0x179   :  { %v277_v34 = vpop.xlane.xlu1 %276  ;;  %361 = vadd.xlane.f32.xlu1 %v360_v32  ;;  %364 = vadd.xlane.f32.xlu0 %v363_v33  ;;  %v280_v35 = vpop.xlane.xlu0 %279  ;;  %v4720_v33 = vld [vmem:[%s6633_s5 + $0x4c] ss:$12 sps:$4 sm:$0xff]  }
 0x17a   :  { %v310_v36 = vmul.f32 0.010416667, %v277_v34  ;;  %v311_v39 = vmul.f32 0.010416667, %v280_v35  ;;  %v340_v40 = vmul.f32 %v5246_v29, %v5246_v29  ;;  %v341_v31 = vmul.f32 %v5249_v30, %v5249_v30  ;;  %681 = vmatpush1.bf16.msra.mxu1 %v4719_v27  ;;  %v4722_v34 = vld [vmem:[%s6633_s5 + $0x38] ss:$12 sps:$4 sm:$0xff]  }
 0x17b   :  { %v4723_v35 = vld [vmem:[%s6633_s5 + $0x48] ss:$12 sps:$4 sm:$0xff]   ;;  %682 = vmatprep.subr.bf16.mxu1 %v4720_v33 }
 0x17c   :  { %v5258_v41 = vsub.f32 %v5175_v37, %v310_v36  ;;  %v5261_v38 = vsub.f32 %v5185_v44, %v311_v39  ;;  %v366_v42 = vsel %vm253_vm1, %v340_v40, 0.0  ;;  %v369_v45 = vsel %vm253_vm1, %v341_v31, 0.0  ;;  %v4724_v39 = vld [vmem:[%s6633_s5 + $0x64] ss:$12 sps:$4 sm:$0xff]   ;;  %v4727_v31 = vld [vmem:[%s6633_s5 + $0x60] ss:$12 sps:$4 sm:$0xff]  }
 0x17d   :  { %v283_v46 = vpop.xlane.xlu1 %282  ;;  %367 = vadd.xlane.f32.xlu1 %v366_v42  ;;  %370 = vadd.xlane.f32.xlu0 %v369_v45  ;;  %v286_v47 = vpop.xlane.xlu0 %285  ;;  %v4726_v40 = vld [vmem:[%s6633_s5 + $0x50] ss:$12 sps:$4 sm:$0xff]   ;;  %v4730_v45 = vld [vmem:[%s6633_s5 + $0x68] ss:$12 sps:$4 sm:$0xff]  }
 0x17e   :  { %v312_v48 = vmul.f32 0.010416667, %v283_v46  ;;  %v313_v51 = vmul.f32 0.010416667, %v286_v47  ;;  %v342_v52 = vmul.f32 %v5258_v41, %v5258_v41  ;;  %v343_v37 = vmul.f32 %v5261_v38, %v5261_v38  ;;  %683 = vmatpush1.bf16.msra.mxu1 %v4723_v35  ;;  %v4728_v42 = vld [vmem:[%s6633_s5 + $0x7c] ss:$12 sps:$4 sm:$0xff]  }
 0x17f   :  { %684 = vmatprep.subr.bf16.mxu1 %v4724_v39  ;;  %v4731_v46 = vld [vmem:[%s6633_s5 + $0x78] ss:$12 sps:$4 sm:$0xff]   ;;  %v4732_v47 = vld [vmem:[%s6633_s5 + $0x80] ss:$12 sps:$4 sm:$0xff]  }
 0x180   :  { %v5270_v53 = vsub.f32 %v5183_v43, %v312_v48  ;;  %v5273_v44 = vsub.f32 %v5193_v50, %v313_v51  ;;  %v372_v54 = vsel %vm253_vm1, %v342_v52, 0.0  ;;  %v375_v57 = vsel %vm253_vm1, %v343_v37, 0.0 }
 0x181   :  { %v289_v59 = vpop.xlane.xlu1 %288  ;;  %373 = vadd.xlane.f32.xlu1 %v372_v54  ;;  %376 = vadd.xlane.f32.xlu0 %v375_v57  ;;  %v292_v60 = vpop.xlane.xlu0 %291  ;;  %v5029_v48 = vmov 0  }
 0x182   :  { %v314_v63 = vmul.f32 0.010416667, %v289_v59  ;;  %v315_v0 = vmul.f32 0.010416667, %v292_v60  ;;  %v344_v43 = vmul.f32 %v5270_v53, %v5270_v53  ;;  %v345_v50 = vmul.f32 %v5273_v44, %v5273_v44  ;;  %685 = vmatpush1.bf16.msra.mxu1 %v4727_v31  ;;  %708 = vmatprep.mubr.bf16.mxu1 %v5029_v48 }
 0x183   :  { %686 = vmatprep.subr.bf16.mxu1 %v4728_v42 }
 0x184   :  { %v5288_v2 = vsub.f32 %v5191_v49, %v314_v63  ;;  %v5291_v3 = vsub.f32 %v5201_v56, %v315_v0  ;;  %v378_v5 = vsel %vm253_vm1, %v344_v43, 0.0  ;;  %v381_v6 = vsel %vm253_vm1, %v345_v50, 0.0  ;;  %v4714_v49 = vld [vmem:[%s6633_s5 + $0x8] ss:$12 sps:$4 sm:$0xff]  }
 0x185   :  { %v295_v7 = vpop.xlane.xlu1 %294  ;;  %379 = vadd.xlane.f32.xlu1 %v378_v5  ;;  %382 = vadd.xlane.f32.xlu0 %v381_v6  ;;  %v298_v8 = vpop.xlane.xlu0 %297 }
 0x186   :  { %v316_v12 = vmul.f32 0.010416667, %v295_v7  ;;  %v317_v56 = vmul.f32 0.010416667, %v298_v8  ;;  %v346_v13 = vmul.f32 %v5288_v2, %v5288_v2  ;;  %v347_v14 = vmul.f32 %v5291_v3, %v5291_v3  ;;  %4237 = vmatprep.subr.bf16.mxu0 %v4714_v49  ;;  %687 = vmatpush1.bf16.msra.mxu1 %v4731_v46 }
 0x187   :  { %4238 = vmatpush3.bf16.msra.mxu0 %v4714_v49 }
 0x188   :  { %v5309_v16 = vsub.f32 %v5199_v55, %v316_v12  ;;  %v5312_v17 = vsub.f32 %v5209_v62, %v317_v56  ;;  %v384_v18 = vsel %vm253_vm1, %v346_v13, 0.0  ;;  %v387_v21 = vsel %vm253_vm1, %v347_v14, 0.0  ;;  %v4718_v55 = vld [vmem:[%s6633_s5 + $0x20] ss:$12 sps:$4 sm:$0xff]  }
 0x189   :  { %v301_v22 = vpop.xlane.xlu1 %300  ;;  %385 = vadd.xlane.f32.xlu1 %v384_v18  ;;  %388 = vadd.xlane.f32.xlu0 %v387_v21  ;;  %v5372_v21 = vld [vmem:[%s6634_s3] ss:$0 sm:$0xff] }
 0x18a   :  { %v318_v24 = vmul.f32 0.010416667, %v301_v22  ;;  %v348_v62 = vmul.f32 %v5309_v16, %v5309_v16  ;;  %v349_v26 = vmul.f32 %v5312_v17, %v5312_v17  ;;  %4239 = vmatprep.subr.bf16.mxu0 %v4718_v55 }
 0x18b   :  { %4240 = vmatpush3.bf16.msra.mxu0 %v4718_v55 }
 0x18c   :  { %v5330_v28 = vsub.f32 %v5207_v61, %v318_v24  ;;  %v390_v25 = vsel %vm253_vm1, %v348_v62, 0.0  ;;  %v393_v32 = vsel %vm253_vm1, %v349_v26, 0.0  ;;  %4241 = vmatprep.subr.bf16.mxu0 %v4722_v34 }
 0x18d   :  { %391 = vadd.xlane.f32.xlu1 %v390_v25  ;;  %394 = vadd.xlane.f32.xlu0 %v393_v32 }
 0x18e   :  { %v350_v61 = vmul.f32 %v5330_v28, %v5330_v28 }
 0x18f   :  { %4242 = vmatpush3.bf16.msra.mxu0 %v4722_v34 }
 0x190   :  { %v396_v36 = vsel %vm253_vm1, %v350_v61, 0.0  ;;  %4243 = vmatprep.subr.bf16.mxu0 %v4726_v40 }
 0x191   :  { %397 = vadd.xlane.f32.xlu1 %v396_v36 }
 0x193   :  { %4244 = vmatpush3.bf16.msra.mxu0 %v4726_v40 }
 0x194   :  { %4245 = vmatprep.subr.bf16.mxu0 %v4730_v45 }
 0x197   :  { %4246 = vmatpush3.bf16.msra.mxu0 %v4730_v45 }
 0x198   :  { %4247 = vmatprep.subr.bf16.mxu0 %v4732_v47 }
 0x19b   :  { %4248 = vmatpush3.bf16.msra.mxu0 %v4732_v47 }
 0x1fe   :  { %v353_v51 = vpop.xlane.xlu0 %352 }
 0x1ff   :  { %v399_v52 = vmul.f32 0.010416667, %v353_v51 }
 0x201   :  { %v415_v37 = vadd.f32 1e-05, %v399_v52 }
 0x202   :  { %v356_v54 = vpop.xlane.xlu1 %355  ;;  %v359_v57 = vpop.xlane.xlu0 %358 }
 0x203   :  { %4741 = vrsqrt.f32 %v415_v37  ;;  %v400_v58 = vmul.f32 0.010416667, %v356_v54  ;;  %v401_v59 = vmul.f32 0.010416667, %v359_v57 }
 0x205   :  { %v416_v60 = vadd.f32 1e-05, %v400_v58  ;;  %v417_v63 = vadd.f32 1e-05, %v401_v59 }
 0x206   :  { %v362_v0 = vpop.xlane.xlu1 %361  ;;  %v365_v43 = vpop.xlane.xlu0 %364 }
 0x207   :  { %4743 = vrsqrt.f32 %v416_v60  ;;  %v402_v50 = vmul.f32 0.010416667, %v362_v0  ;;  %v403_v1 = vmul.f32 0.010416667, %v365_v43 }
 0x208   :  { %4745 = vrsqrt.f32 %v417_v63 }
 0x209   :  { %v418_v5 = vadd.f32 1e-05, %v402_v50  ;;  %v419_v6 = vadd.f32 1e-05, %v403_v1 }
 0x20a   :  { %v368_v7 = vpop.xlane.xlu1 %367  ;;  %v371_v8 = vpop.xlane.xlu0 %370 }
 0x20b   :  { %4747 = vrsqrt.f32 %v418_v5  ;;  %v404_v9 = vmul.f32 0.010416667, %v368_v7  ;;  %v405_v49 = vmul.f32 0.010416667, %v371_v8 }
 0x20c   :  { %4749 = vrsqrt.f32 %v419_v6 }
 0x20d   :  { %v4742_v12 = vpop.eup %4741  ;;  %v420_v56 = vadd.f32 1e-05, %v404_v9  ;;  %v421_v13 = vadd.f32 1e-05, %v405_v49 }
 0x20e   :  { %v374_v14 = vpop.xlane.xlu1 %373  ;;  %v377_v15 = vpop.xlane.xlu0 %376  ;;  %v447_v18 = vmul.f32 %v4742_v12, %v5218_v4  ;;  %v5379_v4 = vld [vmem:[%s6635_s4] ss:$0 sm:$0xff] }
 0x20f   :  { %4751 = vrsqrt.f32 %v420_v56  ;;  %v406_v22 = vmul.f32 0.010416667, %v374_v14  ;;  %v407_v23 = vmul.f32 0.010416667, %v377_v15 }
 0x210   :  { %4753 = vrsqrt.f32 %v421_v13  ;;  %v469_v33 = vmul.f32 %v5372_v21, %v447_v18 }
 0x211   :  { %v4744_v55 = vpop.eup %4743  ;;  %v422_v24 = vadd.f32 1e-05, %v406_v22  ;;  %v423_v62 = vadd.f32 1e-05, %v407_v23 }
 0x212   :  { %v4746_v26 = vpop.eup %4745  ;;  %v380_v27 = vpop.xlane.xlu1 %379  ;;  %v448_v32 = vmul.f32 %v4744_v55, %v5226_v11  ;;  %v491_v51 = vadd.f32 %v5379_v4, %v469_v33 }
 0x213   :  { %v383_v25 = vpop.xlane.xlu0 %382  ;;  %v449_v34 = vmul.f32 %v4746_v26, %v5223_v10  ;;  %4755 = vrsqrt.f32 %v422_v24  ;;  %v408_v61 = vmul.f32 0.010416667, %v380_v27 }
 0x214   :  { %v409_v35 = vmul.f32 0.010416667, %v383_v25  ;;  %4757 = vrsqrt.f32 %v423_v62  ;;  %v470_v36 = vmul.f32 %v5372_v21, %v448_v32 }
 0x215   :  { %v4748_v39 = vpop.eup %4747  ;;  %v471_v40 = vmul.f32 %v5372_v21, %v449_v34  ;;  %v424_v31 = vadd.f32 1e-05, %v408_v61 }
 0x216   :  { %v425_v11 = vadd.f32 1e-05, %v409_v35  ;;  %v4750_v42 = vpop.eup %4749  ;;  %v450_v45 = vmul.f32 %v4748_v39, %v5234_v19  ;;  %v386_v46 = vpop.xlane.xlu1 %385  ;;  %v492_v10 = vadd.f32 %v5379_v4, %v470_v36 }
 0x217   :  { %v389_v47 = vpop.xlane.xlu0 %388  ;;  %4759 = vrsqrt.f32 %v424_v31  ;;  %v410_v52 = vmul.f32 0.010416667, %v386_v46  ;;  %v451_v58 = vmul.f32 %v4750_v42, %v5237_v20  ;;  %v493_v60 = vadd.f32 %v5379_v4, %v471_v40 }
 0x218   :  { %v411_v37 = vmul.f32 0.010416667, %v389_v47  ;;  %v472_v54 = vmul.f32 %v5372_v21, %v450_v45  ;;  %4761 = vrsqrt.f32 %v425_v11  ;;  %v507_v57 = vpack.c.bf16 %v492_v10, %v491_v51 }
 0x219   :  { %v4752_v59 = vpop.eup %4751  ;;  %v426_v63 = vadd.f32 1e-05, %v410_v52  ;;  %v473_v6 = vmul.f32 %v5372_v21, %v451_v58 }
 0x21a   :  { %v427_v19 = vadd.f32 1e-05, %v411_v37  ;;  %v4754_v0 = vpop.eup %4753  ;;  %v494_v43 = vadd.f32 %v5379_v4, %v472_v54  ;;  %v392_v50 = vpop.xlane.xlu1 %391  ;;  %3879 = vmatmul.mubr.msk.bf16.vlgmr.msra.gmra.mrb[0].mxu1 %vm253_vm1, %v507_v57  ;;  %4249 = vmatprep.mubr.msk.bf16.mxu0 %vm253_vm1, %v507_v57  ;;  %v452_v5 = vmul.f32 %v4752_v59, %v5246_v29 }
 0x21b   :  { %v395_v1 = vpop.xlane.xlu0 %394  ;;  %4763 = vrsqrt.f32 %v426_v63  ;;  %v412_v20 = vmul.f32 0.010416667, %v392_v50  ;;  %718 = vmatprep.mubr.bf16.mxu1 %v5029_v48  ;;  %v453_v8 = vmul.f32 %v4754_v0, %v5249_v30  ;;  %v495_v18 = vadd.f32 %v5379_v4, %v473_v6  ;;  %v539_v50 = vld [vmem:[%s6636_s6] sm:$0x7]  ;;  %s5030_s6 = smov 96  }
 0x21c   :  { %v413_v7 = vmul.f32 0.010416667, %v395_v1  ;;  %4765 = vrsqrt.f32 %v427_v19  ;;  %v508_v9 = vpack.c.bf16 %v494_v43, %v493_v60  ;;  %v474_v49 = vmul.f32 %v5372_v21, %v452_v5 }
 0x21d   :  { %v4756_v12 = vpop.eup %4755  ;;  %v428_v56 = vadd.f32 1e-05, %v412_v20  ;;  %v475_v14 = vmul.f32 %v5372_v21, %v453_v8 }
 0x21e   :  { %v429_v13 = vadd.f32 1e-05, %v413_v7  ;;  %v4758_v15 = vpop.eup %4757  ;;  %v398_v29 = vpop.xlane.xlu1 %397  ;;  %4250 = vmatmul.mubr.msk.bf16.vlgmr.msra.gmra.mrb[16].mxu0 %vm253_vm1, %v508_v9  ;;  %v496_v22 = vadd.f32 %v5379_v4, %v474_v49  ;;  %v454_v23 = vmul.f32 %v4756_v12, %v5258_v41 }
 0x21f   :  { %4767 = vrsqrt.f32 %v428_v56  ;;  %v414_v30 = vmul.f32 0.010416667, %v398_v29  ;;  %v455_v55 = vmul.f32 %v4758_v15, %v5261_v38  ;;  %v497_v25 = vadd.f32 %v5379_v4, %v475_v14 }
 0x220   :  { %4769 = vrsqrt.f32 %v429_v13  ;;  %v509_v24 = vpack.c.bf16 %v496_v22, %v495_v18  ;;  %v476_v62 = vmul.f32 %v5372_v21, %v454_v23 }
 0x221   :  { %v4760_v26 = vpop.eup %4759  ;;  %v430_v27 = vadd.f32 1e-05, %v414_v30  ;;  %v477_v34 = vmul.f32 %v5372_v21, %v455_v55 }
 0x222   :  { %v4762_v32 = vpop.eup %4761  ;;  %3880 = vmatmul.mubr.msk.bf16.gmra.mrb[4].mxu1 %vm253_vm1, %v508_v9  ;;  %4253 = vmatprep.mubr.msk.bf16.mxu0 %vm253_vm1, %v509_v24  ;;  %v498_v33 = vadd.f32 %v5379_v4, %v476_v62  ;;  %v456_v41 = vmul.f32 %v4760_v26, %v5270_v53 }
 0x223   :  { %4771 = vrsqrt.f32 %v430_v27  ;;  %728 = vmatprep.mubr.bf16.mxu1 %v5029_v48  ;;  %v457_v38 = vmul.f32 %v4762_v32, %v5273_v44  ;;  %v499_v31 = vadd.f32 %v5379_v4, %v477_v34 }
 0x224   :  { %v510_v61 = vpack.c.bf16 %v498_v33, %v497_v25  ;;  %v478_v35 = vmul.f32 %v5372_v21, %v456_v41 }
 0x225   :  { %v4764_v36 = vpop.eup %4763  ;;  %v479_v39 = vmul.f32 %v5372_v21, %v457_v38 }
 0x226   :  { %v4766_v40 = vpop.eup %4765  ;;  %4254 = vmatmul.mubr.msk.bf16.gmra.mrb[20].mxu0 %vm253_vm1, %v510_v61  ;;  %v500_v53 = vadd.f32 %v5379_v4, %v478_v35  ;;  %v458_v11 = vmul.f32 %v4764_v36, %v5288_v2 }
 0x227   :  { %v459_v42 = vmul.f32 %v4766_v40, %v5291_v3  ;;  %v501_v47 = vadd.f32 %v5379_v4, %v479_v39 }
 0x228   :  { %v511_v45 = vpack.c.bf16 %v500_v53, %v499_v31  ;;  %v480_v44 = vmul.f32 %v5372_v21, %v458_v11 }
 0x229   :  { %v4768_v46 = vpop.eup %4767  ;;  %v481_v37 = vmul.f32 %v5372_v21, %v459_v42 }
 0x22a   :  { %v4770_v51 = vpop.eup %4769  ;;  %3881 = vmatmul.mubr.msk.bf16.gmra.mrb[8].mxu1 %vm253_vm1, %v509_v24  ;;  %4257 = vmatprep.mubr.msk.bf16.mxu0 %vm253_vm1, %v511_v45  ;;  %v502_v10 = vadd.f32 %v5379_v4, %v480_v44  ;;  %v460_v52 = vmul.f32 %v4768_v46, %v5309_v16 }
 0x22b   :  { %738 = vmatprep.mubr.bf16.mxu1 %v5029_v48  ;;  %v461_v2 = vmul.f32 %v4770_v51, %v5312_v17  ;;  %v503_v58 = vadd.f32 %v5379_v4, %v481_v37 }
 0x22c   :  { %v512_v3 = vpack.c.bf16 %v502_v10, %v501_v47  ;;  %v482_v54 = vmul.f32 %v5372_v21, %v460_v52 }
 0x22d   :  { %v4772_v57 = vpop.eup %4771  ;;  %v483_v16 = vmul.f32 %v5372_v21, %v461_v2 }
 0x22e   :  { %4258 = vmatmul.mubr.msk.bf16.gmra.mrb[24].mxu0 %vm253_vm1, %v512_v3  ;;  %v504_v59 = vadd.f32 %v5379_v4, %v482_v54  ;;  %v462_v60 = vmul.f32 %v4772_v57, %v5330_v28  ;;  %v541_v28 = vlaneseq }
 0x22f   :  { %v505_v17 = vadd.f32 %v5379_v4, %v483_v16 }
 0x230   :  { %v513_v63 = vpack.c.bf16 %v504_v59, %v503_v58  ;;  %v484_v19 = vmul.f32 %v5372_v21, %v462_v60  ;;  %v542_v21 = vshrl.u32 %v541_v28, 7 }
 0x232   :  { %3882 = vmatmul.mubr.msk.bf16.gmra.mrb[12].mxu1 %vm253_vm1, %v510_v61  ;;  %4261 = vmatprep.mubr.msk.bf16.mxu0 %vm253_vm1, %v513_v63  ;;  %v506_v0 = vadd.f32 %v5379_v4, %v484_v19  ;;  %v543_v4 = vsub.s32 0, %v542_v21  ;;  %v547_v1 = vsub.s32 1, %v542_v21  ;;  %v551_v6 = vsub.s32 2, %v542_v21 }
 0x233   :  { %748 = vmatprep.mubr.bf16.mxu1 %v5029_v48 }
 0x234   :  { %v514_v43 = vpack.c.bf16 %v506_v0, %v505_v17  ;;  %v5452_v5 = vrot.slane %v539_v50, %v543_v4  ;;  %v5454_v7 = vrot.slane %v539_v50, %v547_v1  ;;  %v5458_v56 = vrot.slane %v539_v50, %v551_v6 }
 0x236   :  { %4262 = vmatmul.mubr.msk.bf16.gmra.mrb[28].mxu0 %vm253_vm1, %v514_v43 }
 0x23a   :  { %3883 = vmatmul.mubr.msk.bf16.gmra.mrb[16].mxu1 %vm253_vm1, %v511_v45 }
 0x23b   :  { %758 = vmatprep.mubr.bf16.mxu1 %v5029_v48 }
 0x242   :  { %3884 = vmatmul.mubr.msk.bf16.gmra.mrb[20].mxu1 %vm253_vm1, %v512_v3 }
 0x243   :  { %768 = vmatprep.mubr.bf16.mxu1 %v5029_v48 }
 0x24a   :  { %3885 = vmatmul.mubr.msk.bf16.gmra.mrb[24].mxu1 %vm253_vm1, %v513_v63 }
 0x24b   :  { %778 = vmatprep.mubr.bf16.mxu1 %v5029_v48 }
 0x252   :  { %3886 = vmatmul.mubr.msk.bf16.gmra.mrb[28].mxu1 %vm253_vm1, %v514_v43 }
 0x2ed   :  { %v710_v20 = vpop.f32.mrb[0].mxu1 }
 0x2ee   :  { %v712_v8 = vpop.f32.mrb[1].mxu1  ;;  %v711_v48 = vadd.f32 %v710_v20, %v5452_v5 }
 0x2ef   :  { %v714_v9 = vpop.f32.mrb[2].mxu1  ;;  %v713_v13 = vadd.f32 %v712_v8, %v5454_v7 }
 0x2f0   :  { %v715_v49 = vadd.f32 %v714_v9, %v5452_v5  ;;  %v716_v12 = vpop.f32.mrb[3].mxu1 }
 0x2f1   :  { %v717_v14 = vadd.f32 %v716_v12, %v5454_v7  ;;  %v4251_v15 = vpop.f32.mrb[16].mxu0 }
 0x2f2   :  { %v5462_v29 = vpack.c.bf16 %v715_v49, %v711_v48  ;;  %v823_v18 = vpop.f32.mrb[17].mxu0  ;;  %v832_v30 = vadd.f32 %v4251_v15, %v5458_v56 }
 0x2f3   :  { %v5464_v22 = vpack.c.bf16 %v717_v14, %v713_v13  ;;  %v4252_v23 = vpop.f32.mrb[18].mxu0  ;;  %v824_v62 = vadd.f32 %v823_v18, %v5458_v56 }
 0x2f4   :  { %v835_v55 = vadd.f32 %v4252_v23, %v5458_v56  ;;  %921 = vrot.lane.b32.xlu0 %v5462_v29, %s5030_s6  ;;  %v826_v24 = vpop.f32.mrb[19].mxu0  ;;  %4273 = vmatprep.mubr.msk.bf16.mxu0 %vm929_vm2, %v5462_v29 }
 0x2f5   :  { %v827_v26 = vadd.f32 %v826_v24, %v5458_v56  ;;  %v720_v27 = vpop.f32.mrb[4].mxu1 }
 0x2f6   :  { %v5474_v25 = vpack.c.bf16 %v835_v55, %v832_v30  ;;  %v722_v32 = vpop.f32.mrb[5].mxu1  ;;  %v721_v34 = vadd.f32 %v720_v27, %v5452_v5 }
 0x2f7   :  { %v5476_v33 = vpack.c.bf16 %v827_v26, %v824_v62  ;;  %v724_v41 = vpop.f32.mrb[6].mxu1  ;;  %v723_v35 = vadd.f32 %v722_v32, %v5454_v7 }
 0x2f8   :  { %v725_v38 = vadd.f32 %v724_v41, %v5452_v5  ;;  %v726_v61 = vpop.f32.mrb[7].mxu1 }
 0x2f9   :  { %v727_v36 = vadd.f32 %v726_v61, %v5454_v7  ;;  %v4255_v39 = vpop.f32.mrb[20].mxu0 }
 0x2fa   :  { %v5482_v40 = vpack.c.bf16 %v725_v38, %v721_v34  ;;  %v839_v31 = vpop.f32.mrb[21].mxu0  ;;  %v848_v42 = vadd.f32 %v4255_v39, %v5458_v56 }
 0x2fb   :  { %v5484_v53 = vpack.c.bf16 %v727_v36, %v723_v35  ;;  %v4256_v11 = vpop.f32.mrb[22].mxu0  ;;  %v840_v46 = vadd.f32 %v839_v31, %v5458_v56 }
 0x2fc   :  { %v851_v45 = vadd.f32 %v4256_v11, %v5458_v56  ;;  %923 = vrot.lane.b32.xlu1 %v5482_v40, %s5030_s6  ;;  %v842_v44 = vpop.f32.mrb[23].mxu0 }
 0x2fd   :  { %v843_v47 = vadd.f32 %v842_v44, %v5458_v56  ;;  %v730_v51 = vpop.f32.mrb[8].mxu1 }
 0x2fe   :  { %v5492_v10 = vpack.c.bf16 %v851_v45, %v848_v42  ;;  %v732_v52 = vpop.f32.mrb[9].mxu1  ;;  %v731_v3 = vadd.f32 %v730_v51, %v5452_v5 }
 0x2ff   :  { %v5494_v37 = vpack.c.bf16 %v843_v47, %v840_v46  ;;  %v734_v2 = vpop.f32.mrb[10].mxu1  ;;  %v733_v58 = vadd.f32 %v732_v52, %v5454_v7 }
 0x300   :  { %v735_v54 = vadd.f32 %v734_v2, %v5452_v5  ;;  %v736_v57 = vpop.f32.mrb[11].mxu1 }
 0x301   :  { %v737_v59 = vadd.f32 %v736_v57, %v5454_v7  ;;  %v4259_v60 = vpop.f32.mrb[24].mxu0 }
 0x302   :  { %v5500_v16 = vpack.c.bf16 %v735_v54, %v731_v3  ;;  %v855_v63 = vpop.f32.mrb[25].mxu0  ;;  %v864_v0 = vadd.f32 %v4259_v60, %v5458_v56 }
 0x303   :  { %v5502_v19 = vpack.c.bf16 %v737_v59, %v733_v58  ;;  %v4260_v17 = vpop.f32.mrb[26].mxu0  ;;  %v856_v21 = vadd.f32 %v855_v63, %v5458_v56 }
 0x304   :  { %v867_v43 = vadd.f32 %v4260_v17, %v5458_v56  ;;  %925 = vrot.lane.b32.xlu1 %v5500_v16, %s5030_s6  ;;  %v858_v28 = vpop.f32.mrb[27].mxu0 }
 0x305   :  { %v859_v4 = vadd.f32 %v858_v28, %v5458_v56  ;;  %v740_v50 = vpop.f32.mrb[12].mxu1 }
 0x306   :  { %v5510_v1 = vpack.c.bf16 %v867_v43, %v864_v0  ;;  %v742_v6 = vpop.f32.mrb[13].mxu1  ;;  %v741_v9 = vadd.f32 %v740_v50, %v5452_v5 }
 0x307   :  { %v5512_v20 = vpack.c.bf16 %v859_v4, %v856_v21  ;;  %v744_v8 = vpop.f32.mrb[14].mxu1  ;;  %v743_v12 = vadd.f32 %v742_v6, %v5454_v7 }
 0x308   :  { %v745_v48 = vadd.f32 %v744_v8, %v5452_v5  ;;  %v746_v49 = vpop.f32.mrb[15].mxu1 }
 0x309   :  { %v747_v13 = vadd.f32 %v746_v49, %v5454_v7  ;;  %v4263_v14 = vpop.f32.mrb[28].mxu0 }
 0x30a   :  { %v5518_v15 = vpack.c.bf16 %v745_v48, %v741_v9  ;;  %v871_v18 = vpop.f32.mrb[29].mxu0  ;;  %v880_v55 = vadd.f32 %v4263_v14, %v5458_v56 }
 0x30b   :  { %v5520_v23 = vpack.c.bf16 %v747_v13, %v743_v12  ;;  %v4264_v30 = vpop.f32.mrb[30].mxu0  ;;  %v872_v26 = vadd.f32 %v871_v18, %v5458_v56 }
 0x30c   :  { %v883_v24 = vadd.f32 %v4264_v30, %v5458_v56  ;;  %927 = vrot.lane.b32.xlu0 %v5518_v15, %s5030_s6  ;;  %v874_v62 = vpop.f32.mrb[31].mxu0 }
 0x30d   :  { %v875_v27 = vadd.f32 %v874_v62, %v5458_v56  ;;  %v750_v32 = vpop.f32.mrb[16].mxu1 }
 0x30e   :  { %v5528_v41 = vpack.c.bf16 %v883_v24, %v880_v55  ;;  %v752_v34 = vpop.f32.mrb[17].mxu1  ;;  %v751_v35 = vadd.f32 %v750_v32, %v5452_v5 }
 0x30f   :  { %v5530_v38 = vpack.c.bf16 %v875_v27, %v872_v26  ;;  %v754_v61 = vpop.f32.mrb[18].mxu1  ;;  %v753_v31 = vadd.f32 %v752_v34, %v5454_v7 }
 0x310   :  { %v755_v36 = vadd.f32 %v754_v61, %v5452_v5  ;;  %v756_v39 = vpop.f32.mrb[19].mxu1 }
 0x311   :  { %v757_v11 = vadd.f32 %v756_v39, %v5454_v7 }
 0x312   :  { %v5536_v42 = vpack.c.bf16 %v755_v36, %v751_v35 }
 0x313   :  { %v5538_v45 = vpack.c.bf16 %v757_v11, %v753_v31 }
 0x314   :  { %1205 = vrot.lane.b32.xlu1 %v5536_v42, %s5030_s6  ;;  %4305 = vmatprep.mubr.msk.bf16.mxu1 %vm929_vm2, %v5536_v42 }
 0x315   :  { %v760_v56 = vpop.f32.mrb[20].mxu1 }
 0x316   :  { %v762_v44 = vpop.f32.mrb[21].mxu1  ;;  %v761_v47 = vadd.f32 %v760_v56, %v5452_v5 }
 0x317   :  { %v764_v46 = vpop.f32.mrb[22].mxu1  ;;  %v763_v2 = vadd.f32 %v762_v44, %v5454_v7 }
 0x318   :  { %v765_v51 = vadd.f32 %v764_v46, %v5452_v5  ;;  %v766_v52 = vpop.f32.mrb[23].mxu1 }
 0x319   :  { %v767_v3 = vadd.f32 %v766_v52, %v5454_v7 }
 0x31a   :  { %v5548_v54 = vpack.c.bf16 %v765_v51, %v761_v47 }
 0x31b   :  { %v5550_v57 = vpack.c.bf16 %v767_v3, %v763_v2 }
 0x31c   :  { %1207 = vrot.lane.b32.xlu1 %v5548_v54, %s5030_s6 }
 0x31d   :  { %v770_v58 = vpop.f32.mrb[24].mxu1 }
 0x31e   :  { %v772_v59 = vpop.f32.mrb[25].mxu1  ;;  %v771_v63 = vadd.f32 %v770_v58, %v5452_v5 }
 0x31f   :  { %v774_v60 = vpop.f32.mrb[26].mxu1  ;;  %v773_v43 = vadd.f32 %v772_v59, %v5454_v7 }
 0x320   :  { %v775_v17 = vadd.f32 %v774_v60, %v5452_v5  ;;  %v776_v0 = vpop.f32.mrb[27].mxu1 }
 0x321   :  { %v777_v28 = vadd.f32 %v776_v0, %v5454_v7 }
 0x322   :  { %v5558_v21 = vpack.c.bf16 %v775_v17, %v771_v63 }
 0x323   :  { %v5560_v4 = vpack.c.bf16 %v777_v28, %v773_v43 }
 0x324   :  { %1209 = vrot.lane.b32.xlu0 %v5558_v21, %s5030_s6 }
 0x325   :  { %v780_v50 = vpop.f32.mrb[28].mxu1 }
 0x326   :  { %v782_v6 = vpop.f32.mrb[29].mxu1  ;;  %v781_v9 = vadd.f32 %v780_v50, %v5452_v5 }
 0x327   :  { %v784_v8 = vpop.f32.mrb[30].mxu1  ;;  %v783_v12 = vadd.f32 %v782_v6, %v5454_v7 }
 0x328   :  { %v785_v48 = vadd.f32 %v784_v8, %v5452_v5  ;;  %1096 = vrot.lane.b32.xlu0 %v5462_v29, %s5031_s14  ;;  %v786_v49 = vpop.f32.mrb[31].mxu1 }
 0x329   :  { %v787_v13 = vadd.f32 %v786_v49, %v5454_v7 }
 0x32a   :  { %v5570_v14 = vpack.c.bf16 %v785_v48, %v781_v9 }
 0x32b   :  { %v5572_v18 = vpack.c.bf16 %v787_v13, %v783_v12 }
 0x32c   :  { %1100 = vrot.lane.b32.xlu0 %v5500_v16, %s5031_s14  ;;  %1211 = vrot.lane.b32.xlu1 %v5570_v14, %s5030_s6 }
 0x330   :  { %1098 = vrot.lane.b32.xlu1 %v5482_v40, %s5031_s14 }
 0x334   :  { %1102 = vrot.lane.b32.xlu1 %v5518_v15, %s5031_s14 }
 0x338   :  { %1378 = vrot.lane.b32.xlu1 %v5536_v42, %s5031_s14 }
 0x33c   :  { %1380 = vrot.lane.b32.xlu1 %v5548_v54, %s5031_s14 }
 0x366   :  { %v922_v5 = vpop.permute.xlu0 %921 }
 0x367   :  { %4673 = vmatprep.subr.msk.bf16.mxu0 %vm929_vm2, %v922_v5  ;;  %v943_v7 = vsel %vm929_vm2, %v922_v5, 0 }
 0x368   :  { %4266 = vmatpush3.bf16.xpose.msra.mxu0 %v943_v7 }
 0x36e   :  { %v924_v30 = vpop.permute.xlu1 %923 }
 0x36f   :  { %4674 = vmatprep.subr.msk.bf16.mxu0 %vm929_vm2, %v924_v30  ;;  %v946_v55 = vsel %vm929_vm2, %v924_v30, 0 }
 0x370   :  { %4268 = vmatpush3.bf16.xpose.msra.mxu0 %v946_v55 }
 0x376   :  { %v926_v24 = vpop.permute.xlu1 %925 }
 0x377   :  { %4675 = vmatprep.subr.msk.bf16.mxu0 %vm929_vm2, %v926_v24  ;;  %v949_v62 = vsel %vm929_vm2, %v926_v24, 0 }
 0x378   :  { %4270 = vmatpush3.bf16.xpose.msra.mxu0 %v949_v62 }
 0x37e   :  { %v928_v26 = vpop.permute.xlu0 %927 }
 0x37f   :  { %4676 = vmatprep.subr.msk.bf16.mxu0 %vm929_vm2, %v928_v26  ;;  %v952_v27 = vsel %vm929_vm2, %v928_v26, 0 }
 0x380   :  { %4272 = vmatpush3.bf16.xpose.msra.mxu0 %v952_v27 }
 0x386   :  { %v1206_v32 = vpop.permute.xlu1 %1205 }
 0x387   :  { %4274 = vmatmul.mubr.msk.bf16.vlgmr.msra.gmra.mrb[32].mxu0 %vm929_vm2, %v5482_v40  ;;  %4677 = vmatprep.subr.msk.bf16.mxu1 %vm929_vm2, %v1206_v32  ;;  %v1226_v34 = vsel %vm929_vm2, %v1206_v32, 0 }
 0x388   :  { %4277 = vmatprep.mubr.msk.bf16.mxu0 %vm929_vm2, %v5500_v16  ;;  %4298 = vmatpush3.bf16.xpose.msra.mxu1 %v1226_v34 }
 0x38e   :  { %v1208_v61 = vpop.permute.xlu1 %1207 }
 0x38f   :  { %4278 = vmatmul.mubr.msk.bf16.gmra.mrb[36].mxu0 %vm929_vm2, %v5518_v15  ;;  %4678 = vmatprep.subr.msk.bf16.mxu1 %vm929_vm2, %v1208_v61  ;;  %v1229_v35 = vsel %vm929_vm2, %v1208_v61, 0 }
 0x390   :  { %4300 = vmatpush3.bf16.xpose.msra.mxu1 %v1229_v35 }
 0x396   :  { %v1210_v36 = vpop.permute.xlu0 %1209 }
 0x397   :  { %4679 = vmatprep.subr.msk.bf16.mxu1 %vm929_vm2, %v1210_v36  ;;  %v1232_v39 = vsel %vm929_vm2, %v1210_v36, 0 }
 0x398   :  { %4302 = vmatpush3.bf16.xpose.msra.mxu1 %v1232_v39 }
 0x39a   :  { %v1097_v31 = vpop.permute.xlu0 %1096 }
 0x39b   :  { %4281 = vmatprep.subr.bf16.mxu0 %v1097_v31 }
 0x39c   :  { %4282 = vmatpush3.bf16.msra.mxu0 %v1097_v31 }
 0x39e   :  { %v1212_v11 = vpop.permute.xlu1 %1211  ;;  %v1101_v46 = vpop.permute.xlu0 %1100 }
 0x39f   :  { %4680 = vmatprep.subr.msk.bf16.mxu1 %vm929_vm2, %v1212_v11  ;;  %v1235_v56 = vsel %vm929_vm2, %v1212_v11, 0 }
 0x3a0   :  { %4304 = vmatpush3.bf16.xpose.msra.mxu1 %v1235_v56 }
 0x3a2   :  { %v1099_v44 = vpop.permute.xlu1 %1098 }
 0x3a3   :  { %4283 = vmatprep.subr.bf16.mxu0 %v1099_v44 }
 0x3a4   :  { %4284 = vmatpush3.bf16.msra.mxu0 %v1099_v44 }
 0x3a5   :  { %4285 = vmatprep.subr.bf16.mxu0 %v1101_v46 }
 0x3a6   :  { %v1103_v47 = vpop.permute.xlu1 %1102 }
 0x3a7   :  { %4306 = vmatmul.mubr.msk.bf16.vlgmr.msra.gmra.mrb[32].mxu1 %vm929_vm2, %v5548_v54 }
 0x3a8   :  { %4286 = vmatpush3.bf16.msra.mxu0 %v1101_v46  ;;  %4309 = vmatprep.mubr.msk.bf16.mxu1 %vm929_vm2, %v5558_v21 }
 0x3a9   :  { %4287 = vmatprep.subr.bf16.mxu0 %v1103_v47 }
 0x3aa   :  { %v5612_v51 = vpop.permute.xlu1 %1378 }
 0x3ac   :  { %4288 = vmatpush3.bf16.msra.mxu0 %v1103_v47 }
 0x3ad   :  { %4313 = vmatprep.subr.bf16.mxu0 %v5612_v51 }
 0x3af   :  { %4310 = vmatmul.mubr.msk.bf16.gmra.mrb[36].mxu1 %vm929_vm2, %v5570_v14 }
 0x45a   :  { %v5617_v52 = vpop.f32.mrb[32].mxu0 }
 0x45b   :  { %v5619_v2 = vpop.f32.mrb[33].mxu0  ;;  %v1026_v3 = vsel %vm1019_vm3, %v5617_v52, -inf }
 0x45c   :  { %1027 = vmax.xlane.f32.xlu0 %v1026_v3  ;;  %v5623_v58 = vpop.f32.mrb[34].mxu0  ;;  %v1020_v63 = vsel %vm1019_vm3, %v5619_v2, -inf }
 0x45d   :  { %v5625_v59 = vpop.f32.mrb[35].mxu0  ;;  %v1029_v43 = vsel %vm1019_vm3, %v5623_v58, -inf }
 0x45e   :  { %v1023_v60 = vsel %vm1019_vm3, %v5625_v59, -inf }
 0x45f   :  { %1024 = vmax.xlane.f32.xlu1 %v1023_v60  ;;  %v4734_v60 = vld [vmem:[%s6637_s7 + $0x8] sm:$0xff]  }
 0x460   :  { %1021 = vmax.xlane.f32.xlu0 %v1020_v63 }
 0x462   :  { %v5631_v17 = vpop.f32.mrb[36].mxu0 }
 0x463   :  { %v5633_v0 = vpop.f32.mrb[37].mxu0  ;;  %v1038_v8 = vsel %vm1019_vm3, %v5631_v17, -inf }
 0x464   :  { %1030 = vmax.xlane.f32.xlu0 %v1029_v43  ;;  %v5637_v28 = vpop.f32.mrb[38].mxu0  ;;  %v1032_v48 = vsel %vm1019_vm3, %v5633_v0, -inf }
 0x465   :  { %v5639_v50 = vpop.f32.mrb[39].mxu0  ;;  %v1041_v6 = vsel %vm1019_vm3, %v5637_v28, -inf }
 0x466   :  { %1042 = vmax.xlane.f32.xlu1 %v1041_v6  ;;  %v1035_v9 = vsel %vm1019_vm3, %v5639_v50, -inf }
 0x468   :  { %1039 = vmax.xlane.f32.xlu0 %v1038_v8 }
 0x46a   :  { %1036 = vmax.xlane.f32.xlu1 %v1035_v9 }
 0x46c   :  { %1033 = vmax.xlane.f32.xlu0 %v1032_v48 }
 0x47a   :  { %v5649_v49 = vpop.f32.mrb[32].mxu1 }
 0x47b   :  { %v5651_v12 = vpop.f32.mrb[33].mxu1  ;;  %v1308_v13 = vsel %vm1019_vm3, %v5649_v49, -inf }
 0x47c   :  { %1309 = vmax.xlane.f32.xlu0 %v1308_v13  ;;  %v5655_v5 = vpop.f32.mrb[34].mxu1  ;;  %v1302_v7 = vsel %vm1019_vm3, %v5651_v12, -inf }
 0x47d   :  { %1303 = vmax.xlane.f32.xlu1 %v1302_v7  ;;  %v5659_v30 = vpop.f32.mrb[35].mxu1  ;;  %v1311_v24 = vsel %vm1019_vm3, %v5655_v5, -inf }
 0x47e   :  { %v1305_v55 = vsel %vm1019_vm3, %v5659_v30, -inf }
 0x480   :  { %1306 = vmax.xlane.f32.xlu0 %v1305_v55 }
 0x481   :  { %1312 = vmax.xlane.f32.xlu1 %v1311_v24 }
 0x482   :  { %v5665_v62 = vpop.f32.mrb[36].mxu1 }
 0x483   :  { %v5667_v26 = vpop.f32.mrb[37].mxu1  ;;  %v1320_v35 = vsel %vm1019_vm3, %v5665_v62, -inf }
 0x484   :  { %v5669_v27 = vpop.f32.mrb[38].mxu1  ;;  %v1314_v34 = vsel %vm1019_vm3, %v5667_v26, -inf }
 0x485   :  { %v5671_v32 = vpop.f32.mrb[39].mxu1  ;;  %v1323_v36 = vsel %vm1019_vm3, %v5669_v27, -inf }
 0x486   :  { %v1317_v61 = vsel %vm1019_vm3, %v5671_v32, -inf }
 0x492   :  { %1384 = vrot.lane.b32.xlu1 %v5570_v14, %s5031_s14 }
 0x496   :  { %1382 = vrot.lane.b32.xlu0 %v5558_v21, %s5031_s14 }
 0x4b5   :  { %1315 = vmax.xlane.f32.xlu0 %v1314_v34 }
 0x4b6   :  { %1318 = vmax.xlane.f32.xlu1 %v1317_v61 }
 0x4b9   :  { %1321 = vmax.xlane.f32.xlu0 %v1320_v35 }
 0x4bd   :  { %1324 = vmax.xlane.f32.xlu0 %v1323_v36 }
 0x4c7   :  { %1646 = vrot.lane.b32.xlu1 %v5482_v40, %s5032_s15 }
 0x4cb   :  { %1648 = vrot.lane.b32.xlu1 %v5500_v16, %s5032_s15 }
 0x4cf   :  { %1650 = vrot.lane.b32.xlu1 %v5518_v15, %s5032_s15 }
 0x4d3   :  { %1644 = vrot.lane.b32.xlu0 %v5462_v29, %s5032_s15  ;;  %1928 = vrot.lane.b32.xlu1 %v5548_v54, %s5032_s15  ;;  %v5715_v29 = vpop.permute.xlu1 %1380 }
 0x4d7   :  { %1926 = vrot.lane.b32.xlu0 %v5536_v42, %s5032_s15  ;;  %1932 = vrot.lane.b32.xlu1 %v5570_v14, %s5032_s15 }
 0x4db   :  { %1930 = vrot.lane.b32.xlu0 %v5558_v21, %s5032_s15  ;;  %2380 = vrot.lane.b32.xlu1 %v5484_v53, %s5032_s15 }
 0x4df   :  { %2378 = vrot.lane.b32.xlu0 %v5464_v22, %s5032_s15  ;;  %2384 = vrot.lane.b32.xlu1 %v5520_v23, %s5032_s15 }
 0x4e3   :  { %2382 = vrot.lane.b32.xlu0 %v5502_v19, %s5032_s15  ;;  %2652 = vrot.lane.b32.xlu1 %v5538_v45, %s5032_s15 }
 0x4e7   :  { %2370 = vrot.lane.b32.xlu0 %v5464_v22, %s5031_s14  ;;  %2656 = vrot.lane.b32.xlu1 %v5560_v4, %s5032_s15 }
 0x4e9   :  { %v1028_v40 = vpop.xlane.xlu0 %1027 }
 0x4ea   :  { %v1046_v15 = vsub.f32 %v5617_v52, %v1028_v40 }
 0x4eb   :  { %2372 = vrot.lane.b32.xlu0 %v5484_v53, %s5031_s14  ;;  %2376 = vrot.lane.b32.xlu1 %v5520_v23, %s5031_s14 }
 0x4ec   :  { %v1025_v16 = vpop.xlane.xlu1 %1024  ;;  %v1056_v31 = vmul.f32 1.442695, %v1046_v15 }
 0x4ed   :  { %v1045_v42 = vsub.f32 %v5625_v59, %v1025_v16  ;;  %v1022_v54 = vpop.xlane.xlu0 %1021 }
 0x4ee   :  { %v1044_v21 = vsub.f32 %v5619_v2, %v1022_v54  ;;  %v4733_v2 = vld [vmem:[%s6637_s7] sm:$0xff]  }
 0x4ef   :  { %v1054_v14 = vmul.f32 1.442695, %v1045_v42  ;;  %2654 = vrot.lane.b32.xlu0 %v5550_v57, %s5032_s15  ;;  %2658 = vrot.lane.b32.xlu1 %v5572_v18, %s5032_s15 }
 0x4f0   :  { %v1052_v39 = vmul.f32 1.442695, %v1044_v21  ;;  %4329 = vmatprep.subr.bf16.mxu1 %v4733_v2 }
 0x4f1   :  { %4773 = vpow2.f32 %v1054_v14  ;;  %v1031_v11 = vpop.xlane.xlu0 %1030  ;;  %4330 = vmatpush3.bf16.msra.mxu1 %v4733_v2 }
 0x4f2   :  { %4775 = vpow2.f32 %v1052_v39  ;;  %v1047_v56 = vsub.f32 %v5623_v58, %v1031_v11  ;;  %4331 = vmatprep.subr.bf16.mxu1 %v4734_v60 }
 0x4f3   :  { %v1043_v44 = vpop.xlane.xlu1 %1042  ;;  %2374 = vrot.lane.b32.xlu0 %v5502_v19, %s5031_s14  ;;  %2646 = vrot.lane.b32.xlu1 %v5550_v57, %s5031_s14  ;;  %4777 = vpow2.f32 %v1056_v31 }
 0x4f4   :  { %v1058_v46 = vmul.f32 1.442695, %v1047_v56  ;;  %v1051_v47 = vsub.f32 %v5637_v28, %v1043_v44 }
 0x4f5   :  { %v1040_v52 = vpop.xlane.xlu0 %1039  ;;  %4332 = vmatpush3.bf16.msra.mxu1 %v4734_v60 }
 0x4f6   :  { %4779 = vpow2.f32 %v1058_v46  ;;  %v1066_v3 = vmul.f32 1.442695, %v1051_v47  ;;  %v1050_v58 = vsub.f32 %v5631_v17, %v1040_v52  ;;  %v1665_v52 = vsel %vm929_vm2, %v5464_v22, 0 }
 0x4f7   :  { %v1037_v59 = vpop.xlane.xlu1 %1036  ;;  %2644 = vrot.lane.b32.xlu0 %v5538_v45, %s5031_s14  ;;  %2650 = vrot.lane.b32.xlu1 %v5572_v18, %s5031_s14 }
 0x4f8   :  { %v1064_v63 = vmul.f32 1.442695, %v1050_v58  ;;  %v1049_v43 = vsub.f32 %v5639_v50, %v1037_v59  ;;  %4781 = vpow2.f32 %v1066_v3  ;;  %v1668_v58 = vsel %vm929_vm2, %v5484_v53, 0 }
 0x4f9   :  { %v1034_v28 = vpop.xlane.xlu0 %1033 }
 0x4fa   :  { %4783 = vpow2.f32 %v1064_v63  ;;  %v1062_v17 = vmul.f32 1.442695, %v1049_v43  ;;  %v1048_v6 = vsub.f32 %v5633_v0, %v1034_v28 }
 0x4fb   :  { %v5747_v8 = vpop.eup %4773  ;;  %2648 = vrot.lane.b32.xlu0 %v5560_v4, %s5031_s14  ;;  %1823 = vrot.lane.b32.xlu1 %v5484_v53, %s5030_s6 }
 0x4fc   :  { %v5753_v9 = vpop.eup %4775  ;;  %v1060_v50 = vmul.f32 1.442695, %v1048_v6  ;;  %4785 = vpow2.f32 %v1062_v17  ;;  %v1071_v2 = vsel %vm1019_vm3, %v5747_v8, 0.0  ;;  %v1674_v6 = vsel %vm929_vm2, %v5520_v23, 0 }
 0x4fd   :  { %v1092_v48 = vpack.c.bf16 %v5747_v8, %v5753_v9  ;;  %v4778_v13 = vpop.eup %4777 }
 0x4fe   :  { %4787 = vpow2.f32 %v1060_v50  ;;  %v1074_v3 = vsel %vm1019_vm3, %v4778_v13, 0.0 }
 0x4ff   :  { %1821 = vrot.lane.b32.xlu0 %v5464_v22, %s5030_s6  ;;  %2103 = vrot.lane.b32.xlu1 %v5538_v45, %s5030_s6 }
 0x500   :  { %v5761_v0 = vpop.eup %4779  ;;  %4289 = vmatprep.mubr.msk.bf16.mxu0 %vm1019_vm3, %v1092_v48 }
 0x501   :  { %v1093_v7 = vpack.c.bf16 %v5761_v0, %v4778_v13  ;;  %v1077_v63 = vsel %vm1019_vm3, %v5761_v0, 0.0 }
 0x502   :  { %v5765_v55 = vpop.eup %4781 }
 0x503   :  { %1825 = vrot.lane.b32.xlu0 %v5502_v19, %s5030_s6  ;;  %2105 = vrot.lane.b32.xlu1 %v5550_v57, %s5030_s6  ;;  %v1089_v17 = vsel %vm1019_vm3, %v5765_v55, 0.0 }
 0x504   :  { %v4784_v24 = vpop.eup %4783  ;;  %4290 = vmatmul.mubr.msk.bf16.vlgmr.msra.gmra.mrb[40].mxu0 %vm1019_vm3, %v1093_v7 }
 0x505   :  { %4314 = vmatpush3.bf16.msra.mxu0 %v5612_v51  ;;  %v1095_v34 = vpack.c.bf16 %v5765_v55, %v4784_v24  ;;  %v1086_v59 = vsel %vm1019_vm3, %v4784_v24, 0.0 }
 0x506   :  { %4315 = vmatprep.subr.bf16.mxu0 %v5715_v29  ;;  %v5775_v61 = vpop.eup %4785 }
 0x507   :  { %1827 = vrot.lane.b32.xlu0 %v5520_v23, %s5030_s6 }
 0x508   :  { %v4788_v35 = vpop.eup %4787 }
 0x509   :  { %4316 = vmatpush3.bf16.msra.mxu0 %v5715_v29  ;;  %v1310_v36 = vpop.xlane.xlu0 %1309  ;;  %v1094_v40 = vpack.c.bf16 %v5775_v61, %v4788_v35  ;;  %v1080_v28 = vsel %vm1019_vm3, %v4788_v35, 0.0 }
 0x50a   :  { %v1328_v16 = vsub.f32 %v5649_v49, %v1310_v36  ;;  %v1304_v15 = vpop.xlane.xlu1 %1303 }
 0x50b   :  { %v1326_v51 = vsub.f32 %v5651_v12, %v1304_v15  ;;  %4293 = vmatprep.mubr.msk.bf16.mxu0 %vm1019_vm3, %v1094_v40 }
 0x50c   :  { %v1338_v42 = vmul.f32 1.442695, %v1328_v16  ;;  %4294 = vmatmul.mubr.msk.bf16.gmra.mrb[44].mxu0 %vm1019_vm3, %v1095_v34 }
 0x50d   :  { %v1334_v54 = vmul.f32 1.442695, %v1326_v51  ;;  %v1307_v21 = vpop.xlane.xlu0 %1306 }
 0x50e   :  { %v1327_v14 = vsub.f32 %v5659_v30, %v1307_v21  ;;  %v1313_v39 = vpop.xlane.xlu1 %1312  ;;  %4789 = vpow2.f32 %v1338_v42 }
 0x50f   :  { %v1329_v29 = vsub.f32 %v5655_v5, %v1313_v39  ;;  %4791 = vpow2.f32 %v1334_v54 }
 0x510   :  { %v1336_v31 = vmul.f32 1.442695, %v1327_v14 }
 0x511   :  { %v1340_v11 = vmul.f32 1.442695, %v1329_v29  ;;  %v1383_v49 = vpop.permute.xlu0 %1382 }
 0x512   :  { %4793 = vpow2.f32 %v1336_v31  ;;  %v1385_v56 = vpop.permute.xlu1 %1384  ;;  %4317 = vmatprep.subr.bf16.mxu0 %v1383_v49 }
 0x513   :  { %4795 = vpow2.f32 %v1340_v11  ;;  %4318 = vmatpush3.bf16.msra.mxu0 %v1383_v49 }
 0x514   :  { %4319 = vmatprep.subr.bf16.mxu0 %v1385_v56 }
 0x517   :  { %4320 = vmatpush3.bf16.msra.mxu0 %v1385_v56 }
 0x518   :  { %4681 = vmatprep.subr.msk.bf16.mxu0 %vm929_vm2, %v5464_v22  ;;  %v4790_v12 = vpop.eup %4789  ;;  %v1068_v22 = vsel %vm1019_vm3, %v5753_v9, 0.0 }
 0x519   :  { %v4792_v30 = vpop.eup %4791  ;;  %v1356_v8 = vsel %vm1019_vm3, %v4790_v12, 0.0 }
 0x51a   :  { %v1350_v50 = vsel %vm1019_vm3, %v4792_v30, 0.0 }
 0x51c   :  { %v4794_v44 = vpop.eup %4793 }
 0x51d   :  { %v4796_v46 = vpop.eup %4795  ;;  %v1374_v5 = vpack.c.bf16 %v4794_v44, %v4792_v30  ;;  %v1353_v43 = vsel %vm1019_vm3, %v4794_v44, 0.0 }
 0x51e   :  { %v1375_v47 = vpack.c.bf16 %v4796_v46, %v4790_v12  ;;  %v1359_v60 = vsel %vm1019_vm3, %v4796_v46, 0.0  ;;  %v1947_v12 = vsel %vm929_vm2, %v5538_v45, 0 }
 0x51f   :  { %4321 = vmatprep.mubr.msk.bf16.mxu0 %vm1019_vm3, %v1374_v5 }
 0x520   :  { %4322 = vmatmul.mubr.msk.bf16.vlgmr.msra.gmra.mrb[48].mxu0 %vm1019_vm3, %v1375_v47  ;;  %v1950_v47 = vsel %vm929_vm2, %v5550_v57, 0 }
 0x521   :  { %4350 = vmatpush3.bf16.xpose.msra.mxu0 %v1665_v52 }
 0x522   :  { %4682 = vmatprep.subr.msk.bf16.mxu0 %vm929_vm2, %v5484_v53  ;;  %v1671_v53 = vsel %vm929_vm2, %v5502_v19, 0 }
 0x526   :  { %1072 = vadd.xlane.f32.xlu0 %v1071_v2 }
 0x527   :  { %1075 = vadd.xlane.f32.xlu1 %v1074_v3  ;;  %v1953_v3 = vsel %vm929_vm2, %v5560_v4, 0 }
 0x529   :  { %4352 = vmatpush3.bf16.xpose.msra.mxu0 %v1668_v58 }
 0x52a   :  { %4683 = vmatprep.subr.msk.bf16.mxu0 %vm929_vm2, %v5502_v19  ;;  %1087 = vadd.xlane.f32.xlu0 %v1086_v59  ;;  %v1083_v19 = vsel %vm1019_vm3, %v5775_v61, 0.0 }
 0x52b   :  { %1069 = vadd.xlane.f32.xlu1 %v1068_v22 }
 0x52e   :  { %1360 = vadd.xlane.f32.xlu0 %v1359_v60 }
 0x52f   :  { %1078 = vadd.xlane.f32.xlu1 %v1077_v63 }
 0x531   :  { %4354 = vmatpush3.bf16.xpose.msra.mxu0 %v1671_v53 }
 0x532   :  { %4684 = vmatprep.subr.msk.bf16.mxu0 %vm929_vm2, %v5520_v23  ;;  %1354 = vadd.xlane.f32.xlu0 %v1353_v43 }
 0x533   :  { %1081 = vadd.xlane.f32.xlu1 %v1080_v28 }
 0x537   :  { %1090 = vadd.xlane.f32.xlu1 %v1089_v17 }
 0x539   :  { %4356 = vmatpush3.bf16.xpose.msra.mxu0 %v1674_v6 }
 0x53a   :  { %4685 = vmatprep.subr.msk.bf16.mxu0 %vm929_vm2, %v5538_v45 }
 0x53b   :  { %1084 = vadd.xlane.f32.xlu1 %v1083_v19 }
 0x53f   :  { %1357 = vadd.xlane.f32.xlu1 %v1356_v8 }
 0x542   :  { %v1316_v9 = vpop.xlane.xlu0 %1315 }
 0x543   :  { %v1330_v48 = vsub.f32 %v5667_v26, %v1316_v9  ;;  %v1319_v13 = vpop.xlane.xlu1 %1318  ;;  %1351 = vadd.xlane.f32.xlu1 %v1350_v50 }
 0x544   :  { %v1331_v23 = vsub.f32 %v5671_v32, %v1319_v13 }
 0x545   :  { %v1342_v0 = vmul.f32 1.442695, %v1330_v48 }
 0x546   :  { %v1344_v7 = vmul.f32 1.442695, %v1331_v23  ;;  %v1322_v55 = vpop.xlane.xlu0 %1321 }
 0x547   :  { %4797 = vpow2.f32 %v1342_v0  ;;  %v1332_v24 = vsub.f32 %v5665_v62, %v1322_v55  ;;  %v1647_v14 = vpop.permute.xlu1 %1646 }
 0x548   :  { %4799 = vpow2.f32 %v1344_v7 }
 0x549   :  { %v1346_v34 = vmul.f32 1.442695, %v1332_v24 }
 0x54a   :  { %v1325_v61 = vpop.xlane.xlu0 %1324 }
 0x54b   :  { %4801 = vpow2.f32 %v1346_v34  ;;  %v1333_v35 = vsub.f32 %v5669_v27, %v1325_v61  ;;  %v1649_v49 = vpop.permute.xlu1 %1648 }
 0x54d   :  { %v1348_v36 = vmul.f32 1.442695, %v1333_v35 }
 0x54e   :  { %v1645_v40 = vpop.permute.xlu0 %1644 }
 0x54f   :  { %4803 = vpow2.f32 %v1348_v36  ;;  %v1651_v30 = vpop.permute.xlu1 %1650 }
 0x551   :  { %v4798_v26 = vpop.eup %4797 }
 0x552   :  { %v4800_v16 = vpop.eup %4799  ;;  %v1927_v15 = vpop.permute.xlu0 %1926  ;;  %v1362_v32 = vsel %vm1019_vm3, %v4798_v26, 0.0 }
 0x553   :  { %1363 = vadd.xlane.f32.xlu0 %v1362_v32  ;;  %v1376_v51 = vpack.c.bf16 %v4800_v16, %v4798_v26  ;;  %v1365_v39 = vsel %vm1019_vm3, %v4800_v16, 0.0  ;;  %v1929_v5 = vpop.permute.xlu1 %1928 }
 0x555   :  { %v4802_v42 = vpop.eup %4801  ;;  %4325 = vmatprep.mubr.msk.bf16.mxu0 %vm1019_vm3, %v1376_v51 }
 0x556   :  { %v1931_v62 = vpop.permute.xlu0 %1930  ;;  %v1368_v54 = vsel %vm1019_vm3, %v4802_v42, 0.0 }
 0x557   :  { %1369 = vadd.xlane.f32.xlu1 %v1368_v54  ;;  %v1933_v52 = vpop.permute.xlu1 %1932 }
 0x559   :  { %v4804_v21 = vpop.eup %4803 }
 0x55a   :  { %v2379_v27 = vpop.permute.xlu0 %2378  ;;  %v1371_v29 = vsel %vm1019_vm3, %v4804_v21, 0.0  ;;  %v1377_v31 = vpack.c.bf16 %v4804_v21, %v4802_v42 }
 0x55b   :  { %1366 = vadd.xlane.f32.xlu1 %v1365_v39  ;;  %1372 = vadd.xlane.f32.xlu0 %v1371_v29  ;;  %v2381_v59 = vpop.permute.xlu1 %2380  ;;  %v2399_v53 = vsel %vm929_vm2, %v2379_v27, 0 }
 0x55c   :  { %4326 = vmatmul.mubr.msk.bf16.gmra.mrb[52].mxu0 %vm1019_vm3, %v1377_v31  ;;  %v2402_v28 = vsel %vm929_vm2, %v2381_v59, 0 }
 0x55d   :  { %4357 = vmatprep.mubr.msk.bf16.mxu0 %vm929_vm2, %v1645_v40 }
 0x55e   :  { %v2383_v11 = vpop.permute.xlu0 %2382 }
 0x55f   :  { %v2385_v60 = vpop.permute.xlu1 %2384  ;;  %v2405_v6 = vsel %vm929_vm2, %v2383_v11, 0 }
 0x560   :  { %v2408_v9 = vsel %vm929_vm2, %v2385_v60, 0 }
 0x562   :  { %v2371_v56 = vpop.permute.xlu0 %2370 }
 0x563   :  { %v2653_v63 = vpop.permute.xlu1 %2652 }
 0x564   :  { %4358 = vmatmul.mubr.msk.bf16.vlgmr.msra.gmra.mrb[56].mxu0 %vm929_vm2, %v1647_v14  ;;  %v2673_v48 = vsel %vm929_vm2, %v2653_v63, 0 }
 0x565   :  { %4382 = vmatpush3.bf16.xpose.msra.mxu0 %v1947_v12  ;;  %4361 = vmatprep.mubr.msk.bf16.mxu0 %vm929_vm2, %v1649_v49 }
 0x566   :  { %4686 = vmatprep.subr.msk.bf16.mxu0 %vm929_vm2, %v5550_v57  ;;  %v2373_v44 = vpop.permute.xlu0 %2372  ;;  %v1956_v57 = vsel %vm929_vm2, %v5572_v18, 0 }
 0x567   :  { %v2657_v43 = vpop.permute.xlu1 %2656 }
 0x568   :  { %v2679_v55 = vsel %vm929_vm2, %v2657_v43, 0 }
 0x56a   :  { %v2655_v46 = vpop.permute.xlu0 %2654 }
 0x56b   :  { %v2377_v17 = vpop.permute.xlu1 %2376  ;;  %v2676_v23 = vsel %vm929_vm2, %v2655_v46, 0 }
 0x56c   :  { %4362 = vmatmul.mubr.msk.bf16.gmra.mrb[60].mxu0 %vm929_vm2, %v1651_v30 }
 0x56d   :  { %4384 = vmatpush3.bf16.xpose.msra.mxu0 %v1950_v47  ;;  %4389 = vmatprep.mubr.msk.bf16.mxu0 %vm929_vm2, %v1927_v15 }
 0x56e   :  { %4687 = vmatprep.subr.msk.bf16.mxu0 %vm929_vm2, %v5560_v4  ;;  %v2375_v45 = vpop.permute.xlu0 %2374 }
 0x56f   :  { %v2659_v19 = vpop.permute.xlu1 %2658 }
 0x570   :  { %v2682_v34 = vsel %vm929_vm2, %v2659_v19, 0 }
 0x572   :  { %v2645_v2 = vpop.permute.xlu0 %2644 }
 0x573   :  { %v2647_v8 = vpop.permute.xlu1 %2646 }
 0x575   :  { %4386 = vmatpush3.bf16.xpose.msra.mxu0 %v1953_v3 }
 0x576   :  { %4688 = vmatprep.subr.msk.bf16.mxu0 %vm929_vm2, %v5572_v18  ;;  %v2649_v58 = vpop.permute.xlu0 %2648 }
 0x577   :  { %v2651_v50 = vpop.permute.xlu1 %2650 }
 0x57a   :  { %v5851_v22 = vpop.permute.xlu0 %1821 }
 0x57b   :  { %4365 = vmatprep.subr.bf16.mxu1 %v5851_v22  ;;  %v5873_v13 = vpop.permute.xlu1 %1823 }
 0x57d   :  { %4388 = vmatpush3.bf16.xpose.msra.mxu0 %v1956_v57 }
 0x57e   :  { %4689 = vmatprep.subr.msk.bf16.mxu0 %vm929_vm2, %v2379_v27  ;;  %v1826_v35 = vpop.permute.xlu0 %1825 }
 0x57f   :  { %v5877_v0 = vpop.permute.xlu1 %2103 }
 0x582   :  { %v1828_v40 = vpop.permute.xlu0 %1827 }
 0x583   :  { %v5881_v7 = vpop.permute.xlu1 %2105 }
 0x584   :  { %4390 = vmatmul.mubr.msk.bf16.vlgmr.msra.gmra.mrb[64].mxu0 %vm929_vm2, %v1929_v5 }
 0x585   :  { %4393 = vmatprep.mubr.msk.bf16.mxu0 %vm929_vm2, %v1931_v62  ;;  %4434 = vmatpush3.bf16.xpose.msra.mxu0 %v2399_v53 }
 0x586   :  { %4690 = vmatprep.subr.msk.bf16.mxu0 %vm929_vm2, %v2381_v59 }
 0x58c   :  { %4394 = vmatmul.mubr.msk.bf16.gmra.mrb[68].mxu0 %vm929_vm2, %v1933_v52 }
 0x58d   :  { %4436 = vmatpush3.bf16.xpose.msra.mxu0 %v2402_v28  ;;  %4441 = vmatprep.mubr.msk.bf16.mxu0 %vm929_vm2, %v2371_v56 }
 0x58e   :  { %4691 = vmatprep.subr.msk.bf16.mxu0 %vm929_vm2, %v2383_v11 }
 0x595   :  { %4438 = vmatpush3.bf16.xpose.msra.mxu0 %v2405_v6 }
 0x596   :  { %4692 = vmatprep.subr.msk.bf16.mxu0 %vm929_vm2, %v2385_v60 }
 0x59d   :  { %4440 = vmatpush3.bf16.xpose.msra.mxu0 %v2408_v9 }
 0x59e   :  { %4693 = vmatprep.subr.msk.bf16.mxu0 %vm929_vm2, %v2653_v63 }
 0x5a4   :  { %4442 = vmatmul.mubr.msk.bf16.vlgmr.msra.gmra.mrb[72].mxu0 %vm929_vm2, %v2373_v44 }
 0x5a5   :  { %4445 = vmatprep.mubr.msk.bf16.mxu0 %vm929_vm2, %v2375_v45  ;;  %4466 = vmatpush3.bf16.xpose.msra.mxu0 %v2673_v48 }
 0x5a6   :  { %4694 = vmatprep.subr.msk.bf16.mxu0 %vm929_vm2, %v2655_v46 }
 0x5ac   :  { %4446 = vmatmul.mubr.msk.bf16.gmra.mrb[76].mxu0 %vm929_vm2, %v2377_v17 }
 0x5ad   :  { %4468 = vmatpush3.bf16.xpose.msra.mxu0 %v2676_v23  ;;  %4473 = vmatprep.mubr.msk.bf16.mxu0 %vm929_vm2, %v2645_v2 }
 0x5ae   :  { %4695 = vmatprep.subr.msk.bf16.mxu0 %vm929_vm2, %v2657_v43 }
 0x5b3   :  { %v1073_v16 = vpop.xlane.xlu0 %1072 }
 0x5b4   :  { %v1076_v24 = vpop.xlane.xlu1 %1075  ;;  %4805 = vrcp.f32 %v1073_v16 }
 0x5b5   :  { %4470 = vmatpush3.bf16.xpose.msra.mxu0 %v2679_v55  ;;  %4807 = vrcp.f32 %v1076_v24 }
 0x5b6   :  { %4696 = vmatprep.subr.msk.bf16.mxu0 %vm929_vm2, %v2659_v19 }
 0x5b7   :  { %v1088_v32 = vpop.xlane.xlu0 %1087 }
 0x5b8   :  { %v1070_v61 = vpop.xlane.xlu1 %1069 }
 0x5bb   :  { %v1361_v52 = vpop.xlane.xlu0 %1360 }
 0x5bc   :  { %v1079_v36 = vpop.xlane.xlu1 %1078 }
 0x5bd   :  { %4472 = vmatpush3.bf16.xpose.msra.mxu0 %v2682_v34  ;;  %4809 = vrcp.f32 %v1079_v36 }
 0x5be   :  { %4811 = vrcp.f32 %v1070_v61  ;;  %v4806_v42 = vpop.eup %4805 }
 0x5bf   :  { %4813 = vrcp.f32 %v1088_v32  ;;  %v4808_v54 = vpop.eup %4807  ;;  %v1355_v17 = vpop.xlane.xlu0 %1354 }
 0x5c0   :  { %v1082_v26 = vpop.xlane.xlu1 %1081 }
 0x5c1   :  { %4815 = vrcp.f32 %v1082_v26 }
 0x5c4   :  { %4474 = vmatmul.mubr.msk.bf16.vlgmr.msra.gmra.mrb[80].mxu0 %vm929_vm2, %v2647_v8  ;;  %v1091_v15 = vpop.xlane.xlu1 %1090 }
 0x5c5   :  { %4477 = vmatprep.mubr.msk.bf16.mxu0 %vm929_vm2, %v2649_v58  ;;  %4817 = vrcp.f32 %v1091_v15 }
 0x5c7   :  { %v4810_v14 = vpop.eup %4809 }
 0x5c8   :  { %v1085_v51 = vpop.xlane.xlu1 %1084  ;;  %v4812_v39 = vpop.eup %4811 }
 0x5c9   :  { %4819 = vrcp.f32 %v1085_v51  ;;  %v4814_v44 = vpop.eup %4813 }
 0x5ca   :  { %4821 = vrcp.f32 %v1361_v52 }
 0x5cb   :  { %v4816_v5 = vpop.eup %4815  ;;  %4823 = vrcp.f32 %v1355_v17 }
 0x5cc   :  { %4478 = vmatmul.mubr.msk.bf16.gmra.mrb[84].mxu0 %vm929_vm2, %v2651_v50  ;;  %v1358_v60 = vpop.xlane.xlu1 %1357 }
 0x5cd   :  { %4825 = vrcp.f32 %v1358_v60 }
 0x5cf   :  { %v4818_v45 = vpop.eup %4817 }
 0x5d3   :  { %v4820_v3 = vpop.eup %4819 }
 0x5d4   :  { %v4822_v6 = vpop.eup %4821 }
 0x5d5   :  { %v4824_v8 = vpop.eup %4823 }
 0x5d7   :  { %v4291_v62 = vpop.f32.mrb[40].mxu0  ;;  %v4826_v50 = vpop.eup %4825 }
 0x5d8   :  { %v1154_v21 = vpop.f32.mrb[41].mxu0  ;;  %v1195_v29 = vmul.f32 %v4808_v54, %v4291_v62 }
 0x5d9   :  { %v4292_v27 = vpop.f32.mrb[42].mxu0  ;;  %v1193_v49 = vmul.f32 %v4812_v39, %v1154_v21 }
 0x5da   :  { %v1196_v31 = vmul.f32 %v4810_v14, %v4292_v27  ;;  %v1157_v11 = vpop.f32.mrb[43].mxu0 }
 0x5db   :  { %v1194_v56 = vmul.f32 %v4806_v42, %v1157_v11 }
 0x5dc   :  { %v1484_v12 = vpack.c.bf16 %v1196_v31, %v1195_v29 }
 0x5dd   :  { %v1483_v30 = vpack.c.bf16 %v1194_v56, %v1193_v49 }
 0x5df   :  { %4333 = vmatprep.mubr.msk.bf16.mxu1 %vm929_vm2, %v1483_v30  ;;  %v4295_v46 = vpop.f32.mrb[44].mxu0 }
 0x5e0   :  { %4334 = vmatmul.mubr.msk.bf16.vlgmr.msra.gmra.mrb[40].mxu1 %vm929_vm2, %v1484_v12  ;;  %v1170_v47 = vpop.f32.mrb[45].mxu0  ;;  %v1199_v58 = vmul.f32 %v4814_v44, %v4295_v46  ;;  %v1364_v26 = vpop.xlane.xlu0 %1363 }
 0x5e1   :  { %4366 = vmatpush3.bf16.msra.mxu1 %v5851_v22  ;;  %v4296_v2 = vpop.f32.mrb[46].mxu0  ;;  %v1197_v63 = vmul.f32 %v4816_v5, %v1170_v47  ;;  %v1352_v22 = vpop.xlane.xlu1 %1351 }
 0x5e2   :  { %4367 = vmatprep.subr.bf16.mxu1 %v5873_v13  ;;  %v1200_v59 = vmul.f32 %v4818_v45, %v4296_v2  ;;  %v1173_v57 = vpop.f32.mrb[47].mxu0  ;;  %4827 = vrcp.f32 %v1352_v22 }
 0x5e3   :  { %v1198_v53 = vmul.f32 %v4820_v3, %v1173_v57  ;;  %4829 = vrcp.f32 %v1364_v26 }
 0x5e4   :  { %v1486_v43 = vpack.c.bf16 %v1200_v59, %v1199_v58 }
 0x5e5   :  { %v1485_v28 = vpack.c.bf16 %v1198_v53, %v1197_v63  ;;  %4368 = vmatpush3.bf16.msra.mxu1 %v5873_v13 }
 0x5e6   :  { %4369 = vmatprep.subr.bf16.mxu1 %v1826_v35 }
 0x5e7   :  { %4337 = vmatprep.mubr.msk.bf16.mxu1 %vm929_vm2, %v1485_v28 }
 0x5e8   :  { %4338 = vmatmul.mubr.msk.bf16.gmra.mrb[44].mxu1 %vm929_vm2, %v1486_v43  ;;  %v1373_v16 = vpop.xlane.xlu0 %1372 }
 0x5e9   :  { %4370 = vmatpush3.bf16.msra.mxu1 %v1826_v35 }
 0x5ea   :  { %4371 = vmatprep.subr.bf16.mxu1 %v1828_v40 }
 0x5ec   :  { %v4828_v13 = vpop.eup %4827 }
 0x5ed   :  { %4372 = vmatpush3.bf16.msra.mxu1 %v1828_v40  ;;  %v1370_v40 = vpop.xlane.xlu1 %1369  ;;  %v4830_v32 = vpop.eup %4829 }
 0x5ee   :  { %4397 = vmatprep.subr.bf16.mxu1 %v5877_v0  ;;  %4831 = vrcp.f32 %v1370_v40 }
 0x5ef   :  { %4833 = vrcp.f32 %v1373_v16 }
 0x5f1   :  { %v1367_v15 = vpop.xlane.xlu1 %1366 }
 0x5f2   :  { %4835 = vrcp.f32 %v1367_v15 }
 0x5f3   :  { %v4323_v19 = vpop.f32.mrb[48].mxu0 }
 0x5f4   :  { %v1436_v9 = vpop.f32.mrb[49].mxu0  ;;  %v1477_v23 = vmul.f32 %v4826_v50, %v4323_v19 }
 0x5f5   :  { %v4324_v48 = vpop.f32.mrb[50].mxu0  ;;  %v1475_v34 = vmul.f32 %v4828_v13, %v1436_v9 }
 0x5f6   :  { %v1478_v55 = vmul.f32 %v4822_v6, %v4324_v48  ;;  %v1439_v24 = vpop.f32.mrb[51].mxu0 }
 0x5f7   :  { %v1476_v61 = vmul.f32 %v4824_v8, %v1439_v24 }
 0x5f8   :  { %v1488_v35 = vpack.c.bf16 %v1478_v55, %v1477_v23  ;;  %v4832_v42 = vpop.eup %4831 }
 0x5f9   :  { %v1487_v36 = vpack.c.bf16 %v1476_v61, %v1475_v34  ;;  %v4834_v54 = vpop.eup %4833 }
 0x5fb   :  { %4341 = vmatprep.mubr.msk.bf16.mxu1 %vm929_vm2, %v1487_v36 }
 0x5fc   :  { %4342 = vmatmul.mubr.msk.bf16.gmra.mrb[48].mxu1 %vm929_vm2, %v1488_v35  ;;  %v4836_v14 = vpop.eup %4835 }
 0x62f   :  { %v4327_v51 = vpop.f32.mrb[52].mxu0 }
 0x630   :  { %v1452_v62 = vpop.f32.mrb[53].mxu0  ;;  %v1481_v27 = vmul.f32 %v4832_v42, %v4327_v51 }
 0x631   :  { %v4328_v21 = vpop.f32.mrb[54].mxu0  ;;  %v1479_v31 = vmul.f32 %v4830_v32, %v1452_v62 }
 0x632   :  { %v1482_v39 = vmul.f32 %v4834_v54, %v4328_v21  ;;  %v1455_v29 = vpop.f32.mrb[55].mxu0 }
 0x633   :  { %v1480_v11 = vmul.f32 %v4836_v14, %v1455_v29 }
 0x634   :  { %v1490_v49 = vpack.c.bf16 %v1482_v39, %v1481_v27 }
 0x635   :  { %v1489_v56 = vpack.c.bf16 %v1480_v11, %v1479_v31 }
 0x637   :  { %4345 = vmatprep.mubr.msk.bf16.mxu1 %vm929_vm2, %v1489_v56  ;;  %v5900_v12 = vpop.f32.mrb[56].mxu0 }
 0x638   :  { %4346 = vmatmul.mubr.msk.bf16.gmra.mrb[52].mxu1 %vm929_vm2, %v1490_v49  ;;  %v5903_v30 = vpop.f32.mrb[57].mxu0  ;;  %v1747_v44 = vsel %vm1019_vm3, %v5900_v12, -inf }
 0x639   :  { %1748 = vmax.xlane.f32.xlu0 %v1747_v44  ;;  %v5907_v46 = vpop.f32.mrb[58].mxu0  ;;  %v1741_v47 = vsel %vm1019_vm3, %v5903_v30, -inf }
 0x63a   :  { %v5909_v5 = vpop.f32.mrb[59].mxu0  ;;  %v1750_v2 = vsel %vm1019_vm3, %v5907_v46, -inf }
 0x63b   :  { %v1744_v57 = vsel %vm1019_vm3, %v5909_v5, -inf }
 0x63d   :  { %1742 = vmax.xlane.f32.xlu0 %v1741_v47 }
 0x63f   :  { %v5913_v45 = vpop.f32.mrb[60].mxu0 }
 0x640   :  { %v5915_v52 = vpop.f32.mrb[61].mxu0  ;;  %v1759_v60 = vsel %vm1019_vm3, %v5913_v45, -inf }
 0x641   :  { %1751 = vmax.xlane.f32.xlu0 %v1750_v2  ;;  %v5919_v3 = vpop.f32.mrb[62].mxu0  ;;  %v1753_v63 = vsel %vm1019_vm3, %v5915_v52, -inf }
 0x642   :  { %v5921_v58 = vpop.f32.mrb[63].mxu0  ;;  %v1762_v53 = vsel %vm1019_vm3, %v5919_v3, -inf }
 0x643   :  { %v1756_v59 = vsel %vm1019_vm3, %v5921_v58, -inf }
 0x644   :  { %1757 = vmax.xlane.f32.xlu1 %v1756_v59 }
 0x645   :  { %1745 = vmax.xlane.f32.xlu0 %v1744_v57 }
 0x649   :  { %1760 = vmax.xlane.f32.xlu0 %v1759_v60 }
 0x64d   :  { %1754 = vmax.xlane.f32.xlu0 %v1753_v63 }
 0x651   :  { %1763 = vmax.xlane.f32.xlu0 %v1762_v53 }
 0x657   :  { %v5933_v43 = vpop.f32.mrb[64].mxu0 }
 0x658   :  { %v5935_v28 = vpop.f32.mrb[65].mxu0  ;;  %v2029_v17 = vsel %vm1019_vm3, %v5933_v43, -inf }
 0x659   :  { %2030 = vmax.xlane.f32.xlu1 %v2029_v17  ;;  %v5939_v22 = vpop.f32.mrb[66].mxu0  ;;  %v2023_v19 = vsel %vm1019_vm3, %v5935_v28, -inf }
 0x65a   :  { %v5941_v6 = vpop.f32.mrb[67].mxu0  ;;  %v2032_v50 = vsel %vm1019_vm3, %v5939_v22, -inf }
 0x65b   :  { %v2026_v55 = vsel %vm1019_vm3, %v5941_v6, -inf }
 0x65d   :  { %2024 = vmax.xlane.f32.xlu1 %v2023_v19 }
 0x65f   :  { %v5945_v8 = vpop.f32.mrb[68].mxu0 }
 0x660   :  { %v5947_v9 = vpop.f32.mrb[69].mxu0  ;;  %v2041_v48 = vsel %vm1019_vm3, %v5945_v8, -inf }
 0x661   :  { %2033 = vmax.xlane.f32.xlu1 %v2032_v50  ;;  %2042 = vmax.xlane.f32.xlu0 %v2041_v48  ;;  %v5953_v13 = vpop.f32.mrb[70].mxu0  ;;  %v2035_v24 = vsel %vm1019_vm3, %v5947_v9, -inf }
 0x662   :  { %v5955_v23 = vpop.f32.mrb[71].mxu0  ;;  %v2044_v34 = vsel %vm1019_vm3, %v5953_v13, -inf }
 0x663   :  { %v2038_v61 = vsel %vm1019_vm3, %v5955_v23, -inf }
 0x665   :  { %2027 = vmax.xlane.f32.xlu1 %v2026_v55  ;;  %2036 = vmax.xlane.f32.xlu0 %v2035_v24 }
 0x669   :  { %2045 = vmax.xlane.f32.xlu0 %v2044_v34  ;;  %2039 = vmax.xlane.f32.xlu1 %v2038_v61 }
 0x677   :  { %v5965_v35 = vpop.f32.mrb[72].mxu0 }
 0x678   :  { %v5967_v36 = vpop.f32.mrb[73].mxu0  ;;  %v2481_v39 = vsel %vm1019_vm3, %v5965_v35, -inf }
 0x679   :  { %v5969_v40 = vpop.f32.mrb[74].mxu0  ;;  %v2475_v29 = vsel %vm1019_vm3, %v5967_v36, -inf }
 0x67a   :  { %2109 = vrot.lane.b32.xlu1 %v5572_v18, %s5030_s6  ;;  %v5973_v26 = vpop.f32.mrb[75].mxu0  ;;  %v2484_v31 = vsel %vm1019_vm3, %v5969_v40, -inf }
 0x67b   :  { %v2478_v11 = vsel %vm1019_vm3, %v5973_v26, -inf }
 0x67e   :  { %3094 = vrot.lane.b32.xlu1 %v5474_v25, %s5031_s14 }
 0x67f   :  { %2107 = vrot.lane.b32.xlu0 %v5560_v4, %s5030_s6  ;;  %v5979_v16 = vpop.f32.mrb[76].mxu0 }
 0x680   :  { %v5981_v15 = vpop.f32.mrb[77].mxu0 }
 0x681   :  { %v5983_v32 = vpop.f32.mrb[78].mxu0 }
 0x682   :  { %3098 = vrot.lane.b32.xlu1 %v5492_v10, %s5031_s14  ;;  %v5987_v51 = vpop.f32.mrb[79].mxu0 }
 0x683   :  { %3092 = vrot.lane.b32.xlu0 %v5476_v33, %s5031_s14 }
 0x686   :  { %3382 = vrot.lane.b32.xlu1 %v5512_v20, %s5031_s14 }
 0x687   :  { %3096 = vrot.lane.b32.xlu0 %v5494_v37, %s5031_s14 }
 0x68a   :  { %3386 = vrot.lane.b32.xlu1 %v5530_v38, %s5031_s14 }
 0x68b   :  { %3084 = vrot.lane.b32.xlu0 %v5476_v33, %s5030_s6 }
 0x68e   :  { %3090 = vrot.lane.b32.xlu1 %v5492_v10, %s5030_s6 }
 0x68f   :  { %3086 = vrot.lane.b32.xlu0 %v5474_v25, %s5030_s6 }
 0x692   :  { %3388 = vrot.lane.b32.xlu1 %v5528_v41, %s5031_s14 }
 0x693   :  { %3384 = vrot.lane.b32.xlu0 %v5510_v1, %s5031_s14 }
 0x696   :  { %3376 = vrot.lane.b32.xlu1 %v5510_v1, %s5030_s6 }
 0x697   :  { %3088 = vrot.lane.b32.xlu0 %v5494_v37, %s5030_s6  ;;  %v6011_v4 = vpop.f32.mrb[80].mxu0 }
 0x698   :  { %v6013_v18 = vpop.f32.mrb[81].mxu0 }
 0x699   :  { %v6015_v42 = vpop.f32.mrb[82].mxu0 }
 0x69a   :  { %v6017_v62 = vpop.f32.mrb[83].mxu0 }
 0x69b   :  { %3374 = vrot.lane.b32.xlu0 %v5512_v20, %s5030_s6 }
 0x69f   :  { %v6021_v54 = vpop.f32.mrb[84].mxu0 }
 0x6a0   :  { %v6023_v21 = vpop.f32.mrb[85].mxu0 }
 0x6a1   :  { %v6025_v14 = vpop.f32.mrb[86].mxu0 }
 0x6a2   :  { %v6027_v27 = vpop.f32.mrb[87].mxu0 }
 0x6ba   :  { %2482 = vmax.xlane.f32.xlu0 %v2481_v39 }
 0x6be   :  { %2476 = vmax.xlane.f32.xlu0 %v2475_v29 }
 0x6c2   :  { %2485 = vmax.xlane.f32.xlu0 %v2484_v31 }
 0x6c6   :  { %2479 = vmax.xlane.f32.xlu0 %v2478_v11  ;;  %v1749_v49 = vpop.xlane.xlu0 %1748 }
 0x6c7   :  { %v1767_v56 = vsub.f32 %v5900_v12, %v1749_v49 }
 0x6c9   :  { %v1777_v44 = vmul.f32 1.442695, %v1767_v56 }
 0x6ca   :  { %v1743_v47 = vpop.xlane.xlu0 %1742 }
 0x6cb   :  { %4837 = vpow2.f32 %v1777_v44  ;;  %v1765_v2 = vsub.f32 %v5903_v30, %v1743_v47 }
 0x6cd   :  { %v1773_v59 = vmul.f32 1.442695, %v1765_v2 }
 0x6ce   :  { %v1752_v57 = vpop.xlane.xlu0 %1751 }
 0x6cf   :  { %4839 = vpow2.f32 %v1773_v59  ;;  %v1768_v60 = vsub.f32 %v5907_v46, %v1752_v57 }
 0x6d1   :  { %v1779_v63 = vmul.f32 1.442695, %v1768_v60  ;;  %v1758_v17 = vpop.xlane.xlu1 %1757 }
 0x6d2   :  { %v1746_v53 = vpop.xlane.xlu0 %1745  ;;  %v1770_v12 = vsub.f32 %v5921_v58, %v1758_v17 }
 0x6d3   :  { %4841 = vpow2.f32 %v1779_v63  ;;  %v1766_v19 = vsub.f32 %v5909_v5, %v1746_v53 }
 0x6d4   :  { %v1783_v46 = vmul.f32 1.442695, %v1770_v12 }
 0x6d5   :  { %v4838_v50 = vpop.eup %4837  ;;  %v1775_v48 = vmul.f32 1.442695, %v1766_v19 }
 0x6d6   :  { %v1761_v55 = vpop.xlane.xlu0 %1760  ;;  %v1795_v24 = vsel %vm1019_vm3, %v4838_v50, 0.0 }
 0x6d7   :  { %4843 = vpow2.f32 %v1775_v48  ;;  %v1771_v30 = vsub.f32 %v5913_v45, %v1761_v55  ;;  %1796 = vadd.xlane.f32.xlu1 %v1795_v24 }
 0x6d9   :  { %v4840_v34 = vpop.eup %4839  ;;  %v1785_v61 = vmul.f32 1.442695, %v1771_v30 }
 0x6da   :  { %v1755_v39 = vpop.xlane.xlu0 %1754  ;;  %v1789_v29 = vsel %vm1019_vm3, %v4840_v34, 0.0 }
 0x6db   :  { %4845 = vpow2.f32 %v1785_v61  ;;  %v1769_v5 = vsub.f32 %v5915_v52, %v1755_v39  ;;  %1790 = vadd.xlane.f32.xlu1 %v1789_v29 }
 0x6dc   :  { %4847 = vpow2.f32 %v1783_v46 }
 0x6dd   :  { %v4842_v31 = vpop.eup %4841  ;;  %v1781_v11 = vmul.f32 1.442695, %v1769_v5 }
 0x6de   :  { %v1814_v58 = vpack.c.bf16 %v4842_v31, %v4838_v50  ;;  %v1764_v49 = vpop.xlane.xlu0 %1763  ;;  %v1798_v56 = vsel %vm1019_vm3, %v4842_v31, 0.0 }
 0x6df   :  { %4849 = vpow2.f32 %v1781_v11  ;;  %v1772_v45 = vsub.f32 %v5919_v3, %v1764_v49  ;;  %1799 = vadd.xlane.f32.xlu1 %v1798_v56 }
 0x6e1   :  { %v4844_v44 = vpop.eup %4843  ;;  %v1787_v47 = vmul.f32 1.442695, %v1772_v45 }
 0x6e2   :  { %v1792_v2 = vsel %vm1019_vm3, %v4844_v44, 0.0  ;;  %v1813_v59 = vpack.c.bf16 %v4844_v44, %v4840_v34 }
 0x6e3   :  { %4851 = vpow2.f32 %v1787_v47  ;;  %1793 = vadd.xlane.f32.xlu0 %v1792_v2 }
 0x6e4   :  { %4373 = vmatprep.mubr.msk.bf16.mxu1 %vm1019_vm3, %v1813_v59 }
 0x6e5   :  { %v4846_v52 = vpop.eup %4845  ;;  %4374 = vmatmul.mubr.msk.bf16.vlgmr.msra.gmra.mrb[56].mxu1 %vm1019_vm3, %v1814_v58 }
 0x6e6   :  { %v2031_v57 = vpop.xlane.xlu1 %2030  ;;  %4398 = vmatpush3.bf16.msra.mxu1 %v5877_v0  ;;  %v1807_v60 = vsel %vm1019_vm3, %v4846_v52, 0.0  ;;  %v4848_v63 = vpop.eup %4847 }
 0x6e7   :  { %v2049_v3 = vsub.f32 %v5933_v43, %v2031_v57  ;;  %4399 = vmatprep.subr.bf16.mxu1 %v5881_v7  ;;  %1808 = vadd.xlane.f32.xlu0 %v1807_v60  ;;  %v1804_v5 = vsel %vm1019_vm3, %v4848_v63, 0.0 }
 0x6e9   :  { %v4850_v53 = vpop.eup %4849  ;;  %v2059_v17 = vmul.f32 1.442695, %v2049_v3 }
 0x6ea   :  { %v2025_v19 = vpop.xlane.xlu1 %2024  ;;  %4400 = vmatpush3.bf16.msra.mxu1 %v5881_v7  ;;  %v1801_v50 = vsel %vm1019_vm3, %v4850_v53, 0.0  ;;  %v1815_v48 = vpack.c.bf16 %v4848_v63, %v4850_v53 }
 0x6eb   :  { %4853 = vpow2.f32 %v2059_v17  ;;  %v2047_v12 = vsub.f32 %v5935_v28, %v2025_v19  ;;  %1802 = vadd.xlane.f32.xlu1 %v1801_v50 }
 0x6ec   :  { %4377 = vmatprep.mubr.msk.bf16.mxu1 %vm1019_vm3, %v1815_v48 }
 0x6ed   :  { %v4852_v0 = vpop.eup %4851  ;;  %v2055_v43 = vmul.f32 1.442695, %v2047_v12 }
 0x6ee   :  { %v2034_v55 = vpop.xlane.xlu1 %2033  ;;  %v2043_v24 = vpop.xlane.xlu0 %2042  ;;  %v1810_v30 = vsel %vm1019_vm3, %v4852_v0, 0.0  ;;  %v1816_v34 = vpack.c.bf16 %v4852_v0, %v4846_v52 }
 0x6ef   :  { %4855 = vpow2.f32 %v2055_v43  ;;  %v2050_v61 = vsub.f32 %v5939_v22, %v2034_v55  ;;  %v2053_v7 = vsub.f32 %v5945_v8, %v2043_v24  ;;  %1811 = vadd.xlane.f32.xlu1 %v1810_v30  ;;  %v4736_v30 = vld [vmem:[%s6637_s7 + $0x18] sm:$0xff]  }
 0x6f0   :  { %4378 = vmatmul.mubr.msk.bf16.gmra.mrb[60].mxu1 %vm1019_vm3, %v1816_v34 }
 0x6f1   :  { %v2061_v46 = vmul.f32 1.442695, %v2050_v61  ;;  %v2067_v28 = vmul.f32 1.442695, %v2053_v7 }
 0x6f2   :  { %v2028_v39 = vpop.xlane.xlu1 %2027  ;;  %v2037_v29 = vpop.xlane.xlu0 %2036 }
 0x6f3   :  { %4857 = vpow2.f32 %v2061_v46  ;;  %v2048_v31 = vsub.f32 %v5941_v6, %v2028_v39  ;;  %v2051_v11 = vsub.f32 %v5947_v9, %v2037_v29  ;;  %1805 = vadd.xlane.f32.xlu1 %v1804_v5 }
 0x6f4   :  { %4859 = vpow2.f32 %v2067_v28 }
 0x6f5   :  { %v4854_v58 = vpop.eup %4853  ;;  %v2057_v22 = vmul.f32 1.442695, %v2048_v31  ;;  %v2063_v49 = vmul.f32 1.442695, %v2051_v11 }
 0x6f6   :  { %v2040_v8 = vpop.xlane.xlu1 %2039  ;;  %v2046_v56 = vpop.xlane.xlu0 %2045  ;;  %v2077_v45 = vsel %vm1019_vm3, %v4854_v58, 0.0 }
 0x6f7   :  { %4861 = vpow2.f32 %v2057_v22  ;;  %v2052_v44 = vsub.f32 %v5955_v23, %v2040_v8  ;;  %v2054_v47 = vsub.f32 %v5953_v13, %v2046_v56  ;;  %2078 = vadd.xlane.f32.xlu1 %v2077_v45  ;;  %v4735_v13 = vld [vmem:[%s6637_s7 + $0x10] sm:$0xff]  }
 0x6f8   :  { %4863 = vpow2.f32 %v2063_v49 }
 0x6f9   :  { %v4856_v2 = vpop.eup %4855  ;;  %v2065_v6 = vmul.f32 1.442695, %v2052_v44  ;;  %v2069_v59 = vmul.f32 1.442695, %v2054_v47 }
 0x6fa   :  { %v2108_v9 = vpop.permute.xlu0 %2107  ;;  %v2071_v52 = vsel %vm1019_vm3, %v4856_v2, 0.0  ;;  %v2110_v57 = vpop.permute.xlu1 %2109 }
 0x6fb   :  { %4865 = vpow2.f32 %v2065_v6  ;;  %4401 = vmatprep.subr.bf16.mxu1 %v2108_v9  ;;  %2072 = vadd.xlane.f32.xlu1 %v2071_v52 }
 0x6fc   :  { %4867 = vpow2.f32 %v2069_v59  ;;  %4402 = vmatpush3.bf16.msra.mxu1 %v2108_v9 }
 0x6fd   :  { %v4858_v60 = vpop.eup %4857  ;;  %4403 = vmatprep.subr.bf16.mxu1 %v2110_v57 }
 0x6fe   :  { %v4860_v23 = vpop.eup %4859  ;;  %v2096_v3 = vpack.c.bf16 %v4858_v60, %v4854_v58  ;;  %v3093_v63 = vpop.permute.xlu0 %3092  ;;  %v2080_v53 = vsel %vm1019_vm3, %v4858_v60, 0.0 }
 0x6ff   :  { %2081 = vadd.xlane.f32.xlu0 %v2080_v53  ;;  %4697 = vmatprep.subr.msk.bf16.mxu0 %vm929_vm2, %v3093_v63  ;;  %v2089_v17 = vsel %vm1019_vm3, %v4860_v23, 0.0  ;;  %v3113_v19 = vsel %vm929_vm2, %v3093_v63, 0  ;;  %v3095_v48 = vpop.permute.xlu1 %3094  ;;  %v2493_v63 = vsel %vm1019_vm3, %v5979_v16, -inf }
 0x700   :  { %2090 = vadd.xlane.f32.xlu1 %v2089_v17  ;;  %4404 = vmatpush3.bf16.msra.mxu1 %v2110_v57  ;;  %v3116_v29 = vsel %vm929_vm2, %v3095_v48, 0  ;;  %v2490_v57 = vsel %vm1019_vm3, %v5987_v51, -inf  ;;  %v2764_v17 = vsel %vm1019_vm3, %v6027_v27, -inf }
 0x701   :  { %v4862_v50 = vpop.eup %4861  ;;  %4518 = vmatpush3.bf16.xpose.msra.mxu0 %v3113_v19  ;;  %4413 = vmatprep.subr.bf16.mxu1 %v4735_v13 }
 0x702   :  { %4698 = vmatprep.subr.msk.bf16.mxu0 %vm929_vm2, %v3095_v48  ;;  %v3097_v12 = vpop.permute.xlu0 %3096  ;;  %v2074_v0 = vsel %vm1019_vm3, %v4862_v50, 0.0  ;;  %v2095_v43 = vpack.c.bf16 %v4862_v50, %v4856_v2  ;;  %v4864_v55 = vpop.eup %4863  ;;  %v2496_v50 = vsel %vm1019_vm3, %v5983_v32, -inf }
 0x703   :  { %2075 = vadd.xlane.f32.xlu0 %v2074_v0  ;;  %v2083_v46 = vsel %vm1019_vm3, %v4864_v55, 0.0  ;;  %v3119_v31 = vsel %vm929_vm2, %v3097_v12, 0  ;;  %v3099_v11 = vpop.permute.xlu1 %3098 }
 0x704   :  { %4405 = vmatprep.mubr.msk.bf16.mxu1 %vm1019_vm3, %v2095_v43  ;;  %v3122_v22 = vsel %vm929_vm2, %v3099_v11, 0  ;;  %v2749_v43 = vsel %vm1019_vm3, %v6013_v18, -inf }
 0x705   :  { %v4866_v24 = vpop.eup %4865  ;;  %4406 = vmatmul.mubr.msk.bf16.vlgmr.msra.gmra.mrb[64].mxu1 %vm1019_vm3, %v2096_v3  ;;  %v2758_v3 = vsel %vm1019_vm3, %v6015_v42, -inf }
 0x706   :  { %v4868_v34 = vpop.eup %4867  ;;  %4414 = vmatpush3.bf16.msra.mxu1 %v4735_v13  ;;  %v3085_v61 = vpop.permute.xlu0 %3084  ;;  %v2086_v7 = vsel %vm1019_vm3, %v4866_v24, 0.0  ;;  %v2097_v28 = vpack.c.bf16 %v4866_v24, %v4864_v55  ;;  %v2752_v13 = vsel %vm1019_vm3, %v6017_v62, -inf }
 0x707   :  { %2087 = vadd.xlane.f32.xlu1 %v2086_v7  ;;  %2084 = vadd.xlane.f32.xlu0 %v2083_v46  ;;  %v2098_v39 = vpack.c.bf16 %v4868_v34, %v4860_v23  ;;  %v2092_v5 = vsel %vm1019_vm3, %v4868_v34, 0.0  ;;  %v3383_v49 = vpop.permute.xlu1 %3382  ;;  %v2487_v23 = vsel %vm1019_vm3, %v5981_v15, -inf  ;;  %v2761_v46 = vsel %vm1019_vm3, %v6023_v21, -inf }
 0x708   :  { %4525 = vmatprep.mubr.msk.bf16.mxu0 %vm929_vm2, %v3085_v61  ;;  %4409 = vmatprep.mubr.msk.bf16.mxu1 %vm1019_vm3, %v2097_v28  ;;  %v3403_v56 = vsel %vm929_vm2, %v3383_v49, 0 }
 0x709   :  { %4415 = vmatprep.subr.bf16.mxu1 %v4736_v30  ;;  %4520 = vmatpush3.bf16.xpose.msra.mxu0 %v3116_v29 }
 0x70a   :  { %4416 = vmatpush3.bf16.msra.mxu1 %v4736_v30  ;;  %4699 = vmatprep.subr.msk.bf16.mxu0 %vm929_vm2, %v3097_v12  ;;  %v3087_v58 = vpop.permute.xlu0 %3086  ;;  %v2770_v12 = vsel %vm1019_vm3, %v6025_v14, -inf  ;;  %v2755_v30 = vsel %vm1019_vm3, %v6011_v4, -inf }
 0x70b   :  { %4449 = vmatprep.subr.bf16.mxu1 %v5476_v33  ;;  %2093 = vadd.xlane.f32.xlu0 %v2092_v5  ;;  %v3387_v44 = vpop.permute.xlu1 %3386 }
 0x70c   :  { %v3409_v59 = vsel %vm929_vm2, %v3387_v44, 0 }
 0x70d   :  { %4410 = vmatmul.mubr.msk.bf16.gmra.mrb[68].mxu1 %vm1019_vm3, %v2098_v39 }
 0x70e   :  { %v3385_v8 = vpop.permute.xlu0 %3384 }
 0x70f   :  { %v3091_v47 = vpop.permute.xlu1 %3090  ;;  %v3406_v2 = vsel %vm929_vm2, %v3385_v8, 0 }
 0x711   :  { %4522 = vmatpush3.bf16.xpose.msra.mxu0 %v3119_v31 }
 0x712   :  { %4700 = vmatprep.subr.msk.bf16.mxu0 %vm929_vm2, %v3099_v11  ;;  %v3089_v45 = vpop.permute.xlu0 %3088 }
 0x713   :  { %v3389_v9 = vpop.permute.xlu1 %3388 }
 0x714   :  { %v3412_v52 = vsel %vm929_vm2, %v3389_v9, 0 }
 0x716   :  { %v3375_v6 = vpop.permute.xlu0 %3374 }
 0x717   :  { %v3377_v60 = vpop.permute.xlu1 %3376 }
 0x718   :  { %3380 = vrot.lane.b32.xlu1 %v5528_v41, %s5030_s6 }
 0x719   :  { %4524 = vmatpush3.bf16.xpose.msra.mxu0 %v3122_v22 }
 0x71a   :  { %4701 = vmatprep.subr.msk.bf16.mxu0 %vm929_vm2, %v3383_v49 }
 0x720   :  { %4526 = vmatmul.mubr.msk.bf16.vlgmr.msra.gmra.mrb[88].mxu0 %vm929_vm2, %v3087_v58 }
 0x721   :  { %4529 = vmatprep.mubr.msk.bf16.mxu0 %vm929_vm2, %v3089_v45  ;;  %4550 = vmatpush3.bf16.xpose.msra.mxu0 %v3403_v56 }
 0x722   :  { %3378 = vrot.lane.b32.xlu0 %v5530_v38, %s5030_s6  ;;  %4702 = vmatprep.subr.msk.bf16.mxu0 %vm929_vm2, %v3385_v8 }
 0x728   :  { %4530 = vmatmul.mubr.msk.bf16.gmra.mrb[92].mxu0 %vm929_vm2, %v3091_v47 }
 0x729   :  { %4552 = vmatpush3.bf16.xpose.msra.mxu0 %v3406_v2  ;;  %4557 = vmatprep.mubr.msk.bf16.mxu0 %vm929_vm2, %v3375_v6 }
 0x72a   :  { %4703 = vmatprep.subr.msk.bf16.mxu0 %vm929_vm2, %v3387_v44 }
 0x731   :  { %4554 = vmatpush3.bf16.xpose.msra.mxu0 %v3409_v59 }
 0x732   :  { %4704 = vmatprep.subr.msk.bf16.mxu0 %vm929_vm2, %v3389_v9 }
 0x739   :  { %4556 = vmatpush3.bf16.xpose.msra.mxu0 %v3412_v52 }
 0x73c   :  { %2491 = vmax.xlane.f32.xlu1 %v2490_v57 }
 0x740   :  { %4558 = vmatmul.mubr.msk.bf16.vlgmr.msra.gmra.mrb[96].mxu0 %vm929_vm2, %v3377_v60  ;;  %2753 = vmax.xlane.f32.xlu1 %v2752_v13 }
 0x741   :  { %2488 = vmax.xlane.f32.xlu0 %v2487_v23 }
 0x744   :  { %2759 = vmax.xlane.f32.xlu1 %v2758_v3 }
 0x745   :  { %2494 = vmax.xlane.f32.xlu0 %v2493_v63 }
 0x747   :  { %v2483_v53 = vpop.xlane.xlu0 %2482 }
 0x748   :  { %v2501_v19 = vsub.f32 %v5965_v35, %v2483_v53  ;;  %2765 = vmax.xlane.f32.xlu1 %v2764_v17 }
 0x749   :  { %2497 = vmax.xlane.f32.xlu0 %v2496_v50 }
 0x74a   :  { %v2511_v55 = vmul.f32 1.442695, %v2501_v19 }
 0x74b   :  { %v2477_v48 = vpop.xlane.xlu0 %2476 }
 0x74c   :  { %v2499_v0 = vsub.f32 %v5967_v36, %v2477_v48  ;;  %2771 = vmax.xlane.f32.xlu1 %v2770_v12  ;;  %4869 = vpow2.f32 %v2511_v55 }
 0x74d   :  { %2750 = vmax.xlane.f32.xlu0 %v2749_v43 }
 0x74e   :  { %v2507_v61 = vmul.f32 1.442695, %v2499_v0 }
 0x74f   :  { %v2486_v24 = vpop.xlane.xlu0 %2485 }
 0x750   :  { %v2502_v35 = vsub.f32 %v5969_v40, %v2486_v24  ;;  %v2767_v40 = vsel %vm1019_vm3, %v6021_v54, -inf }
 0x751   :  { %2756 = vmax.xlane.f32.xlu0 %v2755_v30 }
 0x752   :  { %v2513_v34 = vmul.f32 1.442695, %v2502_v35 }
 0x753   :  { %v2480_v7 = vpop.xlane.xlu0 %2479 }
 0x754   :  { %4871 = vpow2.f32 %v2513_v34  ;;  %v2500_v36 = vsub.f32 %v5973_v26, %v2480_v7 }
 0x755   :  { %2762 = vmax.xlane.f32.xlu0 %v2761_v46  ;;  %4873 = vpow2.f32 %v2507_v61 }
 0x756   :  { %v2509_v28 = vmul.f32 1.442695, %v2500_v36  ;;  %v6141_v39 = vpop.eup %4869 }
 0x758   :  { %4875 = vpow2.f32 %v2509_v28 }
 0x759   :  { %2768 = vmax.xlane.f32.xlu0 %v2767_v40 }
 0x75e   :  { %v6143_v29 = vpop.eup %4871 }
 0x75f   :  { %v2548_v5 = vpack.c.bf16 %v6143_v29, %v6141_v39  ;;  %v6147_v31 = vpop.eup %4873 }
 0x762   :  { %v6149_v26 = vpop.eup %4875 }
 0x763   :  { %v2547_v11 = vpack.c.bf16 %v6149_v26, %v6147_v31 }
 0x764   :  { %v1797_v58 = vpop.xlane.xlu1 %1796 }
 0x765   :  { %4877 = vrcp.f32 %v1797_v58 }
 0x768   :  { %v1791_v22 = vpop.xlane.xlu1 %1790 }
 0x769   :  { %4879 = vrcp.f32 %v1791_v22 }
 0x76c   :  { %v1800_v49 = vpop.xlane.xlu1 %1799 }
 0x76d   :  { %4881 = vrcp.f32 %v1800_v49 }
 0x76f   :  { %v4878_v63 = vpop.eup %4877 }
 0x770   :  { %v1794_v44 = vpop.xlane.xlu0 %1793 }
 0x771   :  { %4883 = vrcp.f32 %v1794_v44 }
 0x773   :  { %v4880_v17 = vpop.eup %4879 }
 0x774   :  { %v1809_v2 = vpop.xlane.xlu0 %1808 }
 0x775   :  { %4885 = vrcp.f32 %v1809_v2 }
 0x777   :  { %v4882_v50 = vpop.eup %4881 }
 0x778   :  { %v1803_v8 = vpop.xlane.xlu1 %1802 }
 0x779   :  { %4887 = vrcp.f32 %v1803_v8 }
 0x77b   :  { %v4884_v12 = vpop.eup %4883 }
 0x77c   :  { %v1812_v56 = vpop.xlane.xlu1 %1811 }
 0x77d   :  { %4889 = vrcp.f32 %v1812_v56 }
 0x77f   :  { %v4886_v61 = vpop.eup %4885 }
 0x780   :  { %v1806_v45 = vpop.xlane.xlu1 %1805 }
 0x781   :  { %4891 = vrcp.f32 %v1806_v45 }
 0x783   :  { %v4888_v36 = vpop.eup %4887 }
 0x784   :  { %v2079_v47 = vpop.xlane.xlu1 %2078 }
 0x785   :  { %4893 = vrcp.f32 %v2079_v47 }
 0x787   :  { %v4890_v28 = vpop.eup %4889 }
 0x788   :  { %v2073_v59 = vpop.xlane.xlu1 %2072 }
 0x789   :  { %4895 = vrcp.f32 %v2073_v59 }
 0x78b   :  { %v4892_v58 = vpop.eup %4891 }
 0x78c   :  { %v6153_v6 = vpop.xlane.xlu0 %2081 }
 0x78d   :  { %v6157_v52 = vpop.xlane.xlu1 %2090  ;;  %4897 = vrcp.f32 %v6153_v6 }
 0x78f   :  { %v4894_v6 = vpop.eup %4893 }
 0x790   :  { %v6155_v9 = vpop.xlane.xlu0 %2075 }
 0x791   :  { %4899 = vrcp.f32 %v6155_v9 }
 0x794   :  { %v6159_v57 = vpop.xlane.xlu0 %2084  ;;  %v6161_v60 = vpop.xlane.xlu1 %2087 }
 0x798   :  { %v6163_v13 = vpop.xlane.xlu0 %2093  ;;  %v3381_v3 = vpop.permute.xlu1 %3380 }
 0x79c   :  { %v3379_v23 = vpop.permute.xlu0 %3378 }
 0x79d   :  { %4561 = vmatprep.mubr.msk.bf16.mxu0 %vm929_vm2, %v3379_v23 }
 0x79e   :  { %4562 = vmatmul.mubr.msk.bf16.gmra.mrb[100].mxu0 %vm929_vm2, %v3381_v3 }
 0x7b8   :  { %v4375_v53 = vpop.f32.mrb[56].mxu1 }
 0x7b9   :  { %v1879_v19 = vpop.f32.mrb[57].mxu1  ;;  %v1920_v0 = vmul.f32 %v4878_v63, %v4375_v53 }
 0x7ba   :  { %v4376_v48 = vpop.f32.mrb[58].mxu1  ;;  %v1918_v24 = vmul.f32 %v4880_v17, %v1879_v19 }
 0x7bb   :  { %v1921_v43 = vmul.f32 %v4882_v50, %v4376_v48  ;;  %v1882_v55 = vpop.f32.mrb[59].mxu1 }
 0x7bc   :  { %v1919_v35 = vmul.f32 %v4884_v12, %v1882_v55 }
 0x7bd   :  { %v2209_v30 = vpack.c.bf16 %v1921_v43, %v1920_v0  ;;  %v4896_v43 = vpop.eup %4895 }
 0x7be   :  { %v2208_v34 = vpack.c.bf16 %v1919_v35, %v1918_v24 }
 0x7c0   :  { %4417 = vmatprep.mubr.msk.bf16.mxu1 %vm929_vm2, %v2208_v34 }
 0x7c1   :  { %4418 = vmatmul.mubr.msk.bf16.vlgmr.msra.gmra.mrb[40].mxu1 %vm929_vm2, %v2209_v30  ;;  %v4898_v30 = vpop.eup %4897 }
 0x7c2   :  { %4450 = vmatpush3.bf16.msra.mxu1 %v5476_v33 }
 0x7c3   :  { %4451 = vmatprep.subr.bf16.mxu1 %v5474_v25  ;;  %v4379_v7 = vpop.f32.mrb[60].mxu1 }
 0x7c4   :  { %v1895_v46 = vpop.f32.mrb[61].mxu1  ;;  %v1924_v22 = vmul.f32 %v4886_v61, %v4379_v7  ;;  %v4900_v61 = vpop.eup %4899 }
 0x7c5   :  { %v4380_v40 = vpop.f32.mrb[62].mxu1  ;;  %v1922_v56 = vmul.f32 %v4888_v36, %v1895_v46 }
 0x7c6   :  { %v1925_v49 = vmul.f32 %v4890_v28, %v4380_v40  ;;  %4452 = vmatpush3.bf16.msra.mxu1 %v5474_v25  ;;  %v1898_v8 = vpop.f32.mrb[63].mxu1 }
 0x7c7   :  { %v1923_v45 = vmul.f32 %v4892_v58, %v1898_v8  ;;  %4453 = vmatprep.subr.bf16.mxu1 %v5494_v37 }
 0x7c8   :  { %v2211_v44 = vpack.c.bf16 %v1925_v49, %v1924_v22 }
 0x7c9   :  { %v2210_v2 = vpack.c.bf16 %v1923_v45, %v1922_v56  ;;  %v2492_v23 = vpop.xlane.xlu1 %2491 }
 0x7ca   :  { %v2504_v3 = vsub.f32 %v5987_v51, %v2492_v23  ;;  %4454 = vmatpush3.bf16.msra.mxu1 %v5494_v37 }
 0x7cb   :  { %4455 = vmatprep.subr.bf16.mxu1 %v5492_v10  ;;  %4421 = vmatprep.mubr.msk.bf16.mxu1 %vm929_vm2, %v2210_v2 }
 0x7cc   :  { %4422 = vmatmul.mubr.msk.bf16.gmra.mrb[44].mxu1 %vm929_vm2, %v2211_v44  ;;  %v2517_v53 = vmul.f32 1.442695, %v2504_v3 }
 0x7cd   :  { %v2754_v63 = vpop.xlane.xlu1 %2753 }
 0x7ce   :  { %v2489_v17 = vpop.xlane.xlu0 %2488  ;;  %4456 = vmatpush3.bf16.msra.mxu1 %v5492_v10  ;;  %4901 = vpow2.f32 %v2517_v53  ;;  %v2774_v12 = vsub.f32 %v6017_v62, %v2754_v63 }
 0x7cf   :  { %v2503_v19 = vsub.f32 %v5981_v15, %v2489_v17  ;;  %4481 = vmatprep.subr.bf16.mxu1 %v5512_v20 }
 0x7d0   :  { %v2783_v55 = vmul.f32 1.442695, %v2774_v12 }
 0x7d1   :  { %v2515_v51 = vmul.f32 1.442695, %v2503_v19  ;;  %v2760_v48 = vpop.xlane.xlu1 %2759 }
 0x7d2   :  { %v2495_v50 = vpop.xlane.xlu0 %2494 }
 0x7d3   :  { %4903 = vpow2.f32 %v2515_v51  ;;  %v2505_v47 = vsub.f32 %v5979_v16, %v2495_v50 }
 0x7d4   :  { %4905 = vrcp.f32 %v6157_v52  ;;  %v2776_v52 = vsub.f32 %v6015_v42, %v2760_v48 }
 0x7d5   :  { %v2519_v59 = vmul.f32 1.442695, %v2505_v47  ;;  %4907 = vrcp.f32 %v6159_v57  ;;  %v2766_v24 = vpop.xlane.xlu1 %2765 }
 0x7d6   :  { %v2498_v0 = vpop.xlane.xlu0 %2497  ;;  %4909 = vrcp.f32 %v6163_v13  ;;  %v2787_v22 = vmul.f32 1.442695, %v2776_v52  ;;  %v2778_v42 = vsub.f32 %v6027_v27, %v2766_v24 }
 0x7d7   :  { %v2506_v15 = vsub.f32 %v5983_v32, %v2498_v0  ;;  %4911 = vrcp.f32 %v6161_v60 }
 0x7d8   :  { %v4407_v9 = vpop.f32.mrb[64].mxu1  ;;  %4913 = vpow2.f32 %v2519_v59  ;;  %v6192_v36 = vpop.eup %4901  ;;  %v2791_v17 = vmul.f32 1.442695, %v2778_v42 }
 0x7d9   :  { %v2521_v16 = vmul.f32 1.442695, %v2506_v15  ;;  %v2202_v35 = vmul.f32 %v4894_v6, %v4407_v9  ;;  %v2161_v62 = vpop.f32.mrb[65].mxu1 }
 0x7da   :  { %v2751_v34 = vpop.xlane.xlu0 %2750  ;;  %v4408_v57 = vpop.f32.mrb[66].mxu1  ;;  %v2200_v60 = vmul.f32 %v4896_v43, %v2161_v62 }
 0x7db   :  { %4915 = vpow2.f32 %v2521_v16  ;;  %v2773_v32 = vsub.f32 %v6013_v18, %v2751_v34  ;;  %v2203_v13 = vmul.f32 %v4898_v30, %v4408_v57  ;;  %v2164_v7 = vpop.f32.mrb[67].mxu1  ;;  %v2772_v18 = vpop.xlane.xlu1 %2771 }
 0x7dc   :  { %v2201_v46 = vmul.f32 %v4900_v61, %v2164_v7  ;;  %4917 = vpow2.f32 %v2783_v55  ;;  %v2780_v19 = vsub.f32 %v6025_v14, %v2772_v18 }
 0x7dd   :  { %v6194_v28 = vpop.eup %4903  ;;  %v2781_v40 = vmul.f32 1.442695, %v2773_v32  ;;  %v2213_v58 = vpack.c.bf16 %v2203_v13, %v2202_v35 }
 0x7de   :  { %v2212_v49 = vpack.c.bf16 %v2201_v46, %v2200_v60  ;;  %v2757_v8 = vpop.xlane.xlu0 %2756  ;;  %v2549_v56 = vpack.c.bf16 %v6192_v36, %v6194_v28  ;;  %v4906_v44 = vpop.eup %4905  ;;  %v2795_v55 = vmul.f32 1.442695, %v2780_v19 }
 0x7df   :  { %4919 = vpow2.f32 %v2781_v40  ;;  %v2775_v45 = vsub.f32 %v6011_v4, %v2757_v8  ;;  %v4908_v23 = vpop.eup %4907 }
 0x7e0   :  { %v4411_v2 = vpop.f32.mrb[68].mxu1  ;;  %4425 = vmatprep.mubr.msk.bf16.mxu1 %vm929_vm2, %v2212_v49  ;;  %v4910_v27 = vpop.eup %4909  ;;  %4921 = vpow2.f32 %v2787_v22 }
 0x7e1   :  { %v2785_v3 = vmul.f32 1.442695, %v2775_v45  ;;  %v2206_v63 = vmul.f32 %v4906_v44, %v4411_v2  ;;  %v2177_v53 = vpop.f32.mrb[69].mxu1  ;;  %4426 = vmatmul.mubr.msk.bf16.gmra.mrb[48].mxu1 %vm929_vm2, %v2213_v58  ;;  %v4912_v47 = vpop.eup %4911 }
 0x7e2   :  { %v2204_v51 = vmul.f32 %v4908_v23, %v2177_v53  ;;  %v2763_v50 = vpop.xlane.xlu0 %2762  ;;  %v4412_v48 = vpop.f32.mrb[70].mxu1  ;;  %v4737_v53 = vld [vmem:[%s6637_s7 + $0x20] sm:$0xff]  }
 0x7e3   :  { %4923 = vpow2.f32 %v2785_v3  ;;  %v2777_v4 = vsub.f32 %v6023_v21, %v2763_v50  ;;  %v2207_v12 = vmul.f32 %v4910_v27, %v4412_v48  ;;  %v2180_v59 = vpop.f32.mrb[71].mxu1  ;;  %v6204_v0 = vpop.eup %4913  ;;  %v4738_v27 = vld [vmem:[%s6637_s7 + $0x28] sm:$0xff]  }
 0x7e4   :  { %v2205_v15 = vmul.f32 %v4912_v47, %v2180_v59  ;;  %4925 = vpow2.f32 %v2791_v17  ;;  %v2526_v59 = vsel %vm1019_vm3, %v6149_v26, 0.0 }
 0x7e5   :  { %v6206_v6 = vpop.eup %4915  ;;  %v2789_v9 = vmul.f32 1.442695, %v2777_v4  ;;  %v2215_v43 = vpack.c.bf16 %v2207_v12, %v2206_v63 }
 0x7e6   :  { %v2214_v24 = vpack.c.bf16 %v2205_v15, %v2204_v51  ;;  %v2769_v14 = vpop.xlane.xlu0 %2768  ;;  %v2550_v16 = vpack.c.bf16 %v6206_v6, %v6204_v0  ;;  %v6210_v35 = vpop.eup %4917  ;;  %v2538_v15 = vsel %vm1019_vm3, %v6192_v36, 0.0 }
 0x7e7   :  { %4927 = vpow2.f32 %v2789_v9  ;;  %v2779_v21 = vsub.f32 %v6021_v54, %v2769_v14 }
 0x7e8   :  { %4429 = vmatprep.mubr.msk.bf16.mxu1 %vm929_vm2, %v2214_v24  ;;  %4929 = vpow2.f32 %v2795_v55 }
 0x7e9   :  { %v6214_v62 = vpop.eup %4919  ;;  %v2793_v30 = vmul.f32 1.442695, %v2779_v21  ;;  %4430 = vmatmul.mubr.msk.bf16.gmra.mrb[52].mxu1 %vm929_vm2, %v2215_v43  ;;  %v2541_v21 = vsel %vm1019_vm3, %v6204_v0, 0.0 }
 0x7ea   :  { %4457 = vmatprep.mubr.msk.bf16.mxu1 %vm1019_vm3, %v2547_v11  ;;  %v2821_v52 = vpack.c.bf16 %v6210_v35, %v6214_v62  ;;  %v6223_v34 = vpop.eup %4921 }
 0x7eb   :  { %4931 = vpow2.f32 %v2793_v30  ;;  %v2806_v9 = vsel %vm1019_vm3, %v6223_v34, 0.0 }
 0x7ed   :  { %v6225_v54 = vpop.eup %4923 }
 0x7ee   :  { %v2822_v57 = vpack.c.bf16 %v6223_v34, %v6225_v54  ;;  %v6229_v61 = vpop.eup %4925 }
 0x7ef   :  { %v2812_v36 = vsel %vm1019_vm3, %v6229_v61, 0.0 }
 0x7f1   :  { %v6231_v32 = vpop.eup %4927  ;;  %4458 = vmatmul.mubr.msk.bf16.vlgmr.msra.gmra.mrb[72].mxu1 %vm1019_vm3, %v2548_v5 }
 0x7f2   :  { %4482 = vmatpush3.bf16.msra.mxu1 %v5512_v20  ;;  %4461 = vmatprep.mubr.msk.bf16.mxu1 %vm1019_vm3, %v2549_v56  ;;  %v2823_v11 = vpack.c.bf16 %v6229_v61, %v6231_v32  ;;  %v6244_v7 = vpop.eup %4929 }
 0x7f3   :  { %4483 = vmatprep.subr.bf16.mxu1 %v5510_v1  ;;  %v6242_v13 = vpop.f32.mrb[88].mxu0 }
 0x7f4   :  { %v6246_v60 = vpop.f32.mrb[89].mxu0  ;;  %v3195_v49 = vsel %vm1019_vm3, %v6242_v13, -inf }
 0x7f5   :  { %v6248_v46 = vpop.eup %4931  ;;  %v6250_v40 = vpop.f32.mrb[90].mxu0  ;;  %v3189_v5 = vsel %vm1019_vm3, %v6246_v60, -inf }
 0x7f6   :  { %3190 = vmax.xlane.f32.xlu0 %v3189_v5  ;;  %4484 = vmatpush3.bf16.msra.mxu1 %v5510_v1  ;;  %v6255_v58 = vpop.f32.mrb[91].mxu0  ;;  %v2824_v22 = vpack.c.bf16 %v6244_v7, %v6248_v46  ;;  %v3198_v56 = vsel %vm1019_vm3, %v6250_v40, -inf }
 0x7f7   :  { %4485 = vmatprep.subr.bf16.mxu1 %v5530_v38  ;;  %v3192_v42 = vsel %vm1019_vm3, %v6255_v58, -inf }
 0x7f8   :  { %3193 = vmax.xlane.f32.xlu1 %v3192_v42 }
 0x7f9   :  { %4462 = vmatmul.mubr.msk.bf16.gmra.mrb[76].mxu1 %vm1019_vm3, %v2550_v16  ;;  %v2529_v16 = vsel %vm1019_vm3, %v6141_v39, 0.0 }
 0x7fa   :  { %3196 = vmax.xlane.f32.xlu0 %v3195_v49  ;;  %4486 = vmatpush3.bf16.msra.mxu1 %v5530_v38 }
 0x7fb   :  { %4487 = vmatprep.subr.bf16.mxu1 %v5528_v41  ;;  %4489 = vmatprep.mubr.msk.bf16.mxu1 %vm1019_vm3, %v2821_v52  ;;  %v6268_v8 = vpop.f32.mrb[92].mxu0  ;;  %v2535_v52 = vsel %vm1019_vm3, %v6194_v28, 0.0 }
 0x7fc   :  { %3199 = vmax.xlane.f32.xlu1 %v3198_v56  ;;  %v6272_v18 = vpop.f32.mrb[93].mxu0  ;;  %v3207_v3 = vsel %vm1019_vm3, %v6268_v8, -inf }
 0x7fd   :  { %v6274_v45 = vpop.f32.mrb[94].mxu0  ;;  %v3201_v44 = vsel %vm1019_vm3, %v6272_v18, -inf }
 0x7fe   :  { %3202 = vmax.xlane.f32.xlu0 %v3201_v44  ;;  %4488 = vmatpush3.bf16.msra.mxu1 %v5528_v41  ;;  %v6279_v2 = vpop.f32.mrb[95].mxu0  ;;  %v3210_v63 = vsel %vm1019_vm3, %v6274_v45, -inf }
 0x7ff   :  { %v3204_v23 = vsel %vm1019_vm3, %v6279_v2, -inf  ;;  %4497 = vmatprep.subr.bf16.mxu1 %v4737_v53 }
 0x800   :  { %3205 = vmax.xlane.f32.xlu1 %v3204_v23 }
 0x801   :  { %4490 = vmatmul.mubr.msk.bf16.vlgmr.msra.gmra.mrb[80].mxu1 %vm1019_vm3, %v2822_v57 }
 0x802   :  { %3208 = vmax.xlane.f32.xlu0 %v3207_v3  ;;  %4493 = vmatprep.mubr.msk.bf16.mxu1 %vm1019_vm3, %v2823_v11 }
 0x803   :  { %4498 = vmatpush3.bf16.msra.mxu1 %v4737_v53 }
 0x804   :  { %3211 = vmax.xlane.f32.xlu1 %v3210_v63  ;;  %4499 = vmatprep.subr.bf16.mxu1 %v4738_v27 }
 0x807   :  { %4500 = vmatpush3.bf16.msra.mxu1 %v4738_v27 }
 0x809   :  { %4494 = vmatmul.mubr.msk.bf16.gmra.mrb[84].mxu1 %vm1019_vm3, %v2824_v22 }
 0x813   :  { %v6296_v17 = vpop.f32.mrb[96].mxu0 }
 0x814   :  { %v6298_v19 = vpop.f32.mrb[97].mxu0  ;;  %v3485_v4 = vsel %vm1019_vm3, %v6296_v17, -inf }
 0x815   :  { %v6300_v51 = vpop.f32.mrb[98].mxu0  ;;  %v3479_v50 = vsel %vm1019_vm3, %v6298_v19, -inf }
 0x816   :  { %3480 = vmax.xlane.f32.xlu1 %v3479_v50  ;;  %v6304_v48 = vpop.f32.mrb[99].mxu0  ;;  %v3488_v12 = vsel %vm1019_vm3, %v6300_v51, -inf }
 0x817   :  { %v3482_v47 = vsel %vm1019_vm3, %v6304_v48, -inf }
 0x818   :  { %3265 = vrot.lane.b32.xlu0 %v5476_v33, %s5032_s15  ;;  %v2532_v33 = vsel %vm1019_vm3, %v6143_v29, 0.0  ;;  %v2818_v29 = vsel %vm1019_vm3, %v6244_v7, 0.0 }
 0x81a   :  { %3483 = vmax.xlane.f32.xlu1 %v3482_v47 }
 0x81c   :  { %3269 = vrot.lane.b32.xlu0 %v5494_v37, %s5032_s15  ;;  %v2544_v37 = vsel %vm1019_vm3, %v6206_v6, 0.0 }
 0x81e   :  { %3486 = vmax.xlane.f32.xlu1 %v3485_v4 }
 0x822   :  { %3489 = vmax.xlane.f32.xlu1 %v3488_v12 }
 0x833   :  { %3267 = vrot.lane.b32.xlu1 %v5474_v25, %s5032_s15  ;;  %v2800_v25 = vsel %vm1019_vm3, %v6210_v35, 0.0  ;;  %v2523_v35 = vsel %vm1019_vm3, %v6147_v31, 0.0  ;;  %v2803_v31 = vsel %vm1019_vm3, %v6225_v54, 0.0 }
 0x857   :  { %2533 = vadd.xlane.f32.xlu1 %v2532_v33 }
 0x85b   :  { %2527 = vadd.xlane.f32.xlu1 %v2526_v59 }
 0x85f   :  { %2545 = vadd.xlane.f32.xlu1 %v2544_v37 }
 0x863   :  { %2539 = vadd.xlane.f32.xlu1 %v2538_v15 }
 0x867   :  { %2807 = vadd.xlane.f32.xlu1 %v2806_v9 }
 0x86b   :  { %2801 = vadd.xlane.f32.xlu1 %v2800_v25 }
 0x86f   :  { %2819 = vadd.xlane.f32.xlu1 %v2818_v29 }
 0x871   :  { %v6332_v26 = vpop.f32.mrb[100].mxu0 }
 0x872   :  { %v6334_v6 = vpop.f32.mrb[101].mxu0 }
 0x873   :  { %2813 = vadd.xlane.f32.xlu1 %v2812_v36  ;;  %v6338_v43 = vpop.f32.mrb[102].mxu0  ;;  %v3491_v55 = vsel %vm1019_vm3, %v6334_v6, -inf }
 0x874   :  { %3492 = vmax.xlane.f32.xlu0 %v3491_v55  ;;  %v6342_v24 = vpop.f32.mrb[103].mxu0  ;;  %v3500_v47 = vsel %vm1019_vm3, %v6338_v43, -inf }
 0x875   :  { %v3494_v14 = vsel %vm1019_vm3, %v6342_v24, -inf }
 0x877   :  { %3495 = vmax.xlane.f32.xlu1 %v3494_v14 }
 0x878   :  { %2530 = vadd.xlane.f32.xlu0 %v2529_v16 }
 0x87c   :  { %2524 = vadd.xlane.f32.xlu0 %v2523_v35 }
 0x880   :  { %2542 = vadd.xlane.f32.xlu0 %v2541_v21 }
 0x883   :  { %v3191_v30 = vpop.xlane.xlu0 %3190 }
 0x884   :  { %v3213_v34 = vsub.f32 %v6246_v60, %v3191_v30  ;;  %2536 = vadd.xlane.f32.xlu0 %v2535_v52 }
 0x885   :  { %v3194_v57 = vpop.xlane.xlu1 %3193 }
 0x886   :  { %v3221_v61 = vmul.f32 1.442695, %v3213_v34  ;;  %v3214_v39 = vsub.f32 %v6255_v58, %v3194_v57  ;;  %v2797_v58 = vsel %vm1019_vm3, %v6214_v62, 0.0 }
 0x887   :  { %v3197_v11 = vpop.xlane.xlu0 %3196 }
 0x888   :  { %v3223_v7 = vmul.f32 1.442695, %v3214_v39  ;;  %v3215_v5 = vsub.f32 %v6242_v13, %v3197_v11  ;;  %3555 = vrot.lane.b32.xlu1 %v5512_v20, %s5032_s15  ;;  %2804 = vadd.xlane.f32.xlu0 %v2803_v31  ;;  %4933 = vpow2.f32 %v3221_v61 }
 0x889   :  { %v3200_v28 = vpop.xlane.xlu1 %3199 }
 0x88a   :  { %4935 = vpow2.f32 %v3223_v7  ;;  %v3225_v0 = vmul.f32 1.442695, %v3215_v5  ;;  %v3216_v60 = vsub.f32 %v6250_v40, %v3200_v28  ;;  %v2815_v40 = vsel %vm1019_vm3, %v6248_v46, 0.0 }
 0x88b   :  { %v3203_v22 = vpop.xlane.xlu0 %3202  ;;  %v2809_v46 = vsel %vm1019_vm3, %v6231_v32, 0.0 }
 0x88c   :  { %v3227_v42 = vmul.f32 1.442695, %v3216_v60  ;;  %v3217_v54 = vsub.f32 %v6272_v18, %v3203_v22  ;;  %3557 = vrot.lane.b32.xlu1 %v5510_v1, %s5032_s15  ;;  %2798 = vadd.xlane.f32.xlu0 %v2797_v58  ;;  %4937 = vpow2.f32 %v3225_v0 }
 0x88d   :  { %v3206_v20 = vpop.xlane.xlu1 %3205 }
 0x88e   :  { %4939 = vpow2.f32 %v3227_v42  ;;  %v3229_v13 = vmul.f32 1.442695, %v3217_v54  ;;  %v3218_v49 = vsub.f32 %v6279_v2, %v3206_v20 }
 0x88f   :  { %v3209_v56 = vpop.xlane.xlu0 %3208 }
 0x890   :  { %v3231_v44 = vmul.f32 1.442695, %v3218_v49  ;;  %v3219_v62 = vsub.f32 %v6268_v8, %v3209_v56  ;;  %3561 = vrot.lane.b32.xlu1 %v5528_v41, %s5032_s15  ;;  %2816 = vadd.xlane.f32.xlu0 %v2815_v40  ;;  %4941 = vpow2.f32 %v3229_v13 }
 0x891   :  { %v3212_v1 = vpop.xlane.xlu1 %3211 }
 0x892   :  { %4943 = vpow2.f32 %v3231_v44  ;;  %v3233_v18 = vmul.f32 1.442695, %v3219_v62  ;;  %v3220_v23 = vsub.f32 %v6274_v45, %v3212_v1  ;;  %v6374_v3 = vpop.eup %4933  ;;  %v3497_v45 = vsel %vm1019_vm3, %v6332_v26, -inf }
 0x893   :  { %v6376_v2 = vpop.permute.xlu0 %3265  ;;  %v3237_v54 = vsel %vm1019_vm3, %v6374_v3, 0.0 }
 0x894   :  { %v6380_v63 = vpop.eup %4935  ;;  %v3235_v8 = vmul.f32 1.442695, %v3220_v23  ;;  %4533 = vmatprep.subr.bf16.mxu1 %v6376_v2  ;;  %2810 = vadd.xlane.f32.xlu0 %v2809_v46  ;;  %4945 = vpow2.f32 %v3233_v18 }
 0x895   :  { %v3261_v41 = vpack.c.bf16 %v6380_v63, %v6374_v3  ;;  %v4739_v3 = vld [vmem:[%s6637_s7 + $0x30] sm:$0xff]  }
 0x896   :  { %4947 = vpow2.f32 %v3235_v8  ;;  %v6385_v53 = vpop.eup %4937 }
 0x897   :  { %v3243_v56 = vsel %vm1019_vm3, %v6385_v53, 0.0 }
 0x898   :  { %v6389_v27 = vpop.eup %4939  ;;  %3498 = vmax.xlane.f32.xlu0 %v3497_v45 }
 0x899   :  { %v3262_v32 = vpack.c.bf16 %v6389_v27, %v6385_v53  ;;  %v3246_v44 = vsel %vm1019_vm3, %v6389_v27, 0.0 }
 0x89a   :  { %v6393_v50 = vpop.eup %4941 }
 0x89b   :  { %v3249_v46 = vsel %vm1019_vm3, %v6393_v50, 0.0 }
 0x89c   :  { %v6397_v4 = vpop.eup %4943  ;;  %3501 = vmax.xlane.f32.xlu0 %v3500_v47 }
 0x89d   :  { %v3263_v12 = vpack.c.bf16 %v6397_v4, %v6393_v50 }
 0x89e   :  { %v6401_v33 = vpop.eup %4945 }
 0x89f   :  { %v3255_v45 = vsel %vm1019_vm3, %v6401_v33, 0.0 }
 0x8a0   :  { %v6403_v59 = vpop.eup %4947 }
 0x8a1   :  { %v3264_v37 = vpack.c.bf16 %v6403_v59, %v6401_v33 }
 0x8a3   :  { %v3481_v15 = vpop.xlane.xlu1 %3480 }
 0x8a4   :  { %v3503_v9 = vsub.f32 %v6298_v19, %v3481_v15  ;;  %v3240_v19 = vsel %vm1019_vm3, %v6380_v63, 0.0  ;;  %v4740_v63 = vld [vmem:[%s6637_s7 + $0x38] sm:$0xff]  }
 0x8a6   :  { %v3511_v25 = vmul.f32 1.442695, %v3503_v9 }
 0x8a7   :  { %v3484_v29 = vpop.xlane.xlu1 %3483 }
 0x8a8   :  { %v3504_v36 = vsub.f32 %v6304_v48, %v3484_v29  ;;  %4949 = vpow2.f32 %v3511_v25 }
 0x8aa   :  { %v3513_v55 = vmul.f32 1.442695, %v3504_v36 }
 0x8ab   :  { %v3487_v14 = vpop.xlane.xlu1 %3486 }
 0x8ac   :  { %4951 = vpow2.f32 %v3513_v55  ;;  %v3505_v16 = vsub.f32 %v6296_v17, %v3487_v14  ;;  %v3252_v17 = vsel %vm1019_vm3, %v6397_v4, 0.0 }
 0x8ae   :  { %v3515_v35 = vmul.f32 1.442695, %v3505_v16  ;;  %v6478_v16 = vpop.permute.xlu0 %3269 }
 0x8af   :  { %v3490_v21 = vpop.xlane.xlu1 %3489 }
 0x8b0   :  { %v3506_v30 = vsub.f32 %v6300_v51, %v3490_v21  ;;  %4953 = vpow2.f32 %v3515_v35 }
 0x8b2   :  { %v3517_v52 = vmul.f32 1.442695, %v3506_v30  ;;  %3271 = vrot.lane.b32.xlu0 %v5492_v10, %s5032_s15  ;;  %v4950_v48 = vpop.eup %4949  ;;  %v3258_v10 = vsel %vm1019_vm3, %v6403_v59, 0.0 }
 0x8b3   :  { %v6469_v23 = vpop.permute.xlu1 %3267  ;;  %v3527_v15 = vsel %vm1019_vm3, %v4950_v48, 0.0 }
 0x8b4   :  { %4955 = vpow2.f32 %v3517_v52  ;;  %3241 = vadd.xlane.f32.xlu1 %v3240_v19 }
 0x8b6   :  { %v4952_v34 = vpop.eup %4951  ;;  %3559 = vrot.lane.b32.xlu0 %v5530_v38, %s5032_s15 }
 0x8b7   :  { %v3551_v57 = vpack.c.bf16 %v4952_v34, %v4950_v48  ;;  %v3530_v38 = vsel %vm1019_vm3, %v4952_v34, 0.0 }
 0x8b8   :  { %3253 = vadd.xlane.f32.xlu1 %v3252_v17 }
 0x8b9   :  { %4573 = vmatprep.mubr.msk.bf16.mxu0 %vm1019_vm3, %v3551_v57 }
 0x8ba   :  { %v6422_v51 = vpop.eup %4953 }
 0x8bb   :  { %v3533_v25 = vsel %vm1019_vm3, %v6422_v51, 0.0 }
 0x8bc   :  { %3259 = vadd.xlane.f32.xlu1 %v3258_v10 }
 0x8be   :  { %v6424_v61 = vpop.eup %4955 }
 0x8bf   :  { %v3552_v39 = vpack.c.bf16 %v6424_v61, %v6422_v51  ;;  %v3536_v11 = vsel %vm1019_vm3, %v6424_v61, 0.0 }
 0x8c0   :  { %3531 = vadd.xlane.f32.xlu1 %v3530_v38 }
 0x8c4   :  { %3537 = vadd.xlane.f32.xlu1 %v3536_v11  ;;  %v6431_v31 = vpop.f32.mrb[72].mxu1 }
 0x8c5   :  { %v6433_v7 = vpop.f32.mrb[73].mxu1 }
 0x8c6   :  { %v6435_v5 = vpop.f32.mrb[74].mxu1 }
 0x8c7   :  { %v6437_v28 = vpop.f32.mrb[75].mxu1 }
 0x8cc   :  { %v6439_v0 = vpop.f32.mrb[76].mxu1 }
 0x8cd   :  { %v6441_v60 = vpop.f32.mrb[77].mxu1 }
 0x8ce   :  { %v6443_v22 = vpop.f32.mrb[78].mxu1 }
 0x8cf   :  { %v6445_v58 = vpop.f32.mrb[79].mxu1 }
 0x8d4   :  { %v6447_v42 = vpop.f32.mrb[80].mxu1 }
 0x8d5   :  { %v6451_v20 = vpop.f32.mrb[81].mxu1  ;;  %3238 = vadd.xlane.f32.xlu0 %v3237_v54 }
 0x8d6   :  { %v6453_v13 = vpop.f32.mrb[82].mxu1 }
 0x8d7   :  { %v6455_v49 = vpop.f32.mrb[83].mxu1 }
 0x8d9   :  { %3244 = vadd.xlane.f32.xlu0 %v3243_v56 }
 0x8dc   :  { %v6459_v40 = vpop.f32.mrb[84].mxu1 }
 0x8dd   :  { %v6463_v62 = vpop.f32.mrb[85].mxu1  ;;  %3247 = vadd.xlane.f32.xlu0 %v3246_v44 }
 0x8de   :  { %v6465_v1 = vpop.f32.mrb[86].mxu1 }
 0x8df   :  { %v6467_v18 = vpop.f32.mrb[87].mxu1 }
 0x8e1   :  { %3250 = vadd.xlane.f32.xlu0 %v3249_v46 }
 0x8e4   :  { %v2534_v8 = vpop.xlane.xlu1 %2533 }
 0x8e5   :  { %3256 = vadd.xlane.f32.xlu0 %v3255_v45  ;;  %4957 = vrcp.f32 %v2534_v8 }
 0x8e8   :  { %v2528_v47 = vpop.xlane.xlu1 %2527 }
 0x8e9   :  { %3528 = vadd.xlane.f32.xlu0 %v3527_v15 }
 0x8ec   :  { %v2546_v9 = vpop.xlane.xlu1 %2545 }
 0x8ed   :  { %3534 = vadd.xlane.f32.xlu0 %v3533_v25 }
 0x8ef   :  { %v4958_v38 = vpop.eup %4957 }
 0x8f0   :  { %v2540_v29 = vpop.xlane.xlu1 %2539  ;;  %v2639_v8 = vmul.f32 %v4958_v38, %v6435_v5 }
 0x8f4   :  { %v2808_v36 = vpop.xlane.xlu1 %2807 }
 0x8f8   :  { %v2802_v55 = vpop.xlane.xlu1 %2801 }
 0x8fc   :  { %v2820_v14 = vpop.xlane.xlu1 %2819 }
 0x900   :  { %v6480_v35 = vpop.xlane.xlu1 %2813 }
 0x901   :  { %v3493_v21 = vpop.xlane.xlu0 %3492 }
 0x902   :  { %v3507_v30 = vsub.f32 %v6334_v6, %v3493_v21 }
 0x904   :  { %v3519_v52 = vmul.f32 1.442695, %v3507_v30  ;;  %v3496_v19 = vpop.xlane.xlu1 %3495 }
 0x905   :  { %v3508_v48 = vsub.f32 %v6342_v24, %v3496_v19  ;;  %v2531_v34 = vpop.xlane.xlu0 %2530 }
 0x906   :  { %4959 = vpow2.f32 %v3519_v52 }
 0x907   :  { %v3521_v17 = vmul.f32 1.442695, %v3508_v48  ;;  %4961 = vrcp.f32 %v2531_v34 }
 0x908   :  { %4963 = vrcp.f32 %v2528_v47  ;;  %v6484_v57 = vpop.permute.xlu1 %3555 }
 0x909   :  { %4965 = vpow2.f32 %v3521_v17  ;;  %4565 = vmatprep.subr.bf16.mxu0 %v6484_v57  ;;  %v2525_v10 = vpop.xlane.xlu0 %2524 }
 0x90a   :  { %4566 = vmatpush3.bf16.msra.mxu0 %v6484_v57  ;;  %4967 = vrcp.f32 %v2525_v10 }
 0x90b   :  { %4969 = vrcp.f32 %v2546_v9 }
 0x90c   :  { %v6488_v6 = vpop.permute.xlu1 %3557 }
 0x90d   :  { %4567 = vmatprep.subr.bf16.mxu0 %v6488_v6  ;;  %v2543_v24 = vpop.xlane.xlu0 %2542 }
 0x90e   :  { %4568 = vmatpush3.bf16.msra.mxu0 %v6488_v6  ;;  %4971 = vrcp.f32 %v2543_v24 }
 0x90f   :  { %4973 = vrcp.f32 %v2540_v29 }
 0x910   :  { %v6492_v11 = vpop.eup %4959 }
 0x911   :  { %v4962_v54 = vpop.eup %4961  ;;  %v2537_v56 = vpop.xlane.xlu0 %2536  ;;  %v3539_v44 = vsel %vm1019_vm3, %v6492_v11, 0.0 }
 0x912   :  { %v4964_v46 = vpop.eup %4963  ;;  %v2638_v45 = vmul.f32 %v4962_v54, %v6431_v31  ;;  %4975 = vrcp.f32 %v2537_v56  ;;  %3540 = vadd.xlane.f32.xlu0 %v3539_v44 }
 0x913   :  { %v6498_v47 = vpop.eup %4965  ;;  %4977 = vrcp.f32 %v2808_v36  ;;  %v2637_v5 = vmul.f32 %v4964_v46, %v6437_v28 }
 0x914   :  { %v4968_v15 = vpop.eup %4967  ;;  %v2919_v9 = vpack.c.bf16 %v2639_v8, %v2638_v45  ;;  %v3542_v25 = vsel %vm1019_vm3, %v6498_v47, 0.0  ;;  %v3553_v29 = vpack.c.bf16 %v6498_v47, %v6492_v11 }
 0x915   :  { %3543 = vadd.xlane.f32.xlu1 %v3542_v25  ;;  %v2805_v21 = vpop.xlane.xlu0 %2804  ;;  %v2636_v30 = vmul.f32 %v4968_v15, %v6433_v7  ;;  %v4970_v31 = vpop.eup %4969 }
 0x916   :  { %4979 = vrcp.f32 %v2805_v21  ;;  %v2643_v34 = vmul.f32 %v4970_v31, %v6443_v22 }
 0x917   :  { %v2918_v52 = vpack.c.bf16 %v2637_v5, %v2636_v30  ;;  %4981 = vrcp.f32 %v2802_v55 }
 0x918   :  { %v4972_v19 = vpop.eup %4971 }
 0x919   :  { %4501 = vmatprep.mubr.msk.bf16.mxu1 %vm929_vm2, %v2918_v52  ;;  %v2799_v36 = vpop.xlane.xlu0 %2798  ;;  %v2642_v48 = vmul.f32 %v4972_v19, %v6439_v0  ;;  %v4974_v17 = vpop.eup %4973 }
 0x91a   :  { %4983 = vrcp.f32 %v2799_v36  ;;  %4502 = vmatmul.mubr.msk.bf16.vlgmr.msra.gmra.mrb[40].mxu1 %vm929_vm2, %v2919_v9  ;;  %v2641_v24 = vmul.f32 %v4974_v17, %v6445_v58 }
 0x91b   :  { %4534 = vmatpush3.bf16.msra.mxu1 %v6376_v2  ;;  %v2921_v7 = vpack.c.bf16 %v2643_v34, %v2642_v48  ;;  %4985 = vrcp.f32 %v2820_v14 }
 0x91c   :  { %v4976_v28 = vpop.eup %4975  ;;  %4535 = vmatprep.subr.bf16.mxu1 %v6469_v23 }
 0x91d   :  { %v2817_v10 = vpop.xlane.xlu0 %2816  ;;  %v2640_v55 = vmul.f32 %v4976_v28, %v6441_v60  ;;  %v4978_v38 = vpop.eup %4977 }
 0x91e   :  { %4987 = vrcp.f32 %v2817_v10  ;;  %v2913_v54 = vmul.f32 %v4978_v38, %v6453_v13 }
 0x91f   :  { %4536 = vmatpush3.bf16.msra.mxu1 %v6469_v23  ;;  %v2920_v0 = vpack.c.bf16 %v2641_v24, %v2640_v55  ;;  %4989 = vrcp.f32 %v6480_v35 }
 0x920   :  { %v4980_v22 = vpop.eup %4979  ;;  %4537 = vmatprep.subr.bf16.mxu1 %v6478_v16 }
 0x921   :  { %4505 = vmatprep.mubr.msk.bf16.mxu1 %vm929_vm2, %v2920_v0  ;;  %v2811_v2 = vpop.xlane.xlu0 %2810  ;;  %v2912_v14 = vmul.f32 %v4980_v22, %v6447_v42  ;;  %v4982_v60 = vpop.eup %4981 }
 0x922   :  { %4991 = vrcp.f32 %v2811_v2  ;;  %4506 = vmatmul.mubr.msk.bf16.gmra.mrb[44].mxu1 %vm929_vm2, %v2921_v7  ;;  %v2911_v44 = vmul.f32 %v4982_v60, %v6455_v49 }
 0x923   :  { %4538 = vmatpush3.bf16.msra.mxu1 %v6478_v16  ;;  %v2923_v58 = vpack.c.bf16 %v2913_v54, %v2912_v14 }
 0x924   :  { %v4984_v23 = vpop.eup %4983 }
 0x925   :  { %v3499_v56 = vpop.xlane.xlu0 %3498  ;;  %v2910_v35 = vmul.f32 %v4984_v23, %v6451_v20  ;;  %v4986_v46 = vpop.eup %4985 }
 0x926   :  { %v3509_v8 = vsub.f32 %v6332_v26, %v3499_v56  ;;  %v2917_v16 = vmul.f32 %v4986_v46, %v6465_v1 }
 0x927   :  { %v2922_v45 = vpack.c.bf16 %v2911_v44, %v2910_v35 }
 0x928   :  { %v4988_v42 = vpop.eup %4987  ;;  %v3523_v15 = vmul.f32 1.442695, %v3509_v8 }
 0x929   :  { %4509 = vmatprep.mubr.msk.bf16.mxu1 %vm929_vm2, %v2922_v45  ;;  %v3502_v13 = vpop.xlane.xlu0 %3501  ;;  %v2916_v9 = vmul.f32 %v4988_v42, %v6459_v40  ;;  %v4990_v25 = vpop.eup %4989 }
 0x92a   :  { %4993 = vpow2.f32 %v3523_v15  ;;  %v3510_v21 = vsub.f32 %v6338_v43, %v3502_v13  ;;  %4510 = vmatmul.mubr.msk.bf16.gmra.mrb[48].mxu1 %vm929_vm2, %v2923_v58  ;;  %v2915_v31 = vmul.f32 %v4990_v25, %v6467_v18  ;;  %v3562_v43 = vpop.permute.xlu1 %3561 }
 0x92b   :  { %v2925_v20 = vpack.c.bf16 %v2917_v16, %v2916_v9 }
 0x92c   :  { %v4992_v49 = vpop.eup %4991  ;;  %v3525_v30 = vmul.f32 1.442695, %v3510_v21 }
 0x92d   :  { %v3272_v26 = vpop.permute.xlu0 %3271  ;;  %v2914_v5 = vmul.f32 %v4992_v49, %v6463_v62 }
 0x92e   :  { %4995 = vpow2.f32 %v3525_v30  ;;  %4539 = vmatprep.subr.bf16.mxu1 %v3272_v26 }
 0x92f   :  { %4540 = vmatpush3.bf16.msra.mxu1 %v3272_v26  ;;  %v2924_v40 = vpack.c.bf16 %v2915_v31, %v2914_v5 }
 0x930   :  { %4601 = vmatprep.subr.bf16.mxu1 %v6484_v57 }
 0x931   :  { %4513 = vmatprep.mubr.msk.bf16.mxu1 %vm929_vm2, %v2924_v40  ;;  %v3560_v1 = vpop.permute.xlu0 %3559 }
 0x932   :  { %4514 = vmatmul.mubr.msk.bf16.gmra.mrb[52].mxu1 %vm929_vm2, %v2925_v20  ;;  %4569 = vmatprep.subr.bf16.mxu0 %v3560_v1 }
 0x933   :  { %4541 = vmatprep.mubr.msk.bf16.mxu1 %vm1019_vm3, %v3261_v41  ;;  %4570 = vmatpush3.bf16.msra.mxu0 %v3560_v1 }
 0x934   :  { %v4994_v62 = vpop.eup %4993  ;;  %4571 = vmatprep.subr.bf16.mxu0 %v3562_v43 }
 0x935   :  { %v3545_v18 = vsel %vm1019_vm3, %v4994_v62, 0.0 }
 0x936   :  { %3546 = vadd.xlane.f32.xlu0 %v3545_v18 }
 0x937   :  { %4572 = vmatpush3.bf16.msra.mxu0 %v3562_v43 }
 0x938   :  { %v4996_v52 = vpop.eup %4995 }
 0x939   :  { %v3554_v19 = vpack.c.bf16 %v4996_v52, %v4994_v62  ;;  %v3548_v36 = vsel %vm1019_vm3, %v4996_v52, 0.0 }
 0x93a   :  { %3549 = vadd.xlane.f32.xlu1 %v3548_v36  ;;  %4542 = vmatmul.mubr.msk.bf16.vlgmr.msra.gmra.mrb[88].mxu1 %vm1019_vm3, %v3262_v32 }
 0x93b   :  { %4605 = vmatpush3.bf16.msra.mxu1 %v6484_v57  ;;  %4574 = vmatmul.mubr.msk.bf16.vlgmr.msra.gmra.mrb[104].mxu0 %vm1019_vm3, %v3552_v39 }
 0x93c   :  { %4545 = vmatprep.mubr.msk.bf16.mxu1 %vm1019_vm3, %v3263_v12  ;;  %4602 = vmatprep.subr.bf16.mxu1 %v6488_v6 }
 0x93f   :  { %4606 = vmatpush3.bf16.msra.mxu1 %v6488_v6 }
 0x940   :  { %4603 = vmatprep.subr.bf16.mxu1 %v3560_v1 }
 0x941   :  { %v3242_v27 = vpop.xlane.xlu1 %3241 }
 0x942   :  { %4546 = vmatmul.mubr.msk.bf16.gmra.mrb[92].mxu1 %vm1019_vm3, %v3264_v37  ;;  %4997 = vrcp.f32 %v3242_v27 }
 0x943   :  { %4607 = vmatpush3.bf16.msra.mxu1 %v3560_v1  ;;  %4577 = vmatprep.mubr.msk.bf16.mxu1 %vm1019_vm3, %v3553_v29 }
 0x944   :  { %4604 = vmatprep.subr.bf16.mxu1 %v3562_v43 }
 0x945   :  { %v3254_v50 = vpop.xlane.xlu1 %3253 }
 0x947   :  { %4608 = vmatpush3.bf16.msra.mxu1 %v3562_v43 }
 0x948   :  { %4581 = vmatprep.subr.bf16.mxu1 %v4739_v3 }
 0x949   :  { %v3260_v12 = vpop.xlane.xlu1 %3259 }
 0x94a   :  { %4578 = vmatmul.mubr.msk.bf16.vlgmr.msra.gmra.mrb[96].mxu1 %vm1019_vm3, %v3554_v19 }
 0x94b   :  { %4582 = vmatpush3.bf16.msra.mxu1 %v4739_v3 }
 0x94c   :  { %4583 = vmatprep.subr.bf16.mxu1 %v4740_v63  ;;  %v4998_v39 = vpop.eup %4997 }
 0x94d   :  { %v3532_v59 = vpop.xlane.xlu1 %3531 }
 0x94e   :  { %4999 = vrcp.f32 %v3532_v59  ;;  %v3895_v59 = vld [vmem:[%s6638_s8] ss:$0 sm:$0xff] }
 0x94f   :  { %4584 = vmatpush3.bf16.msra.mxu1 %v4740_v63 }
 0x951   :  { %v3538_v51 = vpop.xlane.xlu1 %3537 }
 0x952   :  { %5001 = vrcp.f32 %v3538_v51 }
 0x958   :  { %v5000_v57 = vpop.eup %4999 }
 0x95c   :  { %v5002_v6 = vpop.eup %5001 }
 0x962   :  { %v3239_v41 = vpop.xlane.xlu0 %3238 }
 0x963   :  { %5003 = vrcp.f32 %v3239_v41 }
 0x966   :  { %v3245_v53 = vpop.xlane.xlu0 %3244 }
 0x967   :  { %5005 = vrcp.f32 %v3245_v53 }
 0x96a   :  { %v3248_v32 = vpop.xlane.xlu0 %3247 }
 0x96b   :  { %5007 = vrcp.f32 %v3248_v32 }
 0x96d   :  { %v5004_v47 = vpop.eup %5003 }
 0x96e   :  { %v3251_v4 = vpop.xlane.xlu0 %3250 }
 0x971   :  { %v5006_v34 = vpop.eup %5005 }
 0x972   :  { %v3257_v33 = vpop.xlane.xlu0 %3256 }
 0x975   :  { %v5008_v28 = vpop.eup %5007 }
 0x976   :  { %v3529_v37 = vpop.xlane.xlu0 %3528 }
 0x97a   :  { %v3535_v61 = vpop.xlane.xlu0 %3534 }
 0x97b   :  { %5009 = vrcp.f32 %v3535_v61 }
 0x97c   :  { %5011 = vrcp.f32 %v3529_v37 }
 0x97d   :  { %5013 = vrcp.f32 %v3254_v50 }
 0x97e   :  { %5015 = vrcp.f32 %v3260_v12 }
 0x97f   :  { %5017 = vrcp.f32 %v3257_v33 }
 0x980   :  { %5019 = vrcp.f32 %v3251_v4 }
 0x985   :  { %v5010_v24 = vpop.eup %5009 }
 0x986   :  { %v5012_v14 = vpop.eup %5011 }
 0x987   :  { %v5014_v9 = vpop.eup %5013 }
 0x988   :  { %v5016_v25 = vpop.eup %5015 }
 0x989   :  { %v5018_v20 = vpop.eup %5017 }
 0x98a   :  { %v5020_v30 = vpop.eup %5019 }
 0x99f   :  { %v3541_v11 = vpop.xlane.xlu0 %3540 }
 0x9a0   :  { %5021 = vrcp.f32 %v3541_v11 }
 0x9a2   :  { %v3544_v29 = vpop.xlane.xlu1 %3543 }
 0x9aa   :  { %v5022_v18 = vpop.eup %5021 }
 0x9c3   :  { %v3547_v54 = vpop.xlane.xlu0 %3546 }
 0x9c4   :  { %5023 = vrcp.f32 %v3547_v54 }
 0x9c7   :  { %v3550_v44 = vpop.xlane.xlu1 %3549 }
 0x9c8   :  { %5025 = vrcp.f32 %v3550_v44 }
 0x9c9   :  { %5027 = vrcp.f32 %v3544_v29 }
 0x9ce   :  { %v5024_v19 = vpop.eup %5023 }
 0x9d2   :  { %v5026_v3 = vpop.eup %5025 }
 0x9d3   :  { %v5028_v41 = vpop.eup %5027 }
 0xa0d   :  { %v4543_v48 = vpop.f32.mrb[88].mxu1 }
 0xa0e   :  { %v4575_v17 = vpop.f32.mrb[104].mxu0  ;;  %v3323_v7 = vpop.f32.mrb[89].mxu1  ;;  %v3364_v38 = vmul.f32 %v5006_v34, %v4543_v48 }
 0xa0f   :  { %v3613_v10 = vpop.f32.mrb[105].mxu0  ;;  %v4544_v55 = vpop.f32.mrb[90].mxu1  ;;  %v3654_v60 = vmul.f32 %v5010_v24, %v4575_v17  ;;  %v3362_v58 = vmul.f32 %v5004_v47, %v3323_v7 }
 0xa10   :  { %v3365_v0 = vmul.f32 %v5008_v28, %v4544_v55  ;;  %v4576_v22 = vpop.f32.mrb[106].mxu0  ;;  %v3326_v2 = vpop.f32.mrb[91].mxu1  ;;  %v3652_v46 = vmul.f32 %v5012_v14, %v3613_v10 }
 0xa11   :  { %v3655_v23 = vmul.f32 %v5002_v6, %v4576_v22  ;;  %v3363_v56 = vmul.f32 %v4998_v39, %v3326_v2  ;;  %v3616_v35 = vpop.f32.mrb[107].mxu0 }
 0xa12   :  { %v3661_v8 = vpack.c.bf16 %v3365_v0, %v3364_v38  ;;  %v3653_v45 = vmul.f32 %v5000_v57, %v3616_v35 }
 0xa13   :  { %v3665_v42 = vpack.c.bf16 %v3655_v23, %v3654_v60  ;;  %v3660_v15 = vpack.c.bf16 %v3363_v56, %v3362_v58 }
 0xa14   :  { %v3664_v13 = vpack.c.bf16 %v3653_v45, %v3652_v46 }
 0xa15   :  { %v4547_v16 = vpop.f32.mrb[92].mxu1  ;;  %4585 = vmatprep.mubr.msk.bf16.mxu1 %vm929_vm2, %v3660_v15 }
 0xa16   :  { %v3339_v21 = vpop.f32.mrb[93].mxu1  ;;  %4586 = vmatmul.mubr.msk.bf16.vlgmr.msra.gmra.mrb[40].mxu1 %vm929_vm2, %v3661_v8  ;;  %v3368_v26 = vmul.f32 %v5018_v20, %v4547_v16 }
 0xa17   :  { %v4548_v49 = vpop.f32.mrb[94].mxu1  ;;  %v3366_v40 = vmul.f32 %v5020_v30, %v3339_v21 }
 0xa18   :  { %v3369_v5 = vmul.f32 %v5016_v25, %v4548_v49  ;;  %v3342_v31 = vpop.f32.mrb[95].mxu1 }
 0xa19   :  { %v3367_v1 = vmul.f32 %v5014_v9, %v3342_v31 }
 0xa1a   :  { %v3663_v43 = vpack.c.bf16 %v3369_v5, %v3368_v26 }
 0xa1b   :  { %v3662_v62 = vpack.c.bf16 %v3367_v1, %v3366_v40 }
 0xa1d   :  { %v4579_v52 = vpop.f32.mrb[96].mxu1  ;;  %4589 = vmatprep.mubr.msk.bf16.mxu1 %vm929_vm2, %v3662_v62 }
 0xa1e   :  { %v3629_v36 = vpop.f32.mrb[97].mxu1  ;;  %4590 = vmatmul.mubr.msk.bf16.gmra.mrb[44].mxu1 %vm929_vm2, %v3663_v43  ;;  %v3658_v53 = vmul.f32 %v5024_v19, %v4579_v52 }
 0xa1f   :  { %v4580_v63 = vpop.f32.mrb[98].mxu1  ;;  %4593 = vmatprep.mubr.msk.bf16.mxu1 %vm929_vm2, %v3664_v13  ;;  %v3656_v50 = vmul.f32 %v5022_v18, %v3629_v36 }
 0xa20   :  { %v3659_v27 = vmul.f32 %v5026_v3, %v4580_v63  ;;  %v3632_v32 = vpop.f32.mrb[99].mxu1 }
 0xa21   :  { %v3657_v4 = vmul.f32 %v5028_v41, %v3632_v32 }
 0xa22   :  { %v3667_v12 = vpack.c.bf16 %v3659_v27, %v3658_v53 }
 0xa23   :  { %v3666_v33 = vpack.c.bf16 %v3657_v4, %v3656_v50 }
 0xa26   :  { %4594 = vmatmul.mubr.msk.bf16.gmra.mrb[48].mxu1 %vm929_vm2, %v3665_v42 }
 0xa27   :  { %4597 = vmatprep.mubr.msk.bf16.mxu1 %vm929_vm2, %v3666_v33 }
 0xa2e   :  { %4598 = vmatmul.mubr.msk.bf16.gmra.mrb[52].mxu1 %vm929_vm2, %v3667_v12 }
 0xae9   :  { %v4587_v37 = vpop.f32.mrb[40].mxu1 }
 0xaea   :  { %v4609_v51 = vadd.f32 %v4587_v37, %v3895_v59  ;;  %v3743_v61 = vpop.f32.mrb[41].mxu1 }
 0xaeb   :  { %v4610_v39 = vadd.f32 %v3895_v59, %v3743_v61  ;;  %v4588_v57 = vpop.f32.mrb[42].mxu1 }
 0xaec   :  { %3824 = vst [vmem:[%s6639_s9 + $0x10] sm:$0xff] %v4609_v51  ;;  %v4611_v6 = vadd.f32 %v4588_v57, %v3895_v59  ;;  %v3746_v11 = vpop.f32.mrb[43].mxu1 }
 0xaed   :  { %3822 = vst [vmem:[%s6639_s9] sm:$0xff] %v4610_v39  ;;  %v4612_v47 = vadd.f32 %v3895_v59, %v3746_v11 }
 0xaee   :  { %3825 = vst [vmem:[%s6639_s9 + $0x18] sm:$0xff] %v4611_v6 }
 0xaef   :  { %3823 = vst [vmem:[%s6639_s9 + $0x8] sm:$0xff] %v4612_v47 }
 0xaf1   :  { %v4591_v29 = vpop.f32.mrb[44].mxu1 }
 0xaf2   :  { %v4613_v48 = vadd.f32 %v4591_v29, %v3895_v59  ;;  %v3759_v34 = vpop.f32.mrb[45].mxu1 }
 0xaf3   :  { %v4614_v17 = vadd.f32 %v3895_v59, %v3759_v34  ;;  %v4592_v7 = vpop.f32.mrb[46].mxu1 }
 0xaf4   :  { %3828 = vst [vmem:[%s6639_s9 + $0x30] sm:$0xff] %v4613_v48  ;;  %v4615_v28 = vadd.f32 %v4592_v7, %v3895_v59  ;;  %v3762_v10 = vpop.f32.mrb[47].mxu1 }
 0xaf5   :  { %3826 = vst [vmem:[%s6639_s9 + $0x20] sm:$0xff] %v4614_v17  ;;  %v4616_v55 = vadd.f32 %v3895_v59, %v3762_v10 }
 0xaf6   :  { %3829 = vst [vmem:[%s6639_s9 + $0x38] sm:$0xff] %v4615_v28 }
 0xaf7   :  { %3827 = vst [vmem:[%s6639_s9 + $0x28] sm:$0xff] %v4616_v55 }
 0xaf9   :  { %v4595_v24 = vpop.f32.mrb[48].mxu1 }
 0xafa   :  { %v4617_v38 = vadd.f32 %v4595_v24, %v3895_v59  ;;  %v3775_v0 = vpop.f32.mrb[49].mxu1 }
 0xafb   :  { %v4618_v22 = vadd.f32 %v3895_v59, %v3775_v0  ;;  %v4596_v2 = vpop.f32.mrb[50].mxu1 }
 0xafc   :  { %3832 = vst [vmem:[%s6639_s9 + $0x50] sm:$0xff] %v4617_v38  ;;  %v4619_v14 = vadd.f32 %v4596_v2, %v3895_v59  ;;  %v3778_v54 = vpop.f32.mrb[51].mxu1 }
 0xafd   :  { %3830 = vst [vmem:[%s6639_s9 + $0x40] sm:$0xff] %v4618_v22  ;;  %v4620_v60 = vadd.f32 %v3895_v59, %v3778_v54 }
 0xafe   :  { %3833 = vst [vmem:[%s6639_s9 + $0x58] sm:$0xff] %v4619_v14 }
 0xaff   :  { %3831 = vst [vmem:[%s6639_s9 + $0x48] sm:$0xff] %v4620_v60 }
 0xb01   :  { %v4599_v58 = vpop.f32.mrb[52].mxu1 }
 0xb02   :  { %v4621_v23 = vadd.f32 %v4599_v58, %v3895_v59  ;;  %v3791_v56 = vpop.f32.mrb[53].mxu1 }
 0xb03   :  { %v4622_v35 = vadd.f32 %v3895_v59, %v3791_v56  ;;  %v4600_v44 = vpop.f32.mrb[54].mxu1 }
 0xb04   :  { %3836 = vst [vmem:[%s6639_s9 + $0x70] sm:$0xff] %v4621_v23  ;;  %v4623_v46 = vadd.f32 %v4600_v44, %v3895_v59  ;;  %v3794_v8 = vpop.f32.mrb[55].mxu1 }
 0xb05   :  { %3834 = vst [vmem:[%s6639_s9 + $0x60] sm:$0xff] %v4622_v35  ;;  %v4624_v45 = vadd.f32 %v3895_v59, %v3794_v8 }
 0xb06   :  { %3837 = vst [vmem:[%s6639_s9 + $0x78] sm:$0xff] %v4623_v46 }
 0xb07   :  { %3835 = vst [vmem:[%s6639_s9 + $0x68] sm:$0xff] %v4624_v45 }

</bundles_post_ra>
